<compile_context>
chip_gen: v7x
topology: tpu7x:2x2x1
jax: 0.10.0
libtpu: 0.0.40
codegen_flags: <defaults>
</compile_context>

<pallas_src>
import functools

import jax
import jax.numpy as jnp
from jax.experimental import pallas as pl
from jax.experimental.pallas import tpu as pltpu


def _pointnet_feat_kernel(
    pts_ref,                                   # (1, TILE_N, 3)  f32
    w1, b1, w2, b2, w3, b3, w4, b4, w5,        # folded conv+BN (w1 f32, w2..w5 bf16, b f32)
    gpart_ref,                                 # (1, 1, 8, 1024) f32 — sublane-partial running max
    cfeat_ref,                                 # (1, 64, TILE_N) f32
    *, tile_n, n_valid, need_mask, n_inner, bf16_epilogue,
):
    ni = pl.program_id(2)

    # Initialize the per-(batch, outer-block) partial-max accumulator (output-resident
    # across the inner/"arbitrary" N axis).
    @pl.when(ni == 0)
    def _():
        gpart_ref[...] = jnp.full_like(gpart_ref, -jnp.inf)

    x = pts_ref[0]                              # (TILE_N, 3) f32

    # ---- Layer 1 (3 -> 64): K=3, run on the VPU as broadcast FMAs (f32 weights).
    w1f = w1[...]                               # (3, 64) f32
    h1 = jnp.maximum(
        x[:, 0:1] * w1f[0:1, :]
        + x[:, 1:2] * w1f[1:2, :]
        + x[:, 2:3] * w1f[2:3, :]
        + b1[...],
        0.0,
    )                                           # (TILE_N, 64) f32

    def mm(h, w_ref):
        # bf16 x bf16 -> f32 accumulation on the MXU.
        return jnp.dot(h.astype(jnp.bfloat16), w_ref[...],
                       preferred_element_type=jnp.float32)

    # ---- Layer 2 (64 -> 64): f32 ReLU (its output is stored as concat_feat).
    h2 = jnp.maximum(mm(h1, w2) + b2[...], 0.0)            # (TILE_N, 64) f32

    def lin_relu(h, w_ref, b_ref):
        acc = mm(h, w_ref) + b_ref[...]
        if bf16_epilogue:
            # v6e/v7x: fuse ReLU with the bf16 downcast (half the vregs, no extra cast).
            return jnp.maximum(acc.astype(jnp.bfloat16), 0.0)
        return jnp.maximum(acc, 0.0)

    h3 = lin_relu(h2, w3, b3)                   # (TILE_N, 64)
    h4 = lin_relu(h3, w4, b4)                   # (TILE_N, 128)

    # ---- Layer 5 (128 -> 1024): raw accumulation only.  Bias + ReLU are
    # commuted past the max-pool (both are monotone, bias is point-independent)
    # and applied once in the wrapper.
    acc5 = mm(h4, w5)                           # (TILE_N, 1024) f32

    if need_mask:
        start = (pl.program_id(1) * n_inner + ni) * tile_n
        rows = jax.lax.broadcasted_iota(jnp.int32, (tile_n, 1), 0) + start
        acc5 = jnp.where(rows < n_valid, acc5, -jnp.inf)

    # VALU-only partial reduce across sublane groups (no XLU work per tile).
    part = jnp.max(acc5.reshape(tile_n // 8, 8, 1024), axis=0)   # (8, 1024)
    gpart_ref[0, 0] = jnp.maximum(gpart_ref[0, 0], part)

    # concat_feat in PyTorch NCW layout, lane-dense store (last dim = TILE_N).
    cfeat_ref[0] = h2.T.astype(cfeat_ref.dtype)


_TILE_CANDIDATES = (4096, 2048, 1024, 512, 256, 128)


def _round_up(x, m):
    return ((x + m - 1) // m) * m


def _choose_tiling(n, cap):
    """Pick (tile_n, padded_n): largest candidate tile <= cap dividing the 128-aligned length."""
    n128 = _round_up(max(n, 1), 128)
    for t in _TILE_CANDIDATES:
        if t <= cap and t <= n128 and n128 % t == 0:
            return t, n128
    return 128, n128


def _device_kind():
    try:
        return jax.devices()[0].device_kind.lower()
    except Exception:  # pragma: no cover
        return ""


def pointnet_feat_forward(pointcloud, params, *, tile_n=None):
    """pointcloud: [B, N, 3] f32 -> (global_feat [B, 1024], concat_feat [B, 64, N])."""
    B, N, C = pointcloud.shape
    assert C == 3

    kind = _device_kind()
    is_v7 = "v7" in kind
    is_v56 = ("v5" in kind) or ("v6" in kind)
    bf16_epilogue = ("v6" in kind) or is_v7            # v5e has no bf16 VPU
    tile_cap = 2048 if is_v7 else (4096 if is_v56 else 2048)
    vmem_limit = (96 if (is_v56 and not is_v7) else 48) * 1024 * 1024

    if tile_n is None:
        tile_n, n_pad = _choose_tiling(N, tile_cap)
    else:
        assert tile_n % 128 == 0, "tile_n must be a multiple of 128"
        n_pad = _round_up(N, tile_n)

    n_tiles = n_pad // tile_n
    n_outer = 2 if (n_tiles >= 2 and n_tiles % 2 == 0) else 1
    n_inner = n_tiles // n_outer
    need_mask = n_pad != N

    pts = pointcloud
    if need_mask:
        pts = jnp.pad(pointcloud, ((0, 0), (0, n_pad - N), (0, 0)))

    weight_names = ["w1", "b1", "w2", "b2", "w3", "b3", "w4", "b4", "w5"]
    weight_args = [params[k] for k in weight_names]

    def const_spec(arr):
        nd = arr.ndim
        return pl.BlockSpec(arr.shape, lambda b, o, i, _nd=nd: (0,) * _nd)

    in_specs = [pl.BlockSpec((1, tile_n, 3), lambda b, o, i: (b, o * n_inner + i, 0))]
    in_specs += [const_spec(a) for a in weight_args]

    out_shape = (
        jax.ShapeDtypeStruct((B, n_outer, 8, 1024), jnp.float32),   # raw partial maxima of acc5
        jax.ShapeDtypeStruct((B, 64, n_pad), jnp.float32),          # concat_feat, PyTorch layout
    )
    out_specs = (
        pl.BlockSpec((1, 1, 8, 1024), lambda b, o, i: (b, o, 0, 0)),   # resident across inner axis
        pl.BlockSpec((1, 64, tile_n), lambda b, o, i: (b, 0, o * n_inner + i)),
    )

    kernel = functools.partial(
        _pointnet_feat_kernel,
        tile_n=tile_n,
        n_valid=N,
        need_mask=need_mask,
        n_inner=n_inner,
        bf16_epilogue=bf16_epilogue,
    )

    gpart, cfeat = pl.pallas_call(
        kernel,
        out_shape=out_shape,
        grid=(B, n_outer, n_inner),
        in_specs=in_specs,
        out_specs=out_specs,
        compiler_params=pltpu.CompilerParams(
            dimension_semantics=("parallel", "parallel", "arbitrary"),
            vmem_limit_bytes=vmem_limit,
        ),
    )(pts, *weight_args)

    # Finalize: reduce the (n_outer, 8) partials and apply the commuted layer-5 bias + ReLU once.
    gmax = jnp.max(gpart, axis=(1, 2))                                   # (B, 1024)
    gfeat = jnp.maximum(gmax + params["b5"].reshape(1, 1024), 0.0)       # (B, 1024)

    if need_mask:
        cfeat = cfeat[:, :, :N]
    return gfeat, cfeat


# ---------------- parameter construction (deterministic, synthetic) ----------------

def _fold_conv_bn(key, c_in, c_out, w_dtype):
    """Conv1d(c_in, c_out, 1) + BatchNorm1d(c_out) folded -> (W [c_in,c_out], b f32 [1,c_out])."""
    kw, kb, kg, kbe, km, kv = jax.random.split(key, 6)
    bound = 1.0 / jnp.sqrt(jnp.float32(c_in))
    w = jax.random.uniform(kw, (c_in, c_out), jnp.float32, -bound, bound)
    b = jax.random.uniform(kb, (c_out,), jnp.float32, -bound, bound)
    gamma = 1.0 + 0.1 * jax.random.normal(kg, (c_out,), jnp.float32)
    beta = 0.1 * jax.random.normal(kbe, (c_out,), jnp.float32)
    mean = 0.1 * jax.random.normal(km, (c_out,), jnp.float32)
    var = jax.random.uniform(kv, (c_out,), jnp.float32, 0.5, 1.5)
    scale = gamma / jnp.sqrt(var + 1e-5)
    w_eff = (w * scale[None, :]).astype(w_dtype)
    b_eff = ((b - mean) * scale + beta).reshape(1, c_out).astype(jnp.float32)
    return w_eff, b_eff


def make_params(key):
    dims = [(3, 64), (64, 64), (64, 64), (64, 128), (128, 1024)]
    keys = jax.random.split(key, len(dims))
    params = {}
    for i, (ci, co) in enumerate(dims):
        # Layer 1 never touches the MXU (K=3 runs on the VPU) -> keep f32 weights.
        w_dtype = jnp.float32 if i == 0 else jnp.bfloat16
        w, b = _fold_conv_bn(keys[i], ci, co, w_dtype)
        params[f"w{i + 1}"] = w
        params[f"b{i + 1}"] = b
    return params


def reference_forward(pointcloud, p):
    """Pure-JAX reference mirroring the kernel math (bf16 matmuls, f32 accumulation)."""
    relu = jax.nn.relu
    h1 = relu(pointcloud @ p["w1"] + p["b1"])                            # (B,N,64) f32

    def mm(h, w):
        return jnp.einsum("bnc,cd->bnd", h.astype(jnp.bfloat16), w,
                          preferred_element_type=jnp.float32)

    h2 = relu(mm(h1, p["w2"]) + p["b2"])                                 # concat_feat
    h3 = relu(mm(h2, p["w3"]) + p["b3"])
    h4 = relu(mm(h3, p["w4"]) + p["b4"])
    h5 = relu(mm(h4, p["w5"]) + p["b5"])                                 # (B,N,1024)
    gfeat = jnp.max(h5, axis=1)                                          # (B,1024)
    cfeat = jnp.transpose(h2, (0, 2, 1))                                 # (B,64,N)
    return gfeat, cfeat


def _check(pointcloud, params, tol=2e-2, **kwargs):
    gfeat, cfeat = pointnet_feat_forward(pointcloud, params, **kwargs)
    gfeat = jax.block_until_ready(gfeat)
    cfeat = jax.block_until_ready(cfeat)
    B, N, _ = pointcloud.shape
    assert gfeat.shape == (B, 1024), gfeat.shape
    assert cfeat.shape == (B, 64, N), cfeat.shape
    ref_g, ref_c = reference_forward(pointcloud, params)
    err_g = float(jnp.max(jnp.abs(gfeat - ref_g)))
    err_c = float(jnp.max(jnp.abs(cfeat - ref_c)))
    assert err_g < tol, f"global feature max abs error too large: {err_g}"
    assert err_c < tol, f"concat feature max abs error too large: {err_c}"


if __name__ == "__main__":
    key = jax.random.PRNGKey(0)
    k_pts, k_par, k_pts2 = jax.random.split(key, 3)
    params = make_params(k_par)

    # 1) default tiling
    pc = jax.random.normal(k_pts, (2, 512, 3), jnp.float32)
    _check(pc, params)

    # 2) forced small tile: exercises multi-tile accumulation + the n_outer parallel split
    _check(pc, params, tile_n=128)

    # 3) N not a multiple of the tile: exercises padding + in-kernel masking of padded points
    pc2 = jax.random.normal(k_pts2, (1, 450, 3), jnp.float32)
    _check(pc2, params, tile_n=128)

    print("KERNEL_OK")
</pallas_src>

<mosaic_0001>
module attributes {stable_mosaic.version = 11 : i64} {
  func.func @_pointnet_feat_kernel(%arg0: i32, %arg1: i32, %arg2: i32, %arg3: memref<1x512x3xf32, #tpu.memory_space<vmem>>, %arg4: memref<3x64xf32, #tpu.memory_space<vmem>>, %arg5: memref<1x64xf32, #tpu.memory_space<vmem>>, %arg6: memref<64x64xbf16, #tpu.memory_space<vmem>>, %arg7: memref<1x64xf32, #tpu.memory_space<vmem>>, %arg8: memref<64x64xbf16, #tpu.memory_space<vmem>>, %arg9: memref<1x64xf32, #tpu.memory_space<vmem>>, %arg10: memref<64x128xbf16, #tpu.memory_space<vmem>>, %arg11: memref<1x128xf32, #tpu.memory_space<vmem>>, %arg12: memref<128x1024xbf16, #tpu.memory_space<vmem>>, %arg13: memref<1x1x8x1024xf32, #tpu.memory_space<vmem>>, %arg14: memref<1x64x512xf32, #tpu.memory_space<vmem>>) attributes {dimension_semantics = [#tpu.dimension_semantics<parallel>, #tpu.dimension_semantics<parallel>, #tpu.dimension_semantics<arbitrary>], iteration_bounds = array<i64: 2, 1, 1>, scalar_prefetch = 0 : i64, scratch_operands = 0 : i64, tpu.core_type = #tpu.core_type<tc>, window_params = [{transform_indices = @transform_0, window_bounds = array<i64: 1, 512, 3>}, {pipeline_mode = #tpu.pipeline_mode<synchronous>, transform_indices = @transform_1, window_bounds = array<i64: 3, 64>}, {pipeline_mode = #tpu.pipeline_mode<synchronous>, transform_indices = @transform_2, window_bounds = array<i64: 1, 64>}, {pipeline_mode = #tpu.pipeline_mode<synchronous>, transform_indices = @transform_3, window_bounds = array<i64: 64, 64>}, {pipeline_mode = #tpu.pipeline_mode<synchronous>, transform_indices = @transform_4, window_bounds = array<i64: 1, 64>}, {pipeline_mode = #tpu.pipeline_mode<synchronous>, transform_indices = @transform_5, window_bounds = array<i64: 64, 64>}, {pipeline_mode = #tpu.pipeline_mode<synchronous>, transform_indices = @transform_6, window_bounds = array<i64: 1, 64>}, {pipeline_mode = #tpu.pipeline_mode<synchronous>, transform_indices = @transform_7, window_bounds = array<i64: 64, 128>}, {pipeline_mode = #tpu.pipeline_mode<synchronous>, transform_indices = @transform_8, window_bounds = array<i64: 1, 128>}, {pipeline_mode = #tpu.pipeline_mode<synchronous>, transform_indices = @transform_9, window_bounds = array<i64: 128, 1024>}, {transform_indices = @transform_10, window_bounds = array<i64: 1, 1, 8, 1024>}, {transform_indices = @transform_11, window_bounds = array<i64: 1, 64, 512>}]} {
    %c0_i32 = arith.constant 0 : i32
    %0 = arith.cmpi eq, %arg2, %c0_i32 : i32
    %1 = arith.extui %0 : i1 to i32
    %c0_i32_0 = arith.constant 0 : i32
    %2 = arith.cmpi ne, %1, %c0_i32_0 : i32
    scf.if %2 {
      %cst_40 = arith.constant 0xFF800000 : f32
      %67 = vector.broadcast %cst_40 : f32 to vector<1x1x8x1024xf32>
      %c0_41 = arith.constant 0 : index
      %c0_42 = arith.constant 0 : index
      %c0_43 = arith.constant 0 : index
      %c0_44 = arith.constant 0 : index
      %68 = vector.load %arg13[%c0_41, %c0_42, %c0_43, %c0_44] : memref<1x1x8x1024xf32, #tpu.memory_space<vmem>>, vector<1x1x8x1024xf32>
      tpu.vector_store %arg13[%c0_41, %c0_42, %c0_43, %c0_44], %67 {strides = array<i32>} : memref<1x1x8x1024xf32, #tpu.memory_space<vmem>>, vector<1x1x8x1024xf32>,
    } else {
    }
    %c0 = arith.constant 0 : index
    %c0_1 = arith.constant 0 : index
    %c0_2 = arith.constant 0 : index
    %3 = vector.load %arg3[%c0, %c0_1, %c0_2] : memref<1x512x3xf32, #tpu.memory_space<vmem>>, vector<1x512x3xf32>
    %4 = vector.shape_cast %3 : vector<1x512x3xf32> to vector<512x3xf32>
    %c0_3 = arith.constant 0 : index
    %c0_4 = arith.constant 0 : index
    %5 = vector.load %arg4[%c0_3, %c0_4] : memref<3x64xf32, #tpu.memory_space<vmem>>, vector<3x64xf32>
    %6 = vector.extract_strided_slice %4 {offsets = [0, 0], sizes = [512, 1], strides = [1, 1]} : vector<512x3xf32> to vector<512x1xf32>
    %7 = vector.extract_strided_slice %5 {offsets = [0, 0], sizes = [1, 64], strides = [1, 1]} : vector<3x64xf32> to vector<1x64xf32>
    %8 = vector.broadcast %6 : vector<512x1xf32> to vector<512x64xf32>
    %9 = vector.broadcast %7 : vector<1x64xf32> to vector<512x64xf32>
    %10 = arith.mulf %8, %9 : vector<512x64xf32>
    %11 = vector.extract_strided_slice %4 {offsets = [0, 1], sizes = [512, 1], strides = [1, 1]} : vector<512x3xf32> to vector<512x1xf32>
    %12 = vector.extract_strided_slice %5 {offsets = [1, 0], sizes = [1, 64], strides = [1, 1]} : vector<3x64xf32> to vector<1x64xf32>
    %13 = vector.broadcast %11 : vector<512x1xf32> to vector<512x64xf32>
    %14 = vector.broadcast %12 : vector<1x64xf32> to vector<512x64xf32>
    %15 = arith.mulf %13, %14 : vector<512x64xf32>
    %16 = arith.addf %10, %15 : vector<512x64xf32>
    %17 = vector.extract_strided_slice %4 {offsets = [0, 2], sizes = [512, 1], strides = [1, 1]} : vector<512x3xf32> to vector<512x1xf32>
    %18 = vector.extract_strided_slice %5 {offsets = [2, 0], sizes = [1, 64], strides = [1, 1]} : vector<3x64xf32> to vector<1x64xf32>
    %19 = vector.broadcast %17 : vector<512x1xf32> to vector<512x64xf32>
    %20 = vector.broadcast %18 : vector<1x64xf32> to vector<512x64xf32>
    %21 = arith.mulf %19, %20 : vector<512x64xf32>
    %22 = arith.addf %16, %21 : vector<512x64xf32>
    %c0_5 = arith.constant 0 : index
    %c0_6 = arith.constant 0 : index
    %23 = vector.load %arg5[%c0_5, %c0_6] : memref<1x64xf32, #tpu.memory_space<vmem>>, vector<1x64xf32>
    %24 = vector.broadcast %23 : vector<1x64xf32> to vector<512x64xf32>
    %25 = arith.addf %22, %24 : vector<512x64xf32>
    %cst = arith.constant 0.000000e+00 : f32
    %26 = vector.broadcast %cst : f32 to vector<512x64xf32>
    %27 = arith.maximumf %25, %26 : vector<512x64xf32>
    %28 = arith.truncf %27 : vector<512x64xf32> to vector<512x64xbf16>
    %c0_7 = arith.constant 0 : index
    %c0_8 = arith.constant 0 : index
    %29 = vector.load %arg6[%c0_7, %c0_8] : memref<64x64xbf16, #tpu.memory_space<vmem>>, vector<64x64xbf16>
    %cst_9 = arith.constant dense<0.000000e+00> : vector<512x64xf32>
    %30 = tpu.matmul %28, %29, %cst_9 {dimension_numbers = #tpu.dot_dimension_numbers<[1], [0], [0], [1], [0, 0, 1, 1], [], []>} : vector<512x64xbf16>, vector<64x64xbf16>, vector<512x64xf32> -> vector<512x64xf32>
    %c0_10 = arith.constant 0 : index
    %c0_11 = arith.constant 0 : index
    %31 = vector.load %arg7[%c0_10, %c0_11] : memref<1x64xf32, #tpu.memory_space<vmem>>, vector<1x64xf32>
    %32 = vector.broadcast %31 : vector<1x64xf32> to vector<512x64xf32>
    %33 = arith.addf %30, %32 : vector<512x64xf32>
    %cst_12 = arith.constant 0.000000e+00 : f32
    %34 = vector.broadcast %cst_12 : f32 to vector<512x64xf32>
    %35 = arith.maximumf %33, %34 : vector<512x64xf32>
    %36 = arith.truncf %35 : vector<512x64xf32> to vector<512x64xbf16>
    %c0_13 = arith.constant 0 : index
    %c0_14 = arith.constant 0 : index
    %37 = vector.load %arg8[%c0_13, %c0_14] : memref<64x64xbf16, #tpu.memory_space<vmem>>, vector<64x64xbf16>
    %cst_15 = arith.constant dense<0.000000e+00> : vector<512x64xf32>
    %38 = tpu.matmul %36, %37, %cst_15 {dimension_numbers = #tpu.dot_dimension_numbers<[1], [0], [0], [1], [0, 0, 1, 1], [], []>} : vector<512x64xbf16>, vector<64x64xbf16>, vector<512x64xf32> -> vector<512x64xf32>
    %c0_16 = arith.constant 0 : index
    %c0_17 = arith.constant 0 : index
    %39 = vector.load %arg9[%c0_16, %c0_17] : memref<1x64xf32, #tpu.memory_space<vmem>>, vector<1x64xf32>
    %40 = vector.broadcast %39 : vector<1x64xf32> to vector<512x64xf32>
    %41 = arith.addf %38, %40 : vector<512x64xf32>
    %cst_18 = arith.constant 0.000000e+00 : f32
    %42 = vector.broadcast %cst_18 : f32 to vector<512x64xf32>
    %43 = arith.maximumf %41, %42 : vector<512x64xf32>
    %44 = arith.truncf %43 : vector<512x64xf32> to vector<512x64xbf16>
    %c0_19 = arith.constant 0 : index
    %c0_20 = arith.constant 0 : index
    %45 = vector.load %arg10[%c0_19, %c0_20] : memref<64x128xbf16, #tpu.memory_space<vmem>>, vector<64x128xbf16>
    %cst_21 = arith.constant dense<0.000000e+00> : vector<512x128xf32>
    %46 = tpu.matmul %44, %45, %cst_21 {dimension_numbers = #tpu.dot_dimension_numbers<[1], [0], [0], [1], [0, 0, 1, 1], [], []>} : vector<512x64xbf16>, vector<64x128xbf16>, vector<512x128xf32> -> vector<512x128xf32>
    %c0_22 = arith.constant 0 : index
    %c0_23 = arith.constant 0 : index
    %47 = vector.load %arg11[%c0_22, %c0_23] : memref<1x128xf32, #tpu.memory_space<vmem>>, vector<1x128xf32>
    %48 = vector.broadcast %47 : vector<1x128xf32> to vector<512x128xf32>
    %49 = arith.addf %46, %48 : vector<512x128xf32>
    %cst_24 = arith.constant 0.000000e+00 : f32
    %50 = vector.broadcast %cst_24 : f32 to vector<512x128xf32>
    %51 = arith.maximumf %49, %50 : vector<512x128xf32>
    %52 = arith.truncf %51 : vector<512x128xf32> to vector<512x128xbf16>
    %c0_25 = arith.constant 0 : index
    %c0_26 = arith.constant 0 : index
    %53 = vector.load %arg12[%c0_25, %c0_26] : memref<128x1024xbf16, #tpu.memory_space<vmem>>, vector<128x1024xbf16>
    %cst_27 = arith.constant dense<0.000000e+00> : vector<512x1024xf32>
    %54 = tpu.matmul %52, %53, %cst_27 {dimension_numbers = #tpu.dot_dimension_numbers<[1], [0], [0], [1], [0, 0, 1, 1], [], []>} : vector<512x128xbf16>, vector<128x1024xbf16>, vector<512x1024xf32> -> vector<512x1024xf32>
    %55 = vector.shape_cast %54 : vector<512x1024xf32> to vector<64x8x1024xf32>
    %cst_28 = arith.constant dense<0xFF800000> : vector<8x1024xf32>
    %56 = vector.multi_reduction <maximumf>, %55, %cst_28 [0] : vector<64x8x1024xf32> to vector<8x1024xf32>
    %c0_29 = arith.constant 0 : index
    %c0_30 = arith.constant 0 : index
    %c0_31 = arith.constant 0 : index
    %c0_32 = arith.constant 0 : index
    %57 = vector.load %arg13[%c0_29, %c0_30, %c0_31, %c0_32] : memref<1x1x8x1024xf32, #tpu.memory_space<vmem>>, vector<1x1x8x1024xf32>
    %58 = vector.shape_cast %57 : vector<1x1x8x1024xf32> to vector<8x1024xf32>
    %59 = arith.maximumf %58, %56 : vector<8x1024xf32>
    %c0_33 = arith.constant 0 : index
    %c0_34 = arith.constant 0 : index
    %c0_35 = arith.constant 0 : index
    %c0_36 = arith.constant 0 : index
    %60 = vector.load %arg13[%c0_33, %c0_34, %c0_35, %c0_36] : memref<1x1x8x1024xf32, #tpu.memory_space<vmem>>, vector<1x1x8x1024xf32>
    %61 = vector.shape_cast %60 : vector<1x1x8x1024xf32> to vector<8x1024xf32>
    %62 = vector.shape_cast %59 : vector<8x1024xf32> to vector<1x1x8x1024xf32>
    tpu.vector_store %arg13[%c0_33, %c0_34, %c0_35, %c0_36], %62 {strides = array<i32>} : memref<1x1x8x1024xf32, #tpu.memory_space<vmem>>, vector<1x1x8x1024xf32>,
    %63 = tpu.transpose %35, [1, 0] : vector<512x64xf32> -> vector<64x512xf32>
    %c0_37 = arith.constant 0 : index
    %c0_38 = arith.constant 0 : index
    %c0_39 = arith.constant 0 : index
    %64 = vector.load %arg14[%c0_37, %c0_38, %c0_39] : memref<1x64x512xf32, #tpu.memory_space<vmem>>, vector<1x64x512xf32>
    %65 = vector.shape_cast %64 : vector<1x64x512xf32> to vector<64x512xf32>
    %66 = vector.shape_cast %63 : vector<64x512xf32> to vector<1x64x512xf32>
    tpu.vector_store %arg14[%c0_37, %c0_38, %c0_39], %66 {strides = array<i32>} : memref<1x64x512xf32, #tpu.memory_space<vmem>>, vector<1x64x512xf32>,
    return
  }
  func.func @transform_0(%arg0: i32, %arg1: i32, %arg2: i32) -> (i32, i32, i32) {
    %c1_i32 = arith.constant 1 : i32
    %0 = arith.muli %arg1, %c1_i32 : i32
    %1 = arith.addi %0, %arg2 : i32
    %c0_i32 = arith.constant 0 : i32
    %c0_i32_0 = arith.constant 0 : i32
    return %arg0, %1, %c0_i32 : i32, i32, i32
  }
  func.func @transform_1(%arg0: i32, %arg1: i32, %arg2: i32) -> (i32, i32) {
    %c0_i32 = arith.constant 0 : i32
    %c0_i32_0 = arith.constant 0 : i32
    %c0_i32_1 = arith.constant 0 : i32
    return %c0_i32, %c0_i32_0 : i32, i32
  }
  func.func @transform_2(%arg0: i32, %arg1: i32, %arg2: i32) -> (i32, i32) {
    %c0_i32 = arith.constant 0 : i32
    %c0_i32_0 = arith.constant 0 : i32
    %c0_i32_1 = arith.constant 0 : i32
    return %c0_i32, %c0_i32_0 : i32, i32
  }
  func.func @transform_3(%arg0: i32, %arg1: i32, %arg2: i32) -> (i32, i32) {
    %c0_i32 = arith.constant 0 : i32
    %c0_i32_0 = arith.constant 0 : i32
    %c0_i32_1 = arith.constant 0 : i32
    return %c0_i32, %c0_i32_0 : i32, i32
  }
  func.func @transform_4(%arg0: i32, %arg1: i32, %arg2: i32) -> (i32, i32) {
    %c0_i32 = arith.constant 0 : i32
    %c0_i32_0 = arith.constant 0 : i32
    %c0_i32_1 = arith.constant 0 : i32
    return %c0_i32, %c0_i32_0 : i32, i32
  }
  func.func @transform_5(%arg0: i32, %arg1: i32, %arg2: i32) -> (i32, i32) {
    %c0_i32 = arith.constant 0 : i32
    %c0_i32_0 = arith.constant 0 : i32
    %c0_i32_1 = arith.constant 0 : i32
    return %c0_i32, %c0_i32_0 : i32, i32
  }
  func.func @transform_6(%arg0: i32, %arg1: i32, %arg2: i32) -> (i32, i32) {
    %c0_i32 = arith.constant 0 : i32
    %c0_i32_0 = arith.constant 0 : i32
    %c0_i32_1 = arith.constant 0 : i32
    return %c0_i32, %c0_i32_0 : i32, i32
  }
  func.func @transform_7(%arg0: i32, %arg1: i32, %arg2: i32) -> (i32, i32) {
    %c0_i32 = arith.constant 0 : i32
    %c0_i32_0 = arith.constant 0 : i32
    %c0_i32_1 = arith.constant 0 : i32
    return %c0_i32, %c0_i32_0 : i32, i32
  }
  func.func @transform_8(%arg0: i32, %arg1: i32, %arg2: i32) -> (i32, i32) {
    %c0_i32 = arith.constant 0 : i32
    %c0_i32_0 = arith.constant 0 : i32
    %c0_i32_1 = arith.constant 0 : i32
    return %c0_i32, %c0_i32_0 : i32, i32
  }
  func.func @transform_9(%arg0: i32, %arg1: i32, %arg2: i32) -> (i32, i32) {
    %c0_i32 = arith.constant 0 : i32
    %c0_i32_0 = arith.constant 0 : i32
    %c0_i32_1 = arith.constant 0 : i32
    return %c0_i32, %c0_i32_0 : i32, i32
  }
  func.func @transform_10(%arg0: i32, %arg1: i32, %arg2: i32) -> (i32, i32, i32, i32) {
    %c0_i32 = arith.constant 0 : i32
    %c0_i32_0 = arith.constant 0 : i32
    %c0_i32_1 = arith.constant 0 : i32
    return %arg0, %arg1, %c0_i32, %c0_i32_0 : i32, i32, i32, i32
  }
  func.func @transform_11(%arg0: i32, %arg1: i32, %arg2: i32) -> (i32, i32, i32) {
    %c1_i32 = arith.constant 1 : i32
    %0 = arith.muli %arg1, %c1_i32 : i32
    %1 = arith.addi %0, %arg2 : i32
    %c0_i32 = arith.constant 0 : i32
    %c0_i32_0 = arith.constant 0 : i32
    return %arg0, %c0_i32, %1 : i32, i32, i32
  }
}

</mosaic_0001>

<bundles_post_ra>
// kernel: tpu_custom_call.1
= control target key start
LH: loop header
LB: loop body
LE: loop exit
PB: predicated region body
PF: predicated region fallthrough
CT: control target
= control target key end

     0   :  { %s8996_s0 = inlined_call_operand.vmem [shape: f32[2,512,3], index: 0, kind: input, shape index: {}]   ;;  %s8997_s1 = inlined_call_operand.vmem [shape: f32[3,64], index: 1, kind: input, shape index: {}]   ;;  %s8998_s2 = inlined_call_operand.vmem [shape: f32[1,64], index: 2, kind: input, shape index: {}]   ;;  %s8999_s3 = inlined_call_operand.vmem [shape: bf16[64,64], index: 3, kind: input, shape index: {}]   ;;  %s9000_s4 = inlined_call_operand.vmem [shape: f32[1,64], index: 4, kind: input, shape index: {}]   ;;  %s9001_s5 = inlined_call_operand.vmem [shape: bf16[64,64], index: 5, kind: input, shape index: {}]   ;;  %s9002_s6 = inlined_call_operand.vmem [shape: f32[1,64], index: 6, kind: input, shape index: {}]   ;;  %s9003_s7 = inlined_call_operand.vmem [shape: bf16[64,128], index: 7, kind: input, shape index: {}]   ;;  %s9004_s8 = inlined_call_operand.vmem [shape: f32[1,128], index: 8, kind: input, shape index: {}]   ;;  %s9005_s9 = inlined_call_operand.vmem [shape: bf16[128,1024], index: 9, kind: input, shape index: {}]   ;;  %s9006_s10 = inlined_call_operand.hbm [shape: f32[2,1,8,1024], index: 10, kind: output, shape index: {0}]   ;;  %s9007_s11 = inlined_call_operand.hbm [shape: f32[2,64,512], index: 11, kind: output, shape index: {1}]  }
   0x1   :  { %9030 = sst [smem:[#allocation18_spill]] %s8996_s0 }
   0x2   :  { %9031 = sst [smem:[#allocation19_spill]] %s8997_s1 }
   0x3   :  { %9032 = sst [smem:[#allocation20_spill]] %s8998_s2 }
   0x4   :  { %9033 = sst [smem:[#allocation21_spill]] %s8999_s3 }
   0x5   :  { %17 = vsyncpa [#allocation3], 0 }
   0x6   :  { %19 = vsyncpa [#allocation3 + $0x1], 0 }
   0x7   :  { %20 = vsyncpa [#allocation5], 0 }
   0x8   :  { %22 = vsyncpa [#allocation5 + $0x1], 0  ;;  %s6932_s17 = smov 0   ;;  %s6934_s18 = smov 0  }
   0x9   :  { %s6936_s19 = smov 0   ;;  %s6938_s20 = smov 0  }
   0xa   :  { %s6940_s21 = smov 0   ;;  %s6942_s22 = smov 0  }
   0xb LB: > { %s6056_s23 = sadd.s32 4294967295, %s6863_s22   ;;  %s6057_s24 = sadd.s32 4294967294, %s6863_s22   ;;  %s6863_s22 = sphi %s6942_s22, %s28_s22   ;;  %s6859_s21 = sphi %s6940_s21, %s9074_s21   ;;  %s6855_s20 = sphi %s6938_s20, %s9073_s20   ;;  %s6851_s19 = sphi %s6936_s19, %s9072_s19   ;;  %s6847_s18 = sphi %s6934_s18, %s9071_s18   ;;  %s6843_s17 = sphi %s6932_s17, %s9070_s17  }
   0xc   : > { %s47_s25 = sadd.s32 1, %s6859_s21  ;;  %s275_s26 = sadd.s32 1, %s6851_s19 }
   0xd   : > { %p49_p0 = scmp.ge.s32.totalorder %s47_s25, 2  ;;  %p285_p1 = scmp.ne.s32.totalorder %s6851_s19, %s6847_s18 }
   0xe   : > { %p286_p2 = scmp.eq.s32.totalorder %s6056_s23, 1  ;;  %p291_p3 = scmp.ne.s32.totalorder %s6847_s18, %s6843_s17 }
   0xf   : > { %s9076_s25 = smov (%p49_p0, %s47_s25), 0  ;;  %p292_p5 = scmp.eq.s32.totalorder %s6057_s24, 1 }
  0x10   : > { %p6972_p4 = por %p286_p2, %p285_p1  ;;  %s270_s28 = ssub.s32 %s6859_s21, %s9076_s25 }
  0x11   : > { %p6060_p6 = scmp.ge.s32.totalorder %s6863_s22, 1  ;;  %p273_p7 = scmp.eq.s32.totalorder %s270_s28, 0 }
  0x12   : > { %p6979_p8 = por %p292_p5, %p291_p3  ;;  %p382_p9 = scmp.lt.s32.totalorder %s6863_s22, 3 }
  0x13   : > { %s6985_s30 = scalar_select %p273_p7, %s6851_s19, %s275_s26  }
  0x14   : > { %p383_p10 = pnand %p6060_p6, %p382_p9 }
  0x16   : > { %386 = sbr.rel (%p383_p10) target bundleno = 1912 (0x778), region = 60 }
  0x1d   : > { %p434_p11 = scmp.lt.s32.totalorder %s6855_s20, 1  ;;  %v9008_v0 = vmov 2   ;;  %v9012_v1 = vmov 1   ;;  %s9036_s0 = sld [smem:[#allocation18_spill]]  ;;  %v9010_v7 = vmov 0   ;;  %v844_v44 = vlaneseq }
  0x1e   : > { %6654 = vset.pattern.permute.xlu0 %v9008_v0  ;;  %6650 = vset.pattern.permute.xlu1 %v9012_v1  ;;  %s9037_s3 = sld [smem:[#allocation21_spill]]  ;;  %s9039_s1 = sld [smem:[#allocation19_spill]]  ;;  %vm1894_vm0 = vcmask 523264  }
  0x1f   : > { %s435_s12 = scalar_select %p434_p11, %s6855_s20, 1  ;;  %v845_v48 = vshrl.u32 %v844_v44, 7 }
  0x20   : > { %s9042_s2 = sld [smem:[#allocation20_spill]]  ;;  %s8838_s14 = sand.u32 1, %s6847_s18  }
  0x21   : > { %s6249_s13 = sshll.u32 %s435_s12, 9  ;;  %v1170_v53 = vsub.s32 1, %v845_v48  ;;  %v1558_v56 = vsub.s32 2, %v845_v48  ;;  %v846_v57 = vsub.s32 0, %v845_v48  ;;  %s6061_s15 = sshll.u32 %s8838_s14, 6 }
  0x22   : > { %s8846_s23 = scalar_lea.vmem [#allocation2], %s6061_s15  ;;  %s6062_s24 = sshll.u32 %s8838_s14, 8 }
  0x23   : > { %s6994_s16 = scalar_lea.vmem %s9036_s0, %s6249_s13  ;;  %s8872_s26 = scalar_lea.vmem [#allocation4], %s6062_s24 }
  0x24   : > { %v460_v2 = vld [vmem:[%s6994_s16 + $0x8] sm:$0xff]  ;;  %v459_v3 = vld [vmem:[%s6994_s16] sm:$0xff]  ;;  %v466_v5 = vld [vmem:[%s6994_s16 + $0x38] sm:$0xff]  ;;  %s6251_s28 = sshll.u32 %s6855_s20, 12  ;;  %s5938_s12 = sshll.u32 %s8872_s26, 4  ;;  %s8911_s12 = int_to_ptr.vmem [resolvable:$true] %s5938_s12 }
  0x25   : > { %1305 = vperm.xlu0 %6654, %v460_v2   ;;  %913 = vperm.xlu1 %6650, %v459_v3   ;;  %v463_v4 = vld [vmem:[%s6994_s16 + $0x20] sm:$0xff]  ;;  %v462_v6 = vld [vmem:[%s6994_s16 + $0x18] sm:$0xff]  ;;  %v468_v8 = vld [vmem:[%s6994_s16 + $0x48] sm:$0xff]  ;;  %s8909_s15 = scalar_lea.hbm %s9007_s11, %s6251_s28  ;;  %s6753_s0 = scalar_lea.vmem %s8911_s12, 4096 }
  0x26   : > { %v7005_v9 = vld [vmem:[%s6994_s16 + $0x60] sm:$0xff]  ;;  %v7009_v10 = vld [vmem:[%s6994_s16 + $0x78] sm:$0xff]  ;;  %v461_v11 = vld [vmem:[%s6994_s16 + $0x10] sm:$0xff]  ;;  %p6754_p12 = scmp.ne.s32.totalorder %s8911_s12, %s6753_s0  ;;  %s6868_s28 = smov [#allocation4]  }
  0x27   : > { %v7015_v12 = vld [vmem:[%s6994_s16 + $0x88] sm:$0xff]  ;;  %v465_v14 = vld [vmem:[%s6994_s16 + $0x30] sm:$0xff]  ;;  %v7037_v17 = vld [vmem:[%s6994_s16 + $0xa0] sm:$0xff]  ;;  %s6757_s13 = sshll.u32 %s6868_s28, 4  ;;  %s6758_s13 = int_to_ptr.vmem [resolvable:$false] %s6757_s13 }
  0x28   : > { %v464_v13 = vld [vmem:[%s6994_s16 + $0x28] sm:$0xff]  ;;  %v7025_v15 = vld [vmem:[%s6994_s16 + $0x50] sm:$0xff]  ;;  %v467_v18 = vld [vmem:[%s6994_s16 + $0x40] sm:$0xff]  ;;  %p6755_p13 = pnand %p6754_p12, %p6972_p4  ;;  %p6760_p1 = scmp.lt.s32.totalorder %s8911_s12, %s6758_s13 }
  0x29   : > { %1317 = vperm.xlu0 %6654, %v463_v4   ;;  %917 = vperm.xlu1 %6650, %v460_v2   ;;  %v7033_v16 = vld [vmem:[%s6994_s16 + $0x90] sm:$0xff]  ;;  %v7043_v19 = vld [vmem:[%s6994_s16 + $0xc8] sm:$0xff]  ;;  %v7052_v21 = vld [vmem:[%s6994_s16 + $0xe0] sm:$0xff] }
  0x2a   : > { %v7048_v20 = vld [vmem:[%s6994_s16 + $0xd0] sm:$0xff]  ;;  %v470_v22 = vld [vmem:[%s6994_s16 + $0x58] sm:$0xff]  ;;  %v7058_v23 = vld [vmem:[%s6994_s16 + $0x108] sm:$0xff]  ;;  %p6756_p0 = pneg %p6755_p13 }
  0x2b   : > { %v7062_v24 = vld [vmem:[%s6994_s16 + $0x110] sm:$0xff]  ;;  %v6736_v25 = vld [vmem:[%s9037_s3] sm:$0xff]   ;;  %v6737_v26 = vld [vmem:[%s9037_s3 + $0x8] sm:$0xff]  }
  0x2c   : > { %6360 = vmatprep.subr.bf16.mxu0 %v6736_v25  ;;  %6576 = vmatprep.subr.bf16.mxu1 %v6736_v25  ;;  %v6738_v27 = vld [vmem:[%s9037_s3 + $0x10] sm:$0xff]   ;;  %v6739_v28 = vld [vmem:[%s9037_s3 + $0x18] sm:$0xff]   ;;  %v472_v29 = vld [vmem:[%s6994_s16 + $0x68] sm:$0xff] }
  0x2d   : > { %1329 = vperm.xlu0 %6654, %v466_v5   ;;  %6651 = vset.pattern.permute.xlu1 %v9010_v7  ;;  %v473_v30 = vld [vmem:[%s6994_s16 + $0x70] sm:$0xff]  ;;  %v7090_v31 = vld [vmem:[%s6994_s16 + $0xa8] sm:$0xff]  ;;  %v475_v39 = vld [vmem:[%s6994_s16 + $0x80] sm:$0xff] }
  0x2e   : > { %541 = vperm.xlu1 %6651, %v462_v6   ;;  %6361 = vmatpush3.bf16.msra.mxu0 %v6736_v25  ;;  %v7095_v32 = vld [vmem:[%s6994_s16 + $0xb0] sm:$0xff]  ;;  %v7103_v35 = vld [vmem:[%s6994_s16 + $0xe8] sm:$0xff]  ;;  %v478_v50 = vld [vmem:[%s6994_s16 + $0x98] sm:$0xff] }
  0x2f   : > { %6580 = vmatpush3.bf16.msra.mxu1 %v6736_v25  ;;  %6362 = vmatprep.subr.bf16.mxu0 %v6737_v26  ;;  %v7109_v38 = vld [vmem:[%s6994_s16 + $0xf0] sm:$0xff]  ;;  %v7123_v43 = vld [vmem:[%s6994_s16 + $0x128] sm:$0xff]  ;;  %v523_v54 = vld [vmem:[%s9039_s1] sm:$0x7] }
  0x30   : > { %6577 = vmatprep.subr.bf16.mxu1 %v6737_v26  ;;  %v7131_v47 = vld [vmem:[%s6994_s16 + $0x130] sm:$0xff]  ;;  %v7151_v59 = vld [vmem:[%s6994_s16 + $0x168] sm:$0xff]  ;;  %v7153_v60 = vrot.slane %v523_v54, %v1170_v53  ;;  %v7159_v62 = vrot.slane %v523_v54, %v1558_v56  ;;  %v7161_v63 = vrot.slane %v523_v54, %v846_v57 }
  0x31   : > { %1337 = vperm.xlu0 %6654, %v468_v8   ;;  %9038 = vst [vmem:[#allocation8_spill] sm:$0xff] %v7131_v47  ;;  %v7139_v52 = vld [vmem:[%s6994_s16 + $0x150] sm:$0xff]  ;;  %9040 = vst [vmem:[#allocation9_spill] sm:$0xff] %v7151_v59 }
  0x32   : > { %6652 = vset.pattern.permute.xlu1 %v9012_v1  ;;  %6363 = vmatpush3.bf16.msra.mxu0 %v6737_v26 }
  0x33   : > { %925 = vperm.xlu1 %6652, %v462_v6   ;;  %6581 = vmatpush3.bf16.msra.mxu1 %v6737_v26 }
  0x34   : > { %6364 = vmatprep.subr.bf16.mxu0 %v6738_v27  ;;  %6578 = vmatprep.subr.bf16.mxu1 %v6738_v27 }
  0x35   : > { %1349 = vperm.xlu0 %6654, %v7005_v9  }
  0x36   : > { %6365 = vmatpush3.bf16.msra.mxu0 %v6738_v27 }
  0x37   : > { %6653 = vset.pattern.permute.xlu1 %v9008_v0  ;;  %6582 = vmatpush3.bf16.msra.mxu1 %v6738_v27 }
  0x38   : > { %1301 = vperm.xlu1 %6653, %v459_v3   ;;  %6366 = vmatprep.subr.bf16.mxu0 %v6739_v28 }
  0x39   : > { %1361 = vperm.xlu0 %6654, %v7009_v10   ;;  %6579 = vmatprep.subr.bf16.mxu1 %v6739_v28 }
  0x3a   : > { %6367 = vmatpush3.bf16.msra.mxu0 %v6739_v28 }
  0x3b   : > { %6583 = vmatpush3.bf16.msra.mxu1 %v6739_v28  ;;  %v482_v28 = vld [vmem:[%s6994_s16 + $0xb8] sm:$0xff] }
  0x3c   : > { %1309 = vperm.xlu1 %6653, %v461_v11  }
  0x3d   : > { %1369 = vperm.xlu0 %6654, %v7015_v12  }
  0x40   : > { %1313 = vperm.xlu1 %6653, %v462_v6  }
  0x41   : > { %6675 = vset.pattern.permute.xlu0 %v9010_v7 }
  0x42   : > { %526 = vperm.xlu0 %6675, %v459_v3  }
  0x44   : > { %6655 = vset.pattern.permute.xlu1 %v9010_v7 }
  0x45   : > { %551 = vperm.xlu1 %6655, %v464_v13  }
  0x46   : > { %531 = vperm.xlu0 %6675, %v460_v2   ;;  %v7164_v2 = vld [vmem:[%s6994_s16 + $0x170] sm:$0xff] }
  0x47   : > { %9041 = vst [vmem:[#allocation10_spill] sm:$0xff] %v7164_v2 }
  0x49   : > { %6656 = vset.pattern.permute.xlu1 %v9012_v1 }
  0x4a   : > { %536 = vperm.xlu0 %6675, %v461_v11   ;;  %929 = vperm.xlu1 %6656, %v463_v4  }
  0x4e   : > { %546 = vperm.xlu0 %6675, %v463_v4   ;;  %6657 = vset.pattern.permute.xlu1 %v9010_v7 }
  0x4f   : > { %556 = vperm.xlu1 %6657, %v465_v14  }
  0x52   : > { %571 = vperm.xlu0 %6675, %v468_v8  }
  0x53   : > { %561 = vperm.xlu1 %6657, %v466_v5  }
  0x56   : > { %576 = vperm.xlu0 %6675, %v7025_v15  }
  0x57   : > { %6658 = vset.pattern.permute.xlu1 %v9012_v1 }
  0x58   : > { %941 = vperm.xlu1 %6658, %v466_v5  }
  0x5a   : > { %586 = vperm.xlu0 %6675, %v7005_v9  }
  0x5c   : > { %6659 = vset.pattern.permute.xlu1 %v9008_v0 }
  0x5d   : > { %1321 = vperm.xlu1 %6659, %v464_v13  }
  0x5e   : > { %611 = vperm.xlu0 %6675, %v7015_v12  }
  0x61   : > { %1325 = vperm.xlu1 %6659, %v465_v14  }
  0x62   : > { %616 = vperm.xlu0 %6675, %v7033_v16  }
  0x65   : > { %6660 = vset.pattern.permute.xlu1 %v9010_v7 }
  0x66   : > { %626 = vperm.xlu0 %6675, %v7037_v17   ;;  %566 = vperm.xlu1 %6660, %v467_v18  }
  0x6a   : > { %651 = vperm.xlu0 %6675, %v7043_v19   ;;  %6661 = vset.pattern.permute.xlu1 %v9012_v1 }
  0x6b   : > { %945 = vperm.xlu1 %6661, %v467_v18  }
  0x6e   : > { %656 = vperm.xlu0 %6675, %v7048_v20  }
  0x6f   : > { %949 = vperm.xlu1 %6661, %v468_v8  }
  0x72   : > { %666 = vperm.xlu0 %6675, %v7052_v21  }
  0x73   : > { %6662 = vset.pattern.permute.xlu1 %v9010_v7 }
  0x74   : > { %581 = vperm.xlu1 %6662, %v470_v22  }
  0x76   : > { %691 = vperm.xlu0 %6675, %v7058_v23  }
  0x78   : > { %6663 = vset.pattern.permute.xlu1 %v9012_v1 }
  0x79   : > { %957 = vperm.xlu1 %6663, %v470_v22  }
  0x7a   : > { %696 = vperm.xlu0 %6675, %v7062_v24  }
  0x7d   : > { %6664 = vset.pattern.permute.xlu1 %v9008_v0 }
  0x7e   : > { %6693 = vset.pattern.permute.xlu0 %v9012_v1  ;;  %1333 = vperm.xlu1 %6664, %v467_v18   ;;  %v7182_v18 = vld [vmem:[%s9042_s2] ss:$0 sm:$0xff] }
  0x7f   : > { %921 = vperm.xlu0 %6693, %v461_v11  }
  0x82   : > { %1341 = vperm.xlu1 %6664, %v7025_v15  }
  0x83   : > { %933 = vperm.xlu0 %6693, %v464_v13  }
  0x86   : > { %1345 = vperm.xlu1 %6664, %v470_v22  }
  0x87   : > { %937 = vperm.xlu0 %6693, %v465_v14  }
  0x8a   : > { %6665 = vset.pattern.permute.xlu1 %v9010_v7 }
  0x8b   : > { %953 = vperm.xlu0 %6693, %v7025_v15   ;;  %591 = vperm.xlu1 %6665, %v472_v29  }
  0x8f   : > { %965 = vperm.xlu0 %6693, %v472_v29   ;;  %6666 = vset.pattern.permute.xlu1 %v9012_v1 }
  0x90   : > { %961 = vperm.xlu1 %6666, %v7005_v9  }
  0x93   : > { %969 = vperm.xlu0 %6693, %v473_v30  }
  0x94   : > { %6667 = vset.pattern.permute.xlu1 %v9010_v7 }
  0x95   : > { %596 = vperm.xlu1 %6667, %v473_v30  }
  0x97   : > { %985 = vperm.xlu0 %6693, %v7033_v16  }
  0x99   : > { %601 = vperm.xlu1 %6667, %v7009_v10  }
  0x9b   : > { %997 = vperm.xlu0 %6693, %v7090_v31  }
  0x9d   : > { %6668 = vset.pattern.permute.xlu1 %v9012_v1 }
  0x9e   : > { %973 = vperm.xlu1 %6668, %v7009_v10  }
  0x9f   : > { %1001 = vperm.xlu0 %6693, %v7095_v32  }
  0xa2   : > { %6669 = vset.pattern.permute.xlu1 %v9008_v0 }
  0xa3   : > { %1353 = vperm.xlu1 %6669, %v472_v29   ;;  %1017 = vperm.xlu0 %6693, %v7048_v20  }
  0xa4   : > { %v914_v33 = vpop.permute.xlu1 %913  ;;  %v1306_v34 = vpop.permute.xlu0 %1305 }
  0xa5   : > { %v1172_v4 = vmul.f32 %v7153_v60, %v914_v33  ;;  %v1561_v11 = vmul.f32 %v7159_v62, %v1306_v34 }
  0xa7   : > { %1357 = vperm.xlu1 %6669, %v473_v30   ;;  %1029 = vperm.xlu0 %6693, %v7103_v35  }
  0xa8   : > { %v918_v36 = vpop.permute.xlu1 %917  ;;  %v7106_v37 = vpop.permute.xlu0 %1317 }
  0xab   : > { %6670 = vset.pattern.permute.xlu1 %v9010_v7  ;;  %1033 = vperm.xlu0 %6693, %v7109_v38  }
  0xac   : > { %606 = vperm.xlu1 %6670, %v475_v39   ;;  %v7114_v40 = vpop.permute.xlu0 %1329 }
  0xad   : > { %v7116_v41 = vpop.permute.xlu1 %541 }
  0xaf   : > { %1049 = vperm.xlu0 %6693, %v7062_v24  }
  0xb0   : > { %6671 = vset.pattern.permute.xlu1 %v9012_v1  ;;  %v7120_v42 = vpop.permute.xlu0 %1337 }
  0xb1   : > { %977 = vperm.xlu1 %6671, %v475_v39  }
  0xb2   : > { %v7125_v45 = vpop.permute.xlu1 %925 }
  0xb3   : > { %1061 = vperm.xlu0 %6693, %v7123_v43  }
  0xb4   : > { %v7128_v46 = vpop.permute.xlu0 %1349 }
  0xb5   : > { %981 = vperm.xlu1 %6671, %v7015_v12   ;;  %v1173_v12 = vmul.f32 %v7153_v60, %v918_v36 }
  0xb7   : > { %v1302_v49 = vpop.permute.xlu1 %1301  ;;  %1065 = vperm.xlu0 %6693, %v7131_v47  }
  0xb8   : > { %v7136_v51 = vpop.permute.xlu0 %1361  ;;  %v1560_v6 = vmul.f32 %v7159_v62, %v1302_v49 }
  0xb9   : > { %6672 = vset.pattern.permute.xlu1 %v9010_v7 }
  0xba   : > { %621 = vperm.xlu1 %6672, %v478_v50  }
  0xbb   : > { %v7145_v55 = vpop.permute.xlu1 %1309  ;;  %1081 = vperm.xlu0 %6693, %v7139_v52  }
  0xbc   : > { %v7148_v58 = vpop.permute.xlu0 %1369 }
  0xbe   : > { %6673 = vset.pattern.permute.xlu1 %v9012_v1 }
  0xbf   : > { %989 = vperm.xlu1 %6673, %v478_v50   ;;  %v7156_v61 = vpop.permute.xlu1 %1313  ;;  %1093 = vperm.xlu0 %6693, %v7151_v59   ;;  %v7297_v59 = vld [vmem:[%s6994_s16 + $0xd8] sm:$0xff] }
  0xc1   : > { %v527_v3 = vpop.permute.xlu0 %526 }
  0xc2   : > { %v848_v5 = vmul.f32 %v7161_v63, %v527_v3 }
  0xc3   : > { %6674 = vset.pattern.permute.xlu1 %v9008_v0  ;;  %1097 = vperm.xlu0 %6693, %v7164_v2  }
  0xc4   : > { %v1236_v8 = vadd.f32 %v1172_v4, %v848_v5  ;;  %1365 = vperm.xlu1 %6674, %v475_v39   ;;  %v7171_v9 = vpop.permute.xlu1 %551  ;;  %v7232_v4 = vld [vmem:[%s6994_s16 + $0x138] sm:$0xff] }
  0xc5   : > { %v532_v10 = vpop.permute.xlu0 %531  ;;  %9043 = vst [vmem:[#allocation11_spill] sm:$0xff] %v7232_v4 }
  0xc6   : > { %v1624_v13 = vadd.f32 %v1560_v6, %v1236_v8  ;;  %v849_v14 = vmul.f32 %v7161_v63, %v532_v10  ;;  %v7239_v8 = vld [vmem:[%s6994_s16 + $0x148] sm:$0xff] }
  0xc7   : > { %6710 = vset.pattern.permute.xlu0 %v9008_v0 }
  0xc8   : > { %v1237_v15 = vadd.f32 %v1173_v12, %v849_v14  ;;  %1373 = vperm.xlu1 %6674, %v7033_v16   ;;  %1381 = vperm.xlu0 %6710, %v7037_v17   ;;  %v1695_v27 = vadd.f32 %v7182_v18, %v1624_v13  ;;  %v7254_v14 = vld [vmem:[%s6994_s16 + $0x178] sm:$0xff] }
  0xc9   : > { %v7184_v22 = vpop.permute.xlu0 %536  ;;  %v7186_v25 = vpop.permute.xlu1 %929  ;;  %9046 = vst [vmem:[#allocation14_spill] sm:$0xff] %v7254_v14 }
  0xca   : > { %v1625_v26 = vadd.f32 %v1561_v11, %v1237_v15  ;;  %v1759_v33 = vmax.f32 %v1695_v27, 0.0  ;;  %v7247_v11 = vld [vmem:[%s6994_s16 + $0x160] sm:$0xff]  ;;  %v7264_v27 = vld [vmem:[%s6994_s16 + $0x188] sm:$0xff] }
  0xcc   : > { %1377 = vperm.xlu1 %6674, %v478_v50   ;;  %v1696_v29 = vadd.f32 %v7182_v18, %v1625_v26  ;;  %1393 = vperm.xlu0 %6710, %v482_v28   ;;  %v7211_v50 = vld [vmem:[%s6994_s16 + $0xf8] sm:$0xff]  ;;  %v7257_v26 = vld [vmem:[%s6994_s16 + $0xc0] sm:$0xff] }
  0xcd   : > { %v7191_v16 = vpop.permute.xlu0 %546 }
  0xce   : > { %v7193_v30 = vpop.permute.xlu1 %556  ;;  %v1760_v34 = vmax.f32 %v1696_v29, 0.0  ;;  %v7273_v29 = vld [vmem:[%s6994_s16 + $0x1a0] sm:$0xff] }
  0xd0   : > { %6676 = vset.pattern.permute.xlu1 %v9010_v7  ;;  %v1823_v36 = vpack.c.bf16 %v1760_v34, %v1759_v33  ;;  %1401 = vperm.xlu0 %6710, %v7043_v19   ;;  %v1175_v33 = vmul.f32 %v7153_v60, %v7125_v45  ;;  %v852_v45 = vmul.f32 %v7161_v63, %v7191_v16 }
  0xd1   : > { %631 = vperm.xlu1 %6676, %v7090_v31   ;;  %v7198_v39 = vpop.permute.xlu0 %571 }
  0xd2   : > { %6368 = vmatprep.mubr.msk.bf16.mxu0 %vm1894_vm0, %v1823_v36  ;;  %v7201_v44 = vpop.permute.xlu1 %561  ;;  %v851_v36 = vmul.f32 %v7161_v63, %v7116_v41  ;;  %v850_v41 = vmul.f32 %v7161_v63, %v7184_v22 }
  0xd3   : > { %v855_v22 = vmul.f32 %v7161_v63, %v7201_v44 }
  0xd4   : > { %1413 = vperm.xlu0 %6710, %v7052_v21  }
  0xd5   : > { %6677 = vset.pattern.permute.xlu1 %v9012_v1  ;;  %v7205_v48 = vpop.permute.xlu0 %576 }
  0xd6   : > { %993 = vperm.xlu1 %6677, %v7037_v17   ;;  %v7224_v17 = vld [vmem:[%s6994_s16 + $0x120] sm:$0xff] }
  0xd7   : > { %v7208_v49 = vpop.permute.xlu1 %941 }
  0xd8   : > { %1425 = vperm.xlu0 %6710, %v7211_v50  }
  0xd9   : > { %v7214_v53 = vpop.permute.xlu0 %586 }
  0xda   : > { %6678 = vset.pattern.permute.xlu1 %v9010_v7 }
  0xdb   : > { %636 = vperm.xlu1 %6678, %v7095_v32  }
  0xdc   : > { %v7218_v54 = vpop.permute.xlu1 %1321  ;;  %1433 = vperm.xlu0 %6710, %v7058_v23  }
  0xdd   : > { %v7221_v56 = vpop.permute.xlu0 %611 }
  0xdf   : > { %641 = vperm.xlu1 %6678, %v482_v28  }
  0xe0   : > { %v7226_v57 = vpop.permute.xlu1 %1325  ;;  %1445 = vperm.xlu0 %6710, %v7224_v17  }
  0xe1   : > { %v7229_v3 = vpop.permute.xlu0 %616 }
  0xe3   : > { %6679 = vset.pattern.permute.xlu1 %v9012_v1 }
  0xe4   : > { %1005 = vperm.xlu1 %6679, %v482_v28   ;;  %1457 = vperm.xlu0 %6710, %v7232_v4  }
  0xe5   : > { %v567_v5 = vpop.permute.xlu1 %566  ;;  %v7236_v6 = vpop.permute.xlu0 %626 }
  0xe8   : > { %6680 = vset.pattern.permute.xlu1 %v9008_v0  ;;  %1465 = vperm.xlu0 %6710, %v7239_v8   ;;  %v1563_v0 = vmul.f32 %v7159_v62, %v7156_v61  ;;  %v7300_v61 = vld [vmem:[%s6994_s16 + $0x1c8] sm:$0xff] }
  0xe9   : > { %1385 = vperm.xlu1 %6680, %v7090_v31   ;;  %v7244_v10 = vpop.permute.xlu0 %651 }
  0xea   : > { %9044 = vst [vmem:[#allocation12_spill] sm:$0xff] %v7244_v10  ;;  %v946_v12 = vpop.permute.xlu1 %945  ;;  %v853_v10 = vmul.f32 %v7161_v63, %v7171_v9 }
  0xec   : > { %1477 = vperm.xlu0 %6710, %v7247_v11  }
  0xed   : > { %1389 = vperm.xlu1 %6680, %v7095_v32   ;;  %v7251_v13 = vpop.permute.xlu0 %656 }
  0xee   : > { %9045 = vst [vmem:[#allocation13_spill] sm:$0xff] %v7251_v13  ;;  %v950_v15 = vpop.permute.xlu1 %949 }
  0xf0   : > { %1489 = vperm.xlu0 %6710, %v7254_v14   ;;  %v1176_v14 = vmul.f32 %v7153_v60, %v7186_v25  ;;  %v9050_v25 = vmov 0  }
  0xf1   : > { %6681 = vset.pattern.permute.xlu1 %v9010_v7  ;;  %v7261_v31 = vpop.permute.xlu0 %666 }
  0xf2   : > { %9047 = vst [vmem:[#allocation15_spill] sm:$0xff] %v7261_v31  ;;  %646 = vperm.xlu1 %6681, %v7257_v26   ;;  %v1240_v16 = vadd.f32 %v1176_v14, %v852_v45 }
  0xf3   : > { %v7267_v28 = vpop.permute.xlu1 %581 }
  0xf4   : > { %1497 = vperm.xlu0 %6710, %v7264_v27  }
  0xf5   : > { %v7270_v32 = vpop.permute.xlu0 %691 }
  0xf6   : > { %9048 = vst [vmem:[#allocation16_spill] sm:$0xff] %v7270_v32  ;;  %6682 = vset.pattern.permute.xlu1 %v9012_v1  ;;  %v514_v1 = vld [vmem:[%s6994_s16 + $0x1b8] sm:$0xff]  ;;  %v1239_v32 = vadd.f32 %v1175_v33, %v851_v36  ;;  %v1181_v36 = vmul.f32 %v7153_v60, %v950_v15 }
  0xf7   : > { %1009 = vperm.xlu1 %6682, %v7257_v26  }
  0xf8   : > { %v7279_v34 = vpop.permute.xlu1 %957  ;;  %1509 = vperm.xlu0 %6710, %v7273_v29   ;;  %v1627_v2 = vadd.f32 %v1563_v0, %v1239_v32  ;;  %v1180_v32 = vmul.f32 %v7153_v60, %v946_v12  ;;  %v856_v12 = vmul.f32 %v7161_v63, %v567_v5 }
  0xf9   : > { %v7286_v7 = vpop.permute.xlu0 %696 }
  0xfa   : > { %9049 = vst [vmem:[#allocation17_spill] sm:$0xff] %v7286_v7  ;;  %v1564_v7 = vmul.f32 %v7159_v62, %v7106_v37  ;;  %v1567_v37 = vmul.f32 %v7159_v62, %v7114_v40  ;;  %v1244_v47 = vadd.f32 %v1180_v32, %v856_v12 }
  0xfb   : > { %1013 = vperm.xlu1 %6682, %v7043_v19   ;;  %v1179_v19 = vmul.f32 %v7153_v60, %v7208_v49  ;;  %v1698_v49 = vadd.f32 %v7182_v18, %v1627_v2 }
  0xfc   : > { %1521 = vperm.xlu0 %6710, %v514_v1   ;;  %v857_v1 = vmul.f32 %v7161_v63, %v7198_v39  ;;  %v1562_v39 = vmul.f32 %v7159_v62, %v7145_v55  ;;  %v1569_v55 = vmul.f32 %v7159_v62, %v7120_v42 }
  0xfd   : > { %v1334_v31 = vpop.permute.xlu1 %1333  ;;  %v1243_v44 = vadd.f32 %v1179_v19, %v855_v22 }
  0xfe   : > { %v922_v33 = vpop.permute.xlu0 %921  ;;  %v1568_v15 = vmul.f32 %v7159_v62, %v1334_v31  ;;  %v1245_v2 = vadd.f32 %v1181_v36, %v857_v1 }
  0xff   : > { %v1174_v0 = vmul.f32 %v7153_v60, %v922_v33  ;;  %6683 = vset.pattern.permute.xlu1 %v9050_v25  ;;  %v1628_v33 = vadd.f32 %v1564_v7, %v1240_v16  ;;  %v1565_v7 = vmul.f32 %v7159_v62, %v7218_v54  ;;  %v1631_v16 = vadd.f32 %v1567_v37, %v1243_v44 }
 0x100   : > { %661 = vperm.xlu1 %6683, %v7297_v59   ;;  %1529 = vperm.xlu0 %6710, %v7300_v61   ;;  %v1632_v19 = vadd.f32 %v1568_v15, %v1244_v47  ;;  %v1633_v36 = vadd.f32 %v1569_v55, %v1245_v2 }
 0x101   : > { %v1238_v14 = vadd.f32 %v1174_v0, %v850_v41  ;;  %v1342_v45 = vpop.permute.xlu1 %1341  ;;  %v9051_v41 = vmov 1   ;;  %v1699_v42 = vadd.f32 %v7182_v18, %v1628_v33  ;;  %v854_v0 = vmul.f32 %v7161_v63, %v7193_v30 }
 0x102   : > { %v934_v13 = vpop.permute.xlu0 %933  ;;  %v1702_v33 = vadd.f32 %v7182_v18, %v1631_v16  ;;  %v1704_v2 = vadd.f32 %v7182_v18, %v1633_v36 }
 0x103   : > { %v1626_v4 = vadd.f32 %v1562_v39, %v1238_v14  ;;  %v1177_v40 = vmul.f32 %v7153_v60, %v934_v13  ;;  %v1762_v13 = vmax.f32 %v1698_v49, 0.0  ;;  %v1183_v39 = vmul.f32 %v7153_v60, %v7279_v34 }
 0x104   : > { %6684 = vset.pattern.permute.xlu1 %v9051_v41  ;;  %6728 = vset.pattern.permute.xlu0 %v9050_v25  ;;  %v9052_v49 = vmov 2   ;;  %v1763_v14 = vmax.f32 %v1699_v42, 0.0 }
 0x105   : > { %v1697_v5 = vadd.f32 %v7182_v18, %v1626_v4  ;;  %v1241_v31 = vadd.f32 %v1177_v40, %v853_v10  ;;  %1021 = vperm.xlu1 %6684, %v7297_v59   ;;  %v1346_v9 = vpop.permute.xlu1 %1345  ;;  %706 = vperm.xlu0 %6728, %v7224_v17   ;;  %v858_v4 = vmul.f32 %v7161_v63, %v7205_v48 }
 0x106   : > { %v938_v1 = vpop.permute.xlu0 %937  ;;  %v1566_v10 = vmul.f32 %v7159_v62, %v7226_v57  ;;  %v859_v48 = vmul.f32 %v7161_v63, %v7267_v28  ;;  %v1703_v57 = vadd.f32 %v7182_v18, %v1632_v19  ;;  %v1571_v15 = vmul.f32 %v7159_v62, %v1346_v9 }
 0x107   : > { %v1761_v22 = vmax.f32 %v1697_v5, 0.0  ;;  %v1629_v32 = vadd.f32 %v1565_v7, %v1241_v31  ;;  %v1178_v54 = vmul.f32 %v7153_v60, %v938_v1  ;;  %v1570_v5 = vmul.f32 %v7159_v62, %v1342_v45 }
 0x108   : > { %v1247_v7 = vadd.f32 %v1183_v39, %v859_v48  ;;  %v1766_v9 = vmax.f32 %v1702_v33, 0.0  ;;  %v1572_v33 = vmul.f32 %v7159_v62, %v7128_v46 }
 0x109   : > { %v1700_v47 = vadd.f32 %v7182_v18, %v1629_v32  ;;  %v1242_v37 = vadd.f32 %v1178_v54, %v854_v0  ;;  %6685 = vset.pattern.permute.xlu1 %v9052_v49  ;;  %v1824_v30 = vpack.c.bf16 %v1762_v13, %v1761_v22  ;;  %731 = vperm.xlu0 %6728, %v7239_v8   ;;  %v1768_v0 = vmax.f32 %v1704_v2, 0.0 }
 0x10a   : > { %v954_v44 = vpop.permute.xlu0 %953  ;;  %1397 = vperm.xlu1 %6685, %v7257_v26   ;;  %v592_v34 = vpop.permute.xlu1 %591  ;;  %v1767_v26 = vmax.f32 %v1703_v57, 0.0  ;;  %v1635_v42 = vadd.f32 %v1571_v15, %v1247_v7 }
 0x10b   : > { %v1764_v12 = vmax.f32 %v1700_v47, 0.0  ;;  %v1630_v40 = vadd.f32 %v1566_v10, %v1242_v37  ;;  %v1182_v55 = vmul.f32 %v7153_v60, %v954_v44  ;;  %6369 = vmatmul.mubr.msk.bf16.vlgmr.msra.gmra.mrb[0].mxu0 %vm1894_vm0, %v1824_v30 }
 0x10c   : > { %v1827_v54 = vpack.c.bf16 %v1768_v0, %v1767_v26 }
 0x10d   : > { %v1701_v28 = vadd.f32 %v7182_v18, %v1630_v40  ;;  %v1246_v31 = vadd.f32 %v1182_v55, %v858_v4  ;;  %v1825_v13 = vpack.c.bf16 %v1764_v12, %v1763_v14  ;;  %736 = vperm.xlu0 %6728, %v7139_v52   ;;  %v1706_v4 = vadd.f32 %v7182_v18, %v1635_v42 }
 0x10e   : > { %1405 = vperm.xlu1 %6685, %v7048_v20   ;;  %v966_v22 = vpop.permute.xlu0 %965  ;;  %v1575_v40 = vmul.f32 %v7159_v62, %v7136_v51 }
 0x10f   : > { %v1765_v16 = vmax.f32 %v1701_v28, 0.0  ;;  %v1634_v19 = vadd.f32 %v1570_v5, %v1246_v31  ;;  %6372 = vmatprep.mubr.msk.bf16.mxu0 %vm1894_vm0, %v1825_v13  ;;  %v962_v1 = vpop.permute.xlu1 %961  ;;  %v1770_v39 = vmax.f32 %v1706_v4, 0.0 }
 0x110   : > { %v1184_v30 = vmul.f32 %v7153_v60, %v962_v1 }
 0x111   : > { %v1705_v45 = vadd.f32 %v7182_v18, %v1634_v19  ;;  %v1826_v32 = vpack.c.bf16 %v1766_v9, %v1765_v16  ;;  %746 = vperm.xlu0 %6728, %v7247_v11  }
 0x112   : > { %1409 = vperm.xlu1 %6685, %v7297_v59   ;;  %v970_v20 = vpop.permute.xlu0 %969  ;;  %v860_v59 = vmul.f32 %v7161_v63, %v7214_v53  ;;  %v1185_v53 = vmul.f32 %v7153_v60, %v966_v22 }
 0x113   : > { %6373 = vmatmul.mubr.msk.bf16.gmra.mrb[4].mxu0 %vm1894_vm0, %v1826_v32  ;;  %v1769_v36 = vmax.f32 %v1705_v45, 0.0  ;;  %v1186_v5 = vmul.f32 %v7153_v60, %v970_v20 }
 0x114   : > { %6376 = vmatprep.mubr.msk.bf16.mxu0 %vm1894_vm0, %v1827_v54  ;;  %v597_v10 = vpop.permute.xlu1 %596  ;;  %v1248_v48 = vadd.f32 %v1184_v30, %v860_v59  ;;  %v491_v30 = vld [vmem:[%s6994_s16 + $0x100] sm:$0xff] }
 0x115   : > { %771 = vperm.xlu0 %6728, %v7264_v27   ;;  %v1828_v14 = vpack.c.bf16 %v1770_v39, %v1769_v36  ;;  %v862_v28 = vmul.f32 %v7161_v63, %v597_v10 }
 0x116   : > { %6686 = vset.pattern.permute.xlu1 %v9050_v25  ;;  %v7371_v37 = vpop.permute.xlu0 %985  ;;  %v1636_v55 = vadd.f32 %v1572_v33, %v1248_v48  ;;  %v865_v48 = vmul.f32 %v7161_v63, %v7221_v56  ;;  %v866_v56 = vmul.f32 %v7161_v63, %v7229_v3 }
 0x117   : > { %671 = vperm.xlu1 %6686, %v7103_v35   ;;  %v1250_v42 = vadd.f32 %v1186_v5, %v862_v28 }
 0x118   : > { %v602_v47 = vpop.permute.xlu1 %601  ;;  %v1707_v26 = vadd.f32 %v7182_v18, %v1636_v55 }
 0x119   : > { %v863_v15 = vmul.f32 %v7161_v63, %v602_v47 }
 0x11a   : > { %v7382_v12 = vpop.permute.xlu0 %997  ;;  %v1771_v1 = vmax.f32 %v1707_v26, 0.0 }
 0x11b   : > { %6687 = vset.pattern.permute.xlu1 %v9051_v41  ;;  %6377 = vmatmul.mubr.msk.bf16.gmra.mrb[8].mxu0 %vm1894_vm0, %v1828_v14 }
 0x11c   : > { %1025 = vperm.xlu1 %6687, %v7052_v21   ;;  %v861_v21 = vmul.f32 %v7161_v63, %v592_v34 }
 0x11d   : > { %v974_v57 = vpop.permute.xlu1 %973 }
 0x11e   : > { %v1187_v44 = vmul.f32 %v7153_v60, %v974_v57  ;;  %v1249_v7 = vadd.f32 %v1185_v53, %v861_v21  ;;  %v7394_v13 = vpop.permute.xlu0 %1001 }
 0x120   : > { %6688 = vset.pattern.permute.xlu1 %v9050_v25  ;;  %v1251_v2 = vadd.f32 %v1187_v44, %v863_v15 }
 0x121   : > { %676 = vperm.xlu1 %6688, %v7109_v38  }
 0x122   : > { %v1354_v46 = vpop.permute.xlu1 %1353  ;;  %v1639_v9 = vadd.f32 %v1575_v40, %v1251_v2  ;;  %v7403_v32 = vpop.permute.xlu0 %1017  ;;  %v1190_v40 = vmul.f32 %v7153_v60, %v7371_v37 }
 0x123   : > { %v1573_v31 = vmul.f32 %v7159_v62, %v1354_v46 }
 0x124   : > { %v1710_v0 = vadd.f32 %v7182_v18, %v1639_v9 }
 0x125   : > { %v1637_v51 = vadd.f32 %v1573_v31, %v1249_v7  ;;  %681 = vperm.xlu1 %6688, %v7211_v50  }
 0x126   : > { %v1358_v34 = vpop.permute.xlu1 %1357  ;;  %v1774_v10 = vmax.f32 %v1710_v0, 0.0  ;;  %v7409_v59 = vpop.permute.xlu0 %1029 }
 0x127   : > { %v1708_v16 = vadd.f32 %v7182_v18, %v1637_v51  ;;  %v1574_v19 = vmul.f32 %v7159_v62, %v1358_v34  ;;  %v7444_v34 = vld [vmem:[%s6994_s16 + $0x190] sm:$0xff] }
 0x128   : > { %776 = vperm.xlu0 %6728, %v7444_v34  }
 0x129   : > { %v1772_v22 = vmax.f32 %v1708_v16, 0.0  ;;  %v1638_v45 = vadd.f32 %v1574_v19, %v1250_v42  ;;  %6689 = vset.pattern.permute.xlu1 %v9051_v41 }
 0x12a   : > { %1037 = vperm.xlu1 %6689, %v7211_v50   ;;  %v7414_v14 = vpop.permute.xlu0 %1033 }
 0x12b   : > { %v1709_v54 = vadd.f32 %v7182_v18, %v1638_v45  ;;  %v607_v4 = vpop.permute.xlu1 %606  ;;  %v1829_v20 = vpack.c.bf16 %v1772_v22, %v1771_v1 }
 0x12c   : > { %v864_v21 = vmul.f32 %v7161_v63, %v607_v4  ;;  %786 = vperm.xlu0 %6728, %v7273_v29  }
 0x12d   : > { %v1773_v36 = vmax.f32 %v1709_v54, 0.0  ;;  %6380 = vmatprep.mubr.msk.bf16.mxu0 %vm1894_vm0, %v1829_v20 }
 0x12e   : > { %6690 = vset.pattern.permute.xlu1 %v9052_v49  ;;  %v7421_v57 = vpop.permute.xlu0 %1049 }
 0x12f   : > { %1417 = vperm.xlu1 %6690, %v7103_v35   ;;  %v1830_v39 = vpack.c.bf16 %v1774_v10, %v1773_v36 }
 0x130   : > { %v978_v47 = vpop.permute.xlu1 %977  ;;  %811 = vperm.xlu0 %6728, %v7300_v61  }
 0x131   : > { %6381 = vmatmul.mubr.msk.bf16.gmra.mrb[12].mxu0 %vm1894_vm0, %v1830_v39  ;;  %v1188_v15 = vmul.f32 %v7153_v60, %v978_v47 }
 0x132   : > { %v7432_v2 = vpop.permute.xlu0 %1061 }
 0x133   : > { %1421 = vperm.xlu1 %6690, %v7109_v38   ;;  %v1577_v38 = vmul.f32 %v7159_v62, %v7148_v58  ;;  %v494_v58 = vld [vmem:[%s6994_s16 + $0x118] sm:$0xff]  ;;  %v1252_v7 = vadd.f32 %v1188_v15, %v864_v21 }
 0x134   : > { %v982_v50 = vpop.permute.xlu1 %981 }
 0x135   : > { %v1189_v35 = vmul.f32 %v7153_v60, %v982_v50 }
 0x136   : > { %v7440_v9 = vpop.permute.xlu0 %1065 }
 0x137   : > { %6691 = vset.pattern.permute.xlu1 %v9050_v25  ;;  %v1253_v44 = vadd.f32 %v1189_v35, %v865_v48  ;;  %v7462_v35 = vld [vmem:[%s6994_s16 + $0x1d0] sm:$0xff] }
 0x138   : > { %686 = vperm.xlu1 %6691, %v491_v30   ;;  %816 = vperm.xlu0 %6728, %v7462_v35  }
 0x139   : > { %v622_v33 = vpop.permute.xlu1 %621  ;;  %v1641_v55 = vadd.f32 %v1577_v38, %v1253_v44  ;;  %v7467_v44 = vld [vmem:[%s6994_s16 + $0x1e0] sm:$0xff] }
 0x13a   : > { %v867_v16 = vmul.f32 %v7161_v63, %v622_v33  ;;  %v7452_v20 = vpop.permute.xlu0 %1081 }
 0x13b   : > { %v1712_v28 = vadd.f32 %v7182_v18, %v1641_v55 }
 0x13c   : > { %6692 = vset.pattern.permute.xlu1 %v9051_v41  ;;  %826 = vperm.xlu0 %6728, %v7467_v44  }
 0x13d   : > { %1041 = vperm.xlu1 %6692, %v491_v30   ;;  %v1776_v42 = vmax.f32 %v1712_v28, 0.0 }
 0x13e   : > { %v990_v53 = vpop.permute.xlu1 %989  ;;  %v7458_v33 = vpop.permute.xlu0 %1093 }
 0x13f   : > { %v1191_v37 = vmul.f32 %v7153_v60, %v990_v53  ;;  %v868_v53 = vmul.f32 %v7161_v63, %v7236_v6 }
 0x140   : > { %6729 = vset.pattern.permute.xlu0 %v9051_v41 }
 0x141   : > { %1045 = vperm.xlu1 %6692, %v7058_v23   ;;  %v1254_v23 = vadd.f32 %v1190_v40, %v866_v56  ;;  %v1255_v22 = vadd.f32 %v1191_v37, %v867_v16  ;;  %1113 = vperm.xlu0 %6729, %v7444_v34   ;;  %v7491_v37 = vld [vmem:[%s6994_s16 + $0x1a8] sm:$0xff] }
 0x142   : > { %v7470_v61 = vpop.permute.xlu0 %1097 }
 0x143   : > { %v1366_v46 = vpop.permute.xlu1 %1365 }
 0x144   : > { %v1576_v5 = vmul.f32 %v7159_v62, %v1366_v46 }
 0x145   : > { %6694 = vset.pattern.permute.xlu1 %v9050_v25  ;;  %1125 = vperm.xlu0 %6729, %v7491_v37  }
 0x146   : > { %v1640_v3 = vadd.f32 %v1576_v5, %v1252_v7  ;;  %701 = vperm.xlu1 %6694, %v494_v58   ;;  %v1193_v7 = vmul.f32 %v7153_v60, %v7382_v12 }
 0x147   : > { %v1374_v31 = vpop.permute.xlu1 %1373  ;;  %v1382_v56 = vpop.permute.xlu0 %1381 }
 0x148   : > { %v1711_v26 = vadd.f32 %v7182_v18, %v1640_v3  ;;  %v1578_v51 = vmul.f32 %v7159_v62, %v1374_v31  ;;  %v1580_v21 = vmul.f32 %v7159_v62, %v1382_v56  ;;  %v9053_v3 = vld [vmem:[#allocation8_spill] sm:$0xff] }
 0x14a   : > { %v1775_v19 = vmax.f32 %v1711_v26, 0.0  ;;  %v1642_v1 = vadd.f32 %v1578_v51, %v1254_v23  ;;  %6695 = vset.pattern.permute.xlu1 %v9051_v41  ;;  %v1194_v26 = vmul.f32 %v7153_v60, %v7394_v13 }
 0x14b   : > { %1053 = vperm.xlu1 %6695, %v494_v58   ;;  %v1378_v0 = vpop.permute.xlu1 %1377 }
 0x14c   : > { %v1579_v45 = vmul.f32 %v7159_v62, %v1378_v0  ;;  %v1831_v54 = vpack.c.bf16 %v1776_v42, %v1775_v19  ;;  %v1713_v4 = vadd.f32 %v7182_v18, %v1642_v1  ;;  %v9054_v0 = vld [vmem:[#allocation11_spill] sm:$0xff] }
 0x14e   : > { %v1643_v10 = vadd.f32 %v1579_v45, %v1255_v22  ;;  %6384 = vmatprep.mubr.msk.bf16.mxu0 %vm1894_vm0, %v1831_v54  ;;  %v1777_v47 = vmax.f32 %v1713_v4, 0.0 }
 0x14f   : > { %6696 = vset.pattern.permute.xlu1 %v9052_v49 }
 0x150   : > { %v1714_v36 = vadd.f32 %v7182_v18, %v1643_v10  ;;  %1429 = vperm.xlu1 %6696, %v491_v30   ;;  %v632_v39 = vpop.permute.xlu1 %631 }
 0x151   : > { %v869_v6 = vmul.f32 %v7161_v63, %v632_v39 }
 0x152   : > { %v1778_v50 = vmax.f32 %v1714_v36, 0.0 }
 0x153   : > { %v1257_v51 = vadd.f32 %v1193_v7, %v869_v6  ;;  %v7523_v7 = vld [vmem:[%s6994_s16 + $0x1e8] sm:$0xff] }
 0x154   : > { %1437 = vperm.xlu1 %6696, %v7062_v24   ;;  %v1832_v48 = vpack.c.bf16 %v1778_v50, %v1777_v47 }
 0x155   : > { %v994_v38 = vpop.permute.xlu1 %993 }
 0x156   : > { %6385 = vmatmul.mubr.msk.bf16.gmra.mrb[16].mxu0 %vm1894_vm0, %v1832_v48  ;;  %v1192_v15 = vmul.f32 %v7153_v60, %v994_v38  ;;  %v7507_v38 = vld [vmem:[%s6994_s16 + $0x1b0] sm:$0xff] }
 0x157   : > { %1129 = vperm.xlu0 %6729, %v7507_v38  }
 0x158   : > { %1441 = vperm.xlu1 %6696, %v494_v58   ;;  %v1256_v40 = vadd.f32 %v1192_v15, %v868_v53  ;;  %v1394_v58 = vpop.permute.xlu0 %1393 }
 0x15a   : > { %v637_v30 = vpop.permute.xlu1 %636  ;;  %v1644_v23 = vadd.f32 %v1580_v21, %v1256_v40  ;;  %v499_v40 = vld [vmem:[%s6994_s16 + $0x140] sm:$0xff] }
 0x15b   : > { %v870_v12 = vmul.f32 %v7161_v63, %v637_v30  ;;  %1145 = vperm.xlu0 %6729, %v7462_v35  }
 0x15c   : > { %6697 = vset.pattern.permute.xlu1 %v9050_v25  ;;  %v1715_v16 = vadd.f32 %v7182_v18, %v1644_v23 }
 0x15d   : > { %711 = vperm.xlu1 %6697, %v7123_v43   ;;  %v1258_v45 = vadd.f32 %v1194_v26, %v870_v12  ;;  %v1198_v26 = vmul.f32 %v7153_v60, %v7403_v32 }
 0x15e   : > { %v642_v24 = vpop.permute.xlu1 %641  ;;  %v1779_v4 = vmax.f32 %v1715_v16, 0.0  ;;  %v502_v16 = vld [vmem:[%s6994_s16 + $0x158] sm:$0xff] }
 0x15f   : > { %v871_v5 = vmul.f32 %v7161_v63, %v642_v24  ;;  %1157 = vperm.xlu0 %6729, %v7523_v7  }
 0x161   : > { %6698 = vset.pattern.permute.xlu1 %v9051_v41 }
 0x162   : > { %1057 = vperm.xlu1 %6698, %v7224_v17   ;;  %v1583_v17 = vmul.f32 %v7159_v62, %v1394_v58  ;;  %v1402_v58 = vpop.permute.xlu0 %1401 }
 0x163   : > { %v1006_v55 = vpop.permute.xlu1 %1005 }
 0x164   : > { %v1195_v46 = vmul.f32 %v7153_v60, %v1006_v55  ;;  %v9055_v55 = vld [vmem:[#allocation12_spill] sm:$0xff] }
 0x166   : > { %6699 = vset.pattern.permute.xlu1 %v9050_v25  ;;  %v1259_v28 = vadd.f32 %v1195_v46, %v871_v5  ;;  %v873_v46 = vmul.f32 %v7161_v63, %v9055_v55  ;;  %v1585_v5 = vmul.f32 %v7159_v62, %v1402_v58 }
 0x167   : > { %716 = vperm.xlu1 %6699, %v9053_v3  }
 0x168   : > { %v1386_v31 = vpop.permute.xlu1 %1385  ;;  %v1647_v19 = vadd.f32 %v1583_v17, %v1259_v28  ;;  %v7530_v17 = vld [vmem:[%s6994_s16 + $0x1f0] sm:$0xff] }
 0x169   : > { %v1581_v42 = vmul.f32 %v7159_v62, %v1386_v31  ;;  %1161 = vperm.xlu0 %6729, %v7530_v17  }
 0x16a   : > { %v1718_v10 = vadd.f32 %v7182_v18, %v1647_v19 }
 0x16b   : > { %v1645_v1 = vadd.f32 %v1581_v42, %v1257_v51  ;;  %721 = vperm.xlu1 %6699, %v9054_v0  }
 0x16c   : > { %v1390_v22 = vpop.permute.xlu1 %1389  ;;  %v1782_v30 = vmax.f32 %v1718_v10, 0.0 }
 0x16d   : > { %v1716_v54 = vadd.f32 %v7182_v18, %v1645_v1  ;;  %v1582_v13 = vmul.f32 %v7159_v62, %v1390_v22  ;;  %6734 = vset.pattern.permute.xlu0 %v9052_v49 }
 0x16e   : > { %1541 = vperm.xlu0 %6734, %v7467_v44  }
 0x16f   : > { %v1780_v36 = vmax.f32 %v1716_v54, 0.0  ;;  %v1646_v39 = vadd.f32 %v1582_v13, %v1258_v45  ;;  %6700 = vset.pattern.permute.xlu1 %v9051_v41 }
 0x170   : > { %1069 = vperm.xlu1 %6700, %v9054_v0  }
 0x171   : > { %v1717_v47 = vadd.f32 %v7182_v18, %v1646_v39  ;;  %v647_v50 = vpop.permute.xlu1 %646  ;;  %v1833_v48 = vpack.c.bf16 %v1780_v36, %v1779_v4 }
 0x172   : > { %v872_v51 = vmul.f32 %v7161_v63, %v647_v50 }
 0x173   : > { %v1781_v24 = vmax.f32 %v1717_v47, 0.0  ;;  %6388 = vmatprep.mubr.msk.bf16.mxu0 %vm1894_vm0, %v1833_v48  ;;  %v7550_v47 = vld [vmem:[%s6994_s16 + $0x1f8] sm:$0xff] }
 0x174   : > { %6701 = vset.pattern.permute.xlu1 %v9052_v49  ;;  %1553 = vperm.xlu0 %6734, %v7550_v47  }
 0x175   : > { %1449 = vperm.xlu1 %6701, %v7123_v43   ;;  %v1834_v53 = vpack.c.bf16 %v1782_v30, %v1781_v24 }
 0x176   : > { %v1010_v15 = vpop.permute.xlu1 %1009 }
 0x177   : > { %6389 = vmatmul.mubr.msk.bf16.gmra.mrb[20].mxu0 %vm1894_vm0, %v1834_v53  ;;  %v1196_v28 = vmul.f32 %v7153_v60, %v1010_v15 }
 0x179   : > { %1453 = vperm.xlu1 %6701, %v9053_v3   ;;  %v9056_v3 = vld [vmem:[#allocation13_spill] sm:$0xff]  ;;  %v1260_v19 = vadd.f32 %v1196_v28, %v872_v51 }
 0x17a   : > { %v1014_v56 = vpop.permute.xlu1 %1013  ;;  %v874_v31 = vmul.f32 %v7161_v63, %v9056_v3  ;;  %v9058_v3 = vld [vmem:[#allocation15_spill] sm:$0xff] }
 0x17b   : > { %v1197_v43 = vmul.f32 %v7153_v60, %v1014_v56 }
 0x17d   : > { %6702 = vset.pattern.permute.xlu1 %v9050_v25  ;;  %v1261_v6 = vadd.f32 %v1197_v43, %v873_v46 }
 0x17e   : > { %726 = vperm.xlu1 %6702, %v499_v40  }
 0x17f   : > { %v662_v21 = vpop.permute.xlu1 %661  ;;  %v1649_v12 = vadd.f32 %v1585_v5, %v1261_v6  ;;  %v9057_v5 = vld [vmem:[#allocation9_spill] sm:$0xff] }
 0x180   : > { %v875_v10 = vmul.f32 %v7161_v63, %v662_v21 }
 0x181   : > { %v1720_v0 = vadd.f32 %v7182_v18, %v1649_v12 }
 0x182   : > { %6703 = vset.pattern.permute.xlu1 %v9051_v41 }
 0x183   : > { %1073 = vperm.xlu1 %6703, %v499_v40   ;;  %v1784_v4 = vmax.f32 %v1720_v0, 0.0 }
 0x184   : > { %v1022_v23 = vpop.permute.xlu1 %1021 }
 0x185   : > { %v1199_v45 = vmul.f32 %v7153_v60, %v1022_v23  ;;  %v1414_v23 = vpop.permute.xlu0 %1413 }
 0x186   : > { %v1588_v51 = vmul.f32 %v7159_v62, %v1414_v23 }
 0x187   : > { %1077 = vperm.xlu1 %6703, %v7239_v8   ;;  %v1262_v8 = vadd.f32 %v1198_v26, %v874_v31  ;;  %v1263_v48 = vadd.f32 %v1199_v45, %v875_v10 }
 0x189   : > { %v1398_v42 = vpop.permute.xlu1 %1397 }
 0x18a   : > { %v1584_v1 = vmul.f32 %v7159_v62, %v1398_v42 }
 0x18b   : > { %6704 = vset.pattern.permute.xlu1 %v9050_v25 }
 0x18c   : > { %v1648_v22 = vadd.f32 %v1584_v1, %v1260_v19  ;;  %741 = vperm.xlu1 %6704, %v502_v16  }
 0x18d   : > { %v1406_v32 = vpop.permute.xlu1 %1405 }
 0x18e   : > { %v1719_v54 = vadd.f32 %v7182_v18, %v1648_v22  ;;  %v1586_v13 = vmul.f32 %v7159_v62, %v1406_v32  ;;  %v9059_v32 = vld [vmem:[#allocation10_spill] sm:$0xff] }
 0x190   : > { %v1783_v36 = vmax.f32 %v1719_v54, 0.0  ;;  %v1650_v39 = vadd.f32 %v1586_v13, %v1262_v8  ;;  %6705 = vset.pattern.permute.xlu1 %v9051_v41  ;;  %v1202_v54 = vmul.f32 %v7153_v60, %v7414_v14 }
 0x191   : > { %1085 = vperm.xlu1 %6705, %v502_v16   ;;  %v1410_v50 = vpop.permute.xlu1 %1409 }
 0x192   : > { %v1587_v30 = vmul.f32 %v7159_v62, %v1410_v50  ;;  %v1835_v24 = vpack.c.bf16 %v1784_v4, %v1783_v36  ;;  %v1721_v53 = vadd.f32 %v7182_v18, %v1650_v39  ;;  %v9060_v50 = vld [vmem:[#allocation14_spill] sm:$0xff] }
 0x194   : > { %v1651_v15 = vadd.f32 %v1587_v30, %v1263_v48  ;;  %6392 = vmatprep.mubr.msk.bf16.mxu0 %vm1894_vm0, %v1835_v24  ;;  %v1785_v55 = vmax.f32 %v1721_v53, 0.0 }
 0x195   : > { %6706 = vset.pattern.permute.xlu1 %v9052_v49 }
 0x196   : > { %v1722_v56 = vadd.f32 %v7182_v18, %v1651_v15  ;;  %1461 = vperm.xlu1 %6706, %v499_v40   ;;  %v672_v21 = vpop.permute.xlu1 %671  ;;  %v876_v40 = vmul.f32 %v7161_v63, %v9058_v3 }
 0x197   : > { %v877_v19 = vmul.f32 %v7161_v63, %v672_v21 }
 0x198   : > { %v1786_v46 = vmax.f32 %v1722_v56, 0.0 }
 0x19a   : > { %1469 = vperm.xlu1 %6706, %v7139_v52   ;;  %v1836_v43 = vpack.c.bf16 %v1786_v46, %v1785_v55  ;;  %v1426_v52 = vpop.permute.xlu0 %1425 }
 0x19b   : > { %v1026_v58 = vpop.permute.xlu1 %1025 }
 0x19c   : > { %6393 = vmatmul.mubr.msk.bf16.gmra.mrb[24].mxu0 %vm1894_vm0, %v1836_v43  ;;  %v1200_v31 = vmul.f32 %v7153_v60, %v1026_v58 }
 0x19e   : > { %1473 = vperm.xlu1 %6706, %v502_v16   ;;  %v1264_v26 = vadd.f32 %v1200_v31, %v876_v40  ;;  %v1201_v16 = vmul.f32 %v7153_v60, %v7409_v59  ;;  %v1434_v8 = vpop.permute.xlu0 %1433 }
 0x1a0   : > { %v677_v6 = vpop.permute.xlu1 %676  ;;  %v1652_v0 = vadd.f32 %v1588_v51, %v1264_v26  ;;  %v1265_v13 = vadd.f32 %v1201_v16, %v877_v19  ;;  %v1593_v16 = vmul.f32 %v7159_v62, %v1434_v8 }
 0x1a1   : > { %v878_v59 = vmul.f32 %v7161_v63, %v677_v6 }
 0x1a2   : > { %6707 = vset.pattern.permute.xlu1 %v9050_v25  ;;  %v1723_v10 = vadd.f32 %v7182_v18, %v1652_v0  ;;  %v7582_v30 = vpop.permute.xlu0 %1445 }
 0x1a3   : > { %751 = vperm.xlu1 %6707, %v9057_v5   ;;  %v1266_v24 = vadd.f32 %v1202_v54, %v878_v59  ;;  %v510_v54 = vld [vmem:[%s6994_s16 + $0x198] sm:$0xff] }
 0x1a4   : > { %v682_v28 = vpop.permute.xlu1 %681  ;;  %v1787_v14 = vmax.f32 %v1723_v10, 0.0 }
 0x1a5   : > { %v879_v1 = vmul.f32 %v7161_v63, %v682_v28 }
 0x1a6   : > { %v7590_v6 = vpop.permute.xlu0 %1457 }
 0x1a7   : > { %6708 = vset.pattern.permute.xlu1 %v9051_v41 }
 0x1a8   : > { %1089 = vperm.xlu1 %6708, %v7247_v11   ;;  %v1591_v11 = vmul.f32 %v7159_v62, %v1426_v52  ;;  %v507_v52 = vld [vmem:[%s6994_s16 + $0x180] sm:$0xff] }
 0x1a9   : > { %v1038_v12 = vpop.permute.xlu1 %1037 }
 0x1aa   : > { %v1203_v42 = vmul.f32 %v7153_v60, %v1038_v12  ;;  %v7596_v31 = vpop.permute.xlu0 %1465 }
 0x1ac   : > { %6709 = vset.pattern.permute.xlu1 %v9050_v25  ;;  %v1267_v22 = vadd.f32 %v1203_v42, %v879_v1 }
 0x1ad   : > { %756 = vperm.xlu1 %6709, %v9059_v32  }
 0x1ae   : > { %v1418_v45 = vpop.permute.xlu1 %1417  ;;  %v1655_v36 = vadd.f32 %v1591_v11, %v1267_v22  ;;  %v7601_v26 = vpop.permute.xlu0 %1477 }
 0x1af   : > { %v1589_v4 = vmul.f32 %v7159_v62, %v1418_v45 }
 0x1b0   : > { %v1726_v56 = vadd.f32 %v7182_v18, %v1655_v36 }
 0x1b1   : > { %v1653_v39 = vadd.f32 %v1589_v4, %v1265_v13  ;;  %761 = vperm.xlu1 %6709, %v9060_v50   ;;  %v9062_v13 = vld [vmem:[#allocation17_spill] sm:$0xff]  ;;  %v1206_v4 = vmul.f32 %v7153_v60, %v7421_v57 }
 0x1b2   : > { %v1422_v48 = vpop.permute.xlu1 %1421  ;;  %v1790_v23 = vmax.f32 %v1726_v56, 0.0  ;;  %v7608_v0 = vpop.permute.xlu0 %1489  ;;  %v882_v59 = vmul.f32 %v7161_v63, %v9062_v13 }
 0x1b3   : > { %v1724_v53 = vadd.f32 %v7182_v18, %v1653_v39  ;;  %v1590_v15 = vmul.f32 %v7159_v62, %v1422_v48 }
 0x1b5   : > { %v1788_v21 = vmax.f32 %v1724_v53, 0.0  ;;  %v1654_v55 = vadd.f32 %v1590_v15, %v1266_v24  ;;  %6711 = vset.pattern.permute.xlu1 %v9051_v41  ;;  %v1270_v24 = vadd.f32 %v1206_v4, %v882_v59 }
 0x1b6   : > { %1101 = vperm.xlu1 %6711, %v9060_v50   ;;  %v7619_v36 = vpop.permute.xlu0 %1497 }
 0x1b7   : > { %v1725_v46 = vadd.f32 %v7182_v18, %v1654_v55  ;;  %v687_v43 = vpop.permute.xlu1 %686  ;;  %v1837_v58 = vpack.c.bf16 %v1788_v21, %v1787_v14 }
 0x1b8   : > { %v880_v11 = vmul.f32 %v7161_v63, %v687_v43 }
 0x1b9   : > { %v1789_v28 = vmax.f32 %v1725_v46, 0.0  ;;  %6396 = vmatprep.mubr.msk.bf16.mxu0 %vm1894_vm0, %v1837_v58 }
 0x1ba   : > { %6712 = vset.pattern.permute.xlu1 %v9052_v49  ;;  %v7632_v21 = vpop.permute.xlu0 %1509 }
 0x1bb   : > { %1481 = vperm.xlu1 %6712, %v9057_v5   ;;  %v1838_v3 = vpack.c.bf16 %v1790_v23, %v1789_v28  ;;  %v9061_v5 = vld [vmem:[#allocation16_spill] sm:$0xff] }
 0x1bc   : > { %v1042_v40 = vpop.permute.xlu1 %1041  ;;  %v881_v42 = vmul.f32 %v7161_v63, %v9061_v5 }
 0x1bd   : > { %6397 = vmatmul.mubr.msk.bf16.gmra.mrb[28].mxu0 %vm1894_vm0, %v1838_v3  ;;  %v1204_v22 = vmul.f32 %v7153_v60, %v1042_v40 }
 0x1bf   : > { %1485 = vperm.xlu1 %6712, %v9059_v32   ;;  %v1268_v8 = vadd.f32 %v1204_v22, %v880_v11 }
 0x1c0   : > { %v1046_v18 = vpop.permute.xlu1 %1045 }
 0x1c1   : > { %v1205_v12 = vmul.f32 %v7153_v60, %v1046_v18 }
 0x1c3   : > { %6713 = vset.pattern.permute.xlu1 %v9050_v25  ;;  %v1269_v19 = vadd.f32 %v1205_v12, %v881_v42 }
 0x1c4   : > { %766 = vperm.xlu1 %6713, %v507_v52  }
 0x1c5   : > { %v702_v51 = vpop.permute.xlu1 %701  ;;  %v1657_v32 = vadd.f32 %v1593_v16, %v1269_v19 }
 0x1c6   : > { %v883_v14 = vmul.f32 %v7161_v63, %v702_v51  ;;  %v7640_v51 = vpop.permute.xlu0 %1521 }
 0x1c8   : > { %6714 = vset.pattern.permute.xlu1 %v9051_v41 }
 0x1c9   : > { %1105 = vperm.xlu1 %6714, %v507_v52  }
 0x1ca   : > { %v1054_v1 = vpop.permute.xlu1 %1053 }
 0x1cb   : > { %v1207_v57 = vmul.f32 %v7153_v60, %v1054_v1 }
 0x1cd   : > { %1109 = vperm.xlu1 %6714, %v7264_v27   ;;  %v7625_v27 = vld [vmem:[%s9042_s2] ss:$0 sm:$0xff]  ;;  %v1271_v58 = vadd.f32 %v1207_v57, %v883_v14 }
 0x1ce   : > { %v1728_v50 = vadd.f32 %v7625_v27, %v1657_v32 }
 0x1cf   : > { %v1430_v45 = vpop.permute.xlu1 %1429 }
 0x1d0   : > { %v1592_v10 = vmul.f32 %v7159_v62, %v1430_v45  ;;  %v1792_v46 = vmax.f32 %v1728_v50, 0.0  ;;  %v7651_v45 = vpop.permute.xlu0 %1529 }
 0x1d1   : > { %6715 = vset.pattern.permute.xlu1 %v9050_v25 }
 0x1d2   : > { %v1656_v39 = vadd.f32 %v1592_v10, %v1268_v8  ;;  %781 = vperm.xlu1 %6715, %v510_v54  }
 0x1d3   : > { %v1438_v48 = vpop.permute.xlu1 %1437 }
 0x1d4   : > { %v1594_v53 = vmul.f32 %v7159_v62, %v1438_v48  ;;  %v1727_v15 = vadd.f32 %v7625_v27, %v1656_v39  ;;  %v707_v4 = vpop.permute.xlu0 %706  ;;  %v1596_v48 = vmul.f32 %v7159_v62, %v7582_v30  ;;  %v1599_v30 = vmul.f32 %v7159_v62, %v7590_v6 }
 0x1d5   : > { %v884_v39 = vmul.f32 %v7161_v63, %v707_v4 }
 0x1d6   : > { %v1658_v56 = vadd.f32 %v1594_v53, %v1270_v24  ;;  %6716 = vset.pattern.permute.xlu1 %v9051_v41  ;;  %v1791_v55 = vmax.f32 %v1727_v15, 0.0 }
 0x1d7   : > { %1117 = vperm.xlu1 %6716, %v510_v54   ;;  %v1442_v43 = vpop.permute.xlu1 %1441 }
 0x1d8   : > { %v1595_v23 = vmul.f32 %v7159_v62, %v1442_v43  ;;  %v1839_v28 = vpack.c.bf16 %v1792_v46, %v1791_v55  ;;  %v1729_v3 = vadd.f32 %v7625_v27, %v1658_v56  ;;  %v1209_v56 = vmul.f32 %v7153_v60, %v7432_v2 }
 0x1d9   : > { %v1210_v2 = vmul.f32 %v7153_v60, %v7440_v9 }
 0x1da   : > { %v1659_v40 = vadd.f32 %v1595_v23, %v1271_v58  ;;  %6400 = vmatprep.mubr.msk.bf16.mxu1 %vm1894_vm0, %v1839_v28  ;;  %v1793_v5 = vmax.f32 %v1729_v3, 0.0 }
 0x1db   : > { %6717 = vset.pattern.permute.xlu1 %v9052_v49 }
 0x1dc   : > { %v1730_v18 = vadd.f32 %v7625_v27, %v1659_v40  ;;  %1493 = vperm.xlu1 %6717, %v507_v52   ;;  %v712_v12 = vpop.permute.xlu1 %711 }
 0x1dd   : > { %v885_v55 = vmul.f32 %v7161_v63, %v712_v12 }
 0x1de   : > { %v1794_v42 = vmax.f32 %v1730_v18, 0.0  ;;  %v7642_v16 = vpop.f32.mrb[0].mxu0 }
 0x1df   : > { %v7644_v19 = vpop.f32.mrb[1].mxu0  ;;  %v1273_v28 = vadd.f32 %v1209_v56, %v885_v55 }
 0x1e0   : > { %v7646_v1 = vpop.f32.mrb[2].mxu0  ;;  %1501 = vperm.xlu1 %6717, %v7444_v34   ;;  %v1840_v22 = vpack.c.bf16 %v1794_v42, %v1793_v5  ;;  %v6749_v42 = vld [vmem:[%s6994_s16 + $0x1b8] sm:$0xff] }
 0x1e1   : > { %v7649_v11 = vpop.f32.mrb[3].mxu0  ;;  %v1058_v32 = vpop.permute.xlu1 %1057 }
 0x1e2   : > { %6401 = vmatmul.mubr.msk.bf16.vlgmr.msra.gmra.mrb[0].mxu1 %vm1894_vm0, %v1840_v22  ;;  %v1208_v50 = vmul.f32 %v7153_v60, %v1058_v32 }
 0x1e4   : > { %1505 = vperm.xlu1 %6717, %v510_v54   ;;  %v1272_v24 = vadd.f32 %v1208_v50, %v884_v39 }
 0x1e6   : > { %v7654_v52 = vpop.f32.mrb[4].mxu0  ;;  %v717_v13 = vpop.permute.xlu1 %716  ;;  %v1660_v43 = vadd.f32 %v1596_v48, %v1272_v24 }
 0x1e7   : > { %v7656_v59 = vpop.f32.mrb[5].mxu0  ;;  %v886_v3 = vmul.f32 %v7161_v63, %v717_v13 }
 0x1e8   : > { %v7658_v8 = vpop.f32.mrb[6].mxu0  ;;  %6718 = vset.pattern.permute.xlu1 %v9050_v25  ;;  %v1731_v18 = vadd.f32 %v7625_v27, %v1660_v43 }
 0x1e9   : > { %v7661_v34 = vpop.f32.mrb[7].mxu0  ;;  %791 = vperm.xlu1 %6718, %v7491_v37   ;;  %v1274_v22 = vadd.f32 %v1210_v2, %v886_v3  ;;  %v515_v2 = vld [vmem:[%s6994_s16 + $0x1c0] sm:$0xff] }
 0x1ea   : > { %v722_v10 = vpop.permute.xlu1 %721 }
 0x1eb   : > { %v887_v46 = vmul.f32 %v7161_v63, %v722_v10  ;;  %v1795_v10 = vmax.f32 %v1731_v18, 0.0 }
 0x1ed   : > { %6719 = vset.pattern.permute.xlu1 %v9051_v41 }
 0x1ee   : > { %v7667_v54 = vpop.f32.mrb[8].mxu0  ;;  %1121 = vperm.xlu1 %6719, %v7273_v29  }
 0x1ef   : > { %v7672_v57 = vpop.f32.mrb[9].mxu0  ;;  %v1070_v53 = vpop.permute.xlu1 %1069 }
 0x1f0   : > { %v1211_v15 = vmul.f32 %v7153_v60, %v1070_v53  ;;  %v7675_v14 = vpop.f32.mrb[10].mxu0 }
 0x1f1   : > { %v7681_v29 = vpop.f32.mrb[11].mxu0 }
 0x1f2   : > { %6720 = vset.pattern.permute.xlu1 %v9050_v25  ;;  %v1275_v58 = vadd.f32 %v1211_v15, %v887_v46 }
 0x1f3   : > { %796 = vperm.xlu1 %6720, %v7507_v38  }
 0x1f4   : > { %v1450_v23 = vpop.permute.xlu1 %1449  ;;  %v1663_v12 = vadd.f32 %v1599_v30, %v1275_v58 }
 0x1f5   : > { %v1597_v40 = vmul.f32 %v7159_v62, %v1450_v23 }
 0x1f6   : > { %v1734_v9 = vadd.f32 %v7625_v27, %v1663_v12 }
 0x1f7   : > { %v1661_v5 = vadd.f32 %v1597_v40, %v1273_v28  ;;  %801 = vperm.xlu1 %6720, %v6749_v42  }
 0x1f8   : > { %v1454_v6 = vpop.permute.xlu1 %1453  ;;  %v1798_v53 = vmax.f32 %v1734_v9, 0.0  ;;  %v1214_v9 = vmul.f32 %v7153_v60, %v7452_v20 }
 0x1f9   : > { %v1732_v32 = vadd.f32 %v7625_v27, %v1661_v5  ;;  %v1598_v4 = vmul.f32 %v7159_v62, %v1454_v6  ;;  %v6750_v6 = vld [vmem:[%s6994_s16 + $0x1c8] sm:$0xff] }
 0x1fb   : > { %v1796_v39 = vmax.f32 %v1732_v32, 0.0  ;;  %v1662_v50 = vadd.f32 %v1598_v4, %v1274_v22  ;;  %6721 = vset.pattern.permute.xlu1 %v9051_v41 }
 0x1fc   : > { %1133 = vperm.xlu1 %6721, %v6749_v42  }
 0x1fd   : > { %v1841_v13 = vpack.c.bf16 %v1796_v39, %v1795_v10  ;;  %v1733_v48 = vadd.f32 %v7625_v27, %v1662_v50  ;;  %v727_v24 = vpop.permute.xlu1 %726  ;;  %v518_v10 = vld [vmem:[%s6994_s16 + $0x1d8] sm:$0xff]  ;;  %s6759_s16 = scalar_lea.vmem %s6758_s13, 8192 }
 0x1fe   : > { %v888_v22 = vmul.f32 %v7161_v63, %v727_v24  ;;  %p6761_p2 = scmp.lt.s32.totalorder %s6759_s16, %s6753_s0 }
 0x1ff   : > { %v1797_v15 = vmax.f32 %v1733_v48, 0.0  ;;  %6404 = vmatprep.mubr.msk.bf16.mxu1 %vm1894_vm0, %v1841_v13 }
 0x200   : > { %6722 = vset.pattern.permute.xlu1 %v9052_v49  ;;  %p6762_p3 = por %p6761_p2, %p6760_p1 }
 0x201   : > { %v1842_v56 = vpack.c.bf16 %v1798_v53, %v1797_v15  ;;  %1513 = vperm.xlu1 %6722, %v7491_v37   ;;  %v732_v37 = vpop.permute.xlu0 %731 }
 0x202   : > { %v1074_v55 = vpop.permute.xlu1 %1073  ;;  %v889_v3 = vmul.f32 %v7161_v63, %v732_v37  ;;  %p6763_p5 = pnand %p6762_p3, %p6756_p0 }
 0x203   : > { %6405 = vmatmul.mubr.msk.bf16.gmra.mrb[4].mxu1 %vm1894_vm0, %v1842_v56  ;;  %v1212_v5 = vmul.f32 %v7153_v60, %v1074_v55 }
 0x204   : > { %v7702_v46 = vpop.f32.mrb[12].mxu0 }
 0x205   : > { %v7704_v30 = vpop.f32.mrb[13].mxu0  ;;  %1517 = vperm.xlu1 %6722, %v7507_v38   ;;  %v1601_v38 = vmul.f32 %v7159_v62, %v7596_v31  ;;  %v737_v42 = vpop.permute.xlu0 %736  ;;  %v1276_v50 = vadd.f32 %v1212_v5, %v888_v22 }
 0x206   : > { %v7707_v43 = vpop.f32.mrb[14].mxu0  ;;  %v1078_v58 = vpop.permute.xlu1 %1077  ;;  %v890_v39 = vmul.f32 %v7161_v63, %v737_v42 }
 0x207   : > { %v7709_v23 = vpop.f32.mrb[15].mxu0  ;;  %v1213_v40 = vmul.f32 %v7153_v60, %v1078_v58 }
 0x208   : > { %v1278_v15 = vadd.f32 %v1214_v9, %v890_v39 }
 0x209   : > { %6723 = vset.pattern.permute.xlu1 %v9050_v25  ;;  %v1277_v18 = vadd.f32 %v1213_v40, %v889_v3 }
 0x20a   : > { %806 = vperm.xlu1 %6723, %v515_v2  }
 0x20b   : > { %v742_v28 = vpop.permute.xlu1 %741  ;;  %v1665_v32 = vadd.f32 %v1601_v38, %v1277_v18 }
 0x20c   : > { %v891_v58 = vmul.f32 %v7161_v63, %v742_v28 }
 0x20d   : > { %v1736_v13 = vadd.f32 %v7625_v27, %v1665_v32 }
 0x20e   : > { %6724 = vset.pattern.permute.xlu1 %v9051_v41 }
 0x20f   : > { %1137 = vperm.xlu1 %6724, %v515_v2   ;;  %v1800_v20 = vmax.f32 %v1736_v13, 0.0 }
 0x210   : > { %v1086_v12 = vpop.permute.xlu1 %1085 }
 0x211   : > { %v1215_v24 = vmul.f32 %v7153_v60, %v1086_v12  ;;  %v6740_v12 = vld [vmem:[%s9001_s5] sm:$0xff]  }
 0x212   : > { %6432 = vmatprep.subr.bf16.mxu1 %v6740_v12 }
 0x213   : > { %1141 = vperm.xlu1 %6724, %v6750_v6   ;;  %v1279_v38 = vadd.f32 %v1215_v24, %v891_v58  ;;  %6433 = vmatpush3.bf16.msra.mxu1 %v6740_v12  ;;  %v6741_v12 = vld [vmem:[%s9001_s5 + $0x8] sm:$0xff]  }
 0x214   : > { %6434 = vmatprep.subr.bf16.mxu1 %v6741_v12 }
 0x215   : > { %v1462_v4 = vpop.permute.xlu1 %1461 }
 0x216   : > { %v1600_v31 = vmul.f32 %v7159_v62, %v1462_v4 }
 0x217   : > { %6725 = vset.pattern.permute.xlu1 %v9050_v25  ;;  %6435 = vmatpush3.bf16.msra.mxu1 %v6741_v12 }
 0x218   : > { %v1664_v48 = vadd.f32 %v1600_v31, %v1276_v50  ;;  %821 = vperm.xlu1 %6725, %v518_v10   ;;  %v7746_v50 = vld [vmem:[%s9000_s4] ss:$0 sm:$0xff] }
 0x219   : > { %v1470_v53 = vpop.permute.xlu1 %1469 }
 0x21a   : > { %v1735_v56 = vadd.f32 %v7625_v27, %v1664_v48  ;;  %v1602_v55 = vmul.f32 %v7159_v62, %v1470_v53 }
 0x21c   : > { %v1799_v37 = vmax.f32 %v1735_v56, 0.0  ;;  %v1666_v3 = vadd.f32 %v1602_v55, %v1278_v15  ;;  %6726 = vset.pattern.permute.xlu1 %v9051_v41 }
 0x21d   : > { %1149 = vperm.xlu1 %6726, %v518_v10   ;;  %v1474_v40 = vpop.permute.xlu1 %1473 }
 0x21e   : > { %v1843_v18 = vpack.c.bf16 %v1800_v20, %v1799_v37  ;;  %v1603_v5 = vmul.f32 %v7159_v62, %v1474_v40  ;;  %v1737_v42 = vadd.f32 %v7625_v27, %v1666_v3  ;;  %v747_v20 = vpop.permute.xlu0 %746 }
 0x220   : > { %v1667_v6 = vadd.f32 %v1603_v5, %v1279_v38  ;;  %6408 = vmatprep.mubr.msk.bf16.mxu1 %vm1894_vm0, %v1843_v18  ;;  %v1801_v32 = vmax.f32 %v1737_v42, 0.0  ;;  %v892_v38 = vmul.f32 %v7161_v63, %v747_v20 }
 0x221   : > { %6727 = vset.pattern.permute.xlu1 %v9052_v49 }
 0x222   : > { %v1738_v28 = vadd.f32 %v7625_v27, %v1667_v6  ;;  %1525 = vperm.xlu1 %6727, %v515_v2   ;;  %v752_v22 = vpop.permute.xlu1 %751  ;;  %v7764_v42 = vpop.permute.xlu0 %771  ;;  %v1604_v6 = vmul.f32 %v7159_v62, %v7601_v26 }
 0x224   : > { %v1802_v4 = vmax.f32 %v1738_v28, 0.0 }
 0x226   : > { %v1844_v9 = vpack.c.bf16 %v1802_v4, %v1801_v32  ;;  %1533 = vperm.xlu1 %6727, %v7462_v35  }
 0x227   : > { %v1090_v39 = vpop.permute.xlu1 %1089 }
 0x228   : > { %6409 = vmatmul.mubr.msk.bf16.gmra.mrb[8].mxu1 %vm1894_vm0, %v1844_v9  ;;  %v1216_v18 = vmul.f32 %v7153_v60, %v1090_v39  ;;  %v893_v9 = vmul.f32 %v7161_v63, %v752_v22 }
 0x229   : > { %v6386_v31 = vpop.f32.mrb[16].mxu0 }
 0x22a   : > { %v2098_v13 = vadd.f32 %v6386_v31, %v7746_v50  ;;  %v2089_v48 = vpop.f32.mrb[17].mxu0  ;;  %1537 = vperm.xlu1 %6727, %v518_v10   ;;  %v1280_v28 = vadd.f32 %v1216_v18, %v892_v38  ;;  %v1217_v31 = vmul.f32 %v7153_v60, %v7458_v33 }
 0x22b   : > { %v2090_v2 = vadd.f32 %v7746_v50, %v2089_v48  ;;  %v6387_v53 = vpop.f32.mrb[18].mxu0  ;;  %v7778_v48 = vpop.permute.xlu0 %776 }
 0x22c   : > { %v2101_v15 = vadd.f32 %v6387_v53, %v7746_v50  ;;  %v2092_v24 = vpop.f32.mrb[19].mxu0  ;;  %v757_v35 = vpop.permute.xlu1 %756  ;;  %v2298_v58 = vmax.f32 %v2098_v13, 0.0  ;;  %v1668_v13 = vadd.f32 %v1604_v6, %v1280_v28  ;;  %v1281_v53 = vadd.f32 %v1217_v31, %v893_v9 }
 0x22d   : > { %v2296_v56 = vmax.f32 %v2090_v2, 0.0  ;;  %v2093_v55 = vadd.f32 %v7746_v50, %v2092_v24  ;;  %v894_v22 = vmul.f32 %v7161_v63, %v757_v35  ;;  %v1218_v24 = vmul.f32 %v7153_v60, %v7470_v61 }
 0x22e   : > { %v2299_v37 = vmax.f32 %v2101_v15, 0.0  ;;  %6730 = vset.pattern.permute.xlu1 %v9050_v25  ;;  %v1739_v33 = vadd.f32 %v7625_v27, %v1668_v13 }
 0x22f   : > { %v2297_v3 = vmax.f32 %v2093_v55, 0.0  ;;  %5772 = vxpose.xlu0.b32.start [1/16] (narrow) %v2296_v56, 64  ;;  %831 = vperm.xlu1 %6730, %v7523_v7   ;;  %v6742_v55 = vld [vmem:[%s9001_s5 + $0x10] sm:$0xff]  }
 0x230   : > { %v7754_v10 = vpack.c.bf16 %v2299_v37, %v2298_v58  ;;  %v762_v40 = vpop.permute.xlu1 %761  ;;  %6436 = vmatprep.subr.bf16.mxu1 %v6742_v55  ;;  %v1803_v61 = vmax.f32 %v1739_v33, 0.0 }
 0x231   : > { %v7758_v5 = vpack.c.bf16 %v2297_v3, %v2296_v56  ;;  %v895_v39 = vmul.f32 %v7161_v63, %v762_v40  ;;  %6437 = vmatpush3.bf16.msra.mxu1 %v6742_v55 }
 0x233   : > { %5773 = vxpose.xlu0.b32.cont [2/16] (narrow) %v2297_v3, 64  ;;  %6731 = vset.pattern.permute.xlu1 %v9051_v41 }
 0x234   : > { %1153 = vperm.xlu1 %6731, %v7467_v44   ;;  %v1607_v44 = vmul.f32 %v7159_v62, %v7608_v0 }
 0x235   : > { %v1102_v32 = vpop.permute.xlu1 %1101 }
 0x236   : > { %v1219_v4 = vmul.f32 %v7153_v60, %v1102_v32 }
 0x237   : > { %5774 = vxpose.xlu0.b32.cont [3/16] (narrow) %v2298_v58, 64  ;;  %v1282_v58 = vadd.f32 %v1218_v24, %v894_v22 }
 0x238   : > { %6732 = vset.pattern.permute.xlu1 %v9050_v25  ;;  %v1283_v26 = vadd.f32 %v1219_v4, %v895_v39 }
 0x239   : > { %836 = vperm.xlu1 %6732, %v7530_v17  }
 0x23a   : > { %v1482_v2 = vpop.permute.xlu1 %1481  ;;  %v1671_v56 = vadd.f32 %v1607_v44, %v1283_v26 }
 0x23b   : > { %v1605_v15 = vmul.f32 %v7159_v62, %v1482_v2  ;;  %5775 = vxpose.xlu0.b32.cont [4/16] (narrow) %v2299_v37, 64  ;;  %v7791_v37 = vpop.permute.xlu0 %786 }
 0x23c   : > { %v1742_v40 = vadd.f32 %v7625_v27, %v1671_v56 }
 0x23d   : > { %v1669_v0 = vadd.f32 %v1605_v15, %v1281_v53  ;;  %841 = vperm.xlu1 %6732, %v7550_v47  }
 0x23e   : > { %v1486_v20 = vpop.permute.xlu1 %1485  ;;  %v1806_v32 = vmax.f32 %v1742_v40, 0.0 }
 0x23f   : > { %v1740_v35 = vadd.f32 %v7625_v27, %v1669_v0  ;;  %v1606_v3 = vmul.f32 %v7159_v62, %v1486_v20  ;;  %v7798_v9 = vpop.permute.xlu0 %811  ;;  %v897_v20 = vmul.f32 %v7161_v63, %v7764_v42 }
 0x241   : > { %v1804_v38 = vmax.f32 %v1740_v35, 0.0  ;;  %v1670_v18 = vadd.f32 %v1606_v3, %v1282_v58  ;;  %6733 = vset.pattern.permute.xlu1 %v9051_v41  ;;  %v6743_v3 = vld [vmem:[%s9001_s5 + $0x18] sm:$0xff]  }
 0x242   : > { %1165 = vperm.xlu1 %6733, %v7550_v47   ;;  %6438 = vmatprep.subr.bf16.mxu1 %v6743_v3 }
 0x243   : > { %v1845_v12 = vpack.c.bf16 %v1804_v38, %v1803_v61  ;;  %v1741_v6 = vadd.f32 %v7625_v27, %v1670_v18  ;;  %v767_v28 = vpop.permute.xlu1 %766  ;;  %v7805_v13 = vpop.permute.xlu0 %816  ;;  %6439 = vmatpush3.bf16.msra.mxu1 %v6743_v3  ;;  %v1609_v18 = vmul.f32 %v7159_v62, %v7619_v36 }
 0x244   : > { %v896_v42 = vmul.f32 %v7161_v63, %v767_v28 }
 0x245   : > { %v1805_v4 = vmax.f32 %v1741_v6, 0.0  ;;  %6412 = vmatprep.mubr.msk.bf16.mxu1 %vm1894_vm0, %v1845_v12  ;;  %v898_v6 = vmul.f32 %v7161_v63, %v7778_v48 }
 0x246   : > { %6735 = vset.pattern.permute.xlu1 %v9052_v49 }
 0x247   : > { %v1846_v39 = vpack.c.bf16 %v1806_v32, %v1805_v4  ;;  %1545 = vperm.xlu1 %6735, %v7523_v7  }
 0x248   : > { %v1106_v31 = vpop.permute.xlu1 %1105 }
 0x249   : > { %6413 = vmatmul.mubr.msk.bf16.gmra.mrb[12].mxu1 %vm1894_vm0, %v1846_v39  ;;  %v1220_v12 = vmul.f32 %v7153_v60, %v1106_v31 }
 0x24a   : > { %v6390_v41 = vpop.f32.mrb[20].mxu0 }
 0x24b   : > { %v2114_v47 = vadd.f32 %v6390_v41, %v7746_v50  ;;  %v2105_v44 = vpop.f32.mrb[21].mxu0  ;;  %1549 = vperm.xlu1 %6735, %v7530_v17   ;;  %v7812_v17 = vpop.permute.xlu0 %826  ;;  %v1284_v41 = vadd.f32 %v1220_v12, %v896_v42 }
 0x24c   : > { %v2106_v26 = vadd.f32 %v7746_v50, %v2105_v44  ;;  %v6391_v2 = vpop.f32.mrb[22].mxu0  ;;  %v1110_v53 = vpop.permute.xlu1 %1109 }
 0x24d   : > { %v2117_v49 = vadd.f32 %v6391_v2, %v7746_v50  ;;  %v2108_v22 = vpop.f32.mrb[23].mxu0  ;;  %v2302_v24 = vmax.f32 %v2114_v47, 0.0  ;;  %v1221_v58 = vmul.f32 %v7153_v60, %v1110_v53 }
 0x24e   : > { %v2300_v15 = vmax.f32 %v2106_v26, 0.0  ;;  %v2109_v7 = vadd.f32 %v7746_v50, %v2108_v22 }
 0x24f   : > { %v2303_v33 = vmax.f32 %v2117_v49, 0.0  ;;  %v1285_v61 = vadd.f32 %v1221_v58, %v897_v20  ;;  %v1114_v38 = vpop.permute.xlu0 %1113 }
 0x250   : > { %v2301_v56 = vmax.f32 %v2109_v7, 0.0  ;;  %5776 = vxpose.xlu0.b32.cont [5/16] (narrow) %v2300_v15, 64  ;;  %v1222_v4 = vmul.f32 %v7153_v60, %v1114_v38 }
 0x251   : > { %v7810_v0 = vpack.c.bf16 %v2303_v33, %v2302_v24  ;;  %v782_v55 = vpop.permute.xlu1 %781  ;;  %v1673_v32 = vadd.f32 %v1609_v18, %v1285_v61 }
 0x252   : > { %v7817_v35 = vpack.c.bf16 %v2301_v56, %v2300_v15  ;;  %v1286_v36 = vadd.f32 %v1222_v4, %v898_v6  ;;  %v899_v49 = vmul.f32 %v7161_v63, %v782_v55  ;;  %v7841_v55 = vadd.f32 %v7746_v50, %v7644_v19 }
 0x253   : > { %v1744_v44 = vadd.f32 %v7625_v27, %v1673_v32 }
 0x254   : > { %5777 = vxpose.xlu0.b32.cont [6/16] (narrow) %v2301_v56, 64 }
 0x255   : > { %v1808_v48 = vmax.f32 %v1744_v44, 0.0 }
 0x256   : > { %v1118_v40 = vpop.permute.xlu1 %1117 }
 0x257   : > { %v1223_v31 = vmul.f32 %v7153_v60, %v1118_v40 }
 0x258   : > { %5778 = vxpose.xlu0.b32.cont [7/16] (narrow) %v2302_v24, 64 }
 0x259   : > { %v1287_v24 = vadd.f32 %v1223_v31, %v899_v49 }
 0x25b   : > { %v1494_v39 = vpop.permute.xlu1 %1493 }
 0x25c   : > { %v1608_v47 = vmul.f32 %v7159_v62, %v1494_v39  ;;  %5779 = vxpose.xlu0.b32.cont [8/16] (narrow) %v2303_v33, 64 }
 0x25e   : > { %v1672_v26 = vadd.f32 %v1608_v47, %v1284_v41  ;;  %v2280_v41 = vmax.f32 %v7841_v55, 0.0  ;;  %v7849_v47 = vadd.f32 %v7746_v50, %v7649_v11 }
 0x25f   : > { %v1502_v2 = vpop.permute.xlu1 %1501 }
 0x260   : > { %v1743_v28 = vadd.f32 %v7625_v27, %v1672_v26  ;;  %v1610_v53 = vmul.f32 %v7159_v62, %v1502_v2  ;;  %v2281_v11 = vmax.f32 %v7849_v47, 0.0 }
 0x262   : > { %v1807_v22 = vmax.f32 %v1743_v28, 0.0  ;;  %v1674_v15 = vadd.f32 %v1610_v53, %v1286_v36 }
 0x263   : > { %v1506_v7 = vpop.permute.xlu1 %1505 }
 0x264   : > { %v1847_v56 = vpack.c.bf16 %v1808_v48, %v1807_v22  ;;  %v1611_v33 = vmul.f32 %v7159_v62, %v1506_v7  ;;  %v1745_v20 = vadd.f32 %v7625_v27, %v1674_v15  ;;  %v7857_v48 = vadd.f32 %v7642_v16, %v7746_v50 }
 0x265   : > { %v900_v15 = vmul.f32 %v7161_v63, %v7791_v37  ;;  %v7872_v16 = vadd.f32 %v7646_v1, %v7746_v50  ;;  %v1612_v37 = vmul.f32 %v7159_v62, %v7632_v21 }
 0x266   : > { %v1675_v58 = vadd.f32 %v1611_v33, %v1287_v24  ;;  %6416 = vmatprep.mubr.msk.bf16.mxu1 %vm1894_vm0, %v1847_v56  ;;  %v1809_v40 = vmax.f32 %v1745_v20, 0.0  ;;  %v2282_v56 = vmax.f32 %v7857_v48, 0.0  ;;  %v1126_v33 = vpop.permute.xlu0 %1125 }
 0x267   : > { %v2283_v1 = vmax.f32 %v7872_v16, 0.0 }
 0x268   : > { %v1746_v3 = vadd.f32 %v7625_v27, %v1675_v58  ;;  %v792_v61 = vpop.permute.xlu1 %791 }
 0x26a   : > { %v1810_v38 = vmax.f32 %v1746_v3, 0.0 }
 0x26c   : > { %v1848_v18 = vpack.c.bf16 %v1810_v38, %v1809_v40  ;;  %v1225_v40 = vmul.f32 %v7153_v60, %v1126_v33  ;;  %v901_v38 = vmul.f32 %v7161_v63, %v792_v61 }
 0x26d   : > { %v1122_v12 = vpop.permute.xlu1 %1121 }
 0x26e   : > { %6417 = vmatmul.mubr.msk.bf16.gmra.mrb[16].mxu1 %vm1894_vm0, %v1848_v18  ;;  %v1224_v7 = vmul.f32 %v7153_v60, %v1122_v12  ;;  %v7885_v12 = vadd.f32 %v7746_v50, %v7656_v59  ;;  %v1289_v61 = vadd.f32 %v1225_v40, %v901_v38 }
 0x26f   : > { %v6394_v42 = vpop.f32.mrb[24].mxu0 }
 0x270   : > { %v2130_v6 = vadd.f32 %v6394_v42, %v7746_v50  ;;  %v2121_v32 = vpop.f32.mrb[25].mxu0  ;;  %v1288_v20 = vadd.f32 %v1224_v7, %v900_v15  ;;  %v1130_v42 = vpop.permute.xlu0 %1129  ;;  %v2284_v59 = vmax.f32 %v7885_v12, 0.0 }
 0x271   : > { %v2122_v4 = vadd.f32 %v7746_v50, %v2121_v32  ;;  %v6395_v39 = vpop.f32.mrb[26].mxu0 }
 0x272   : > { %v2133_v44 = vadd.f32 %v6395_v39, %v7746_v50  ;;  %v2124_v26 = vpop.f32.mrb[27].mxu0  ;;  %v797_v19 = vpop.permute.xlu1 %796  ;;  %v2306_v31 = vmax.f32 %v2130_v6, 0.0  ;;  %v1676_v6 = vadd.f32 %v1612_v37, %v1288_v20  ;;  %v1226_v39 = vmul.f32 %v7153_v60, %v1130_v42 }
 0x273   : > { %v2304_v36 = vmax.f32 %v2122_v4, 0.0  ;;  %v2125_v2 = vadd.f32 %v7746_v50, %v2124_v26  ;;  %v1615_v4 = vmul.f32 %v7159_v62, %v7640_v51 }
 0x274   : > { %v2307_v28 = vmax.f32 %v2133_v44, 0.0  ;;  %5740 = vxpose.xlu1.b32.start [1/16] (narrow) %v2280_v41, 64  ;;  %v902_v44 = vmul.f32 %v7161_v63, %v797_v19  ;;  %v1747_v51 = vadd.f32 %v7625_v27, %v1676_v6 }
 0x275   : > { %v2305_v53 = vmax.f32 %v2125_v2, 0.0  ;;  %5780 = vxpose.xlu0.b32.cont [9/16] (narrow) %v2304_v36, 64 }
 0x276   : > { %v7860_v49 = vpack.c.bf16 %v2307_v28, %v2306_v31  ;;  %v802_v22 = vpop.permute.xlu1 %801  ;;  %v1811_v7 = vmax.f32 %v1747_v51, 0.0 }
 0x277   : > { %v7865_v24 = vpack.c.bf16 %v2305_v53, %v2304_v36  ;;  %v903_v18 = vmul.f32 %v7161_v63, %v802_v22  ;;  %v7897_v36 = vadd.f32 %v7746_v50, %v7661_v34  ;;  %v1290_v22 = vadd.f32 %v1226_v39, %v902_v44 }
 0x278   : > { %5741 = vxpose.xlu1.b32.cont [2/16] (narrow) %v2281_v11, 64 }
 0x279   : > { %5781 = vxpose.xlu0.b32.cont [10/16] (narrow) %v2305_v53, 64  ;;  %v2285_v34 = vmax.f32 %v7897_v36, 0.0 }
 0x27b   : > { %v1134_v58 = vpop.permute.xlu1 %1133 }
 0x27c   : > { %v1227_v3 = vmul.f32 %v7153_v60, %v1134_v58  ;;  %5742 = vxpose.xlu1.b32.cont [3/16] (narrow) %v2282_v56, 64 }
 0x27d   : > { %5782 = vxpose.xlu0.b32.cont [11/16] (narrow) %v2306_v31, 64 }
 0x27e   : > { %v1291_v32 = vadd.f32 %v1227_v3, %v903_v18 }
 0x280   : > { %5743 = vxpose.xlu1.b32.cont [4/16] (narrow) %v2283_v1, 64  ;;  %v1514_v21 = vpop.permute.xlu1 %1513  ;;  %v1679_v2 = vadd.f32 %v1615_v4, %v1291_v32  ;;  %v7924_v4 = vadd.f32 %v7746_v50, %v7672_v57 }
 0x281   : > { %v1613_v26 = vmul.f32 %v7159_v62, %v1514_v21  ;;  %5783 = vxpose.xlu0.b32.cont [12/16] (narrow) %v2307_v28, 64  ;;  %v7906_v28 = vadd.f32 %v7654_v52, %v7746_v50  ;;  %v7916_v52 = vadd.f32 %v7658_v8, %v7746_v50 }
 0x282   : > { %v1750_v33 = vadd.f32 %v7625_v27, %v1679_v2  ;;  %v2288_v44 = vmax.f32 %v7924_v4, 0.0 }
 0x283   : > { %v1677_v31 = vadd.f32 %v1613_v26, %v1289_v61  ;;  %v2286_v38 = vmax.f32 %v7906_v28, 0.0  ;;  %v2287_v32 = vmax.f32 %v7916_v52, 0.0  ;;  %v7933_v26 = vadd.f32 %v7746_v50, %v7681_v29 }
 0x284   : > { %5744 = vxpose.xlu1.b32.cont [5/16] (narrow) %v2284_v59, 64  ;;  %v1518_v53 = vpop.permute.xlu1 %1517  ;;  %v1814_v18 = vmax.f32 %v1750_v33, 0.0  ;;  %v1617_v29 = vmul.f32 %v7159_v62, %v7651_v45 }
 0x285   : > { %v1748_v19 = vadd.f32 %v7625_v27, %v1677_v31  ;;  %v1614_v15 = vmul.f32 %v7159_v62, %v1518_v53  ;;  %v905_v31 = vmul.f32 %v7161_v63, %v7798_v9  ;;  %v7947_v9 = vadd.f32 %v7667_v54, %v7746_v50 }
 0x286   : > { %v2347_v48 = vpack.c.bf16 %v2287_v32, %v2286_v38 }
 0x287   : > { %v1812_v20 = vmax.f32 %v1748_v19, 0.0  ;;  %v1678_v58 = vadd.f32 %v1614_v15, %v1290_v22  ;;  %v9029_v45 = vmax.f32 %v7947_v9, 0.0  ;;  %v9063_v16 = vmax.f32 %v7947_v9, 0.0 }
 0x288   : > { %5745 = vxpose.xlu1.b32.cont [6/16] (narrow) %v2285_v34, 64 }
 0x289   : > { %v1849_v3 = vpack.c.bf16 %v1812_v20, %v1811_v7  ;;  %v1749_v37 = vadd.f32 %v7625_v27, %v1678_v58  ;;  %v807_v40 = vpop.permute.xlu1 %806 }
 0x28b   : > { %v1813_v42 = vmax.f32 %v1749_v37, 0.0  ;;  %6420 = vmatprep.mubr.msk.bf16.mxu1 %vm1894_vm0, %v1849_v3  ;;  %v2289_v3 = vmax.f32 %v7933_v26, 0.0 }
 0x28c   : > { %5746 = vxpose.xlu1.b32.cont [7/16] (narrow) %v2286_v38, 64 }
 0x28d   : > { %v1850_v6 = vpack.c.bf16 %v1814_v18, %v1813_v42 }
 0x28e   : > { %v1138_v21 = vpop.permute.xlu1 %1137 }
 0x28f   : > { %6421 = vmatmul.mubr.msk.bf16.gmra.mrb[20].mxu1 %vm1894_vm0, %v1850_v6 }
 0x290   : > { %v6398_v61 = vpop.f32.mrb[28].mxu0  ;;  %5747 = vxpose.xlu1.b32.cont [8/16] (narrow) %v2287_v32, 64  ;;  %v6744_v32 = vld [vmem:[%s9003_s7] sm:$0xff]  }
 0x291   : > { %v2146_v8 = vadd.f32 %v6398_v61, %v7746_v50  ;;  %v2137_v39 = vpop.f32.mrb[29].mxu0  ;;  %6504 = vmatprep.subr.bf16.mxu0 %v6744_v32 }
 0x292   : > { %v2138_v51 = vadd.f32 %v7746_v50, %v2137_v39  ;;  %v6399_v57 = vpop.f32.mrb[30].mxu0  ;;  %v1142_v2 = vpop.permute.xlu1 %1141  ;;  %6505 = vmatpush3.bf16.msra.mxu0 %v6744_v32 }
 0x293   : > { %v2149_v53 = vadd.f32 %v6399_v57, %v7746_v50  ;;  %v1229_v22 = vmul.f32 %v7153_v60, %v1142_v2  ;;  %v2140_v19 = vpop.f32.mrb[31].mxu0  ;;  %v2310_v33 = vmax.f32 %v2146_v8, 0.0  ;;  %v7959_v8 = vadd.f32 %v7675_v14, %v7746_v50  ;;  %v1146_v57 = vpop.permute.xlu0 %1145 }
 0x294   : > { %v2308_v15 = vmax.f32 %v2138_v51, 0.0  ;;  %v2141_v7 = vadd.f32 %v7746_v50, %v2140_v19  ;;  %5748 = vxpose.xlu1.b32.cont [9/16] (narrow) %v2288_v44, 64  ;;  %v7966_v51 = vadd.f32 %v7746_v50, %v7704_v30  ;;  %v1228_v2 = vmul.f32 %v7153_v60, %v1138_v21 }
 0x295   : > { %v2311_v20 = vmax.f32 %v2149_v53, 0.0  ;;  %v1293_v58 = vadd.f32 %v1229_v22, %v905_v31  ;;  %v9028_v39 = vmax.f32 %v7959_v8, 0.0  ;;  %v904_v31 = vmul.f32 %v7161_v63, %v807_v40 }
 0x296   : > { %v2309_v37 = vmax.f32 %v2141_v7, 0.0  ;;  %5784 = vxpose.xlu0.b32.cont [13/16] (narrow) %v2308_v15, 64  ;;  %v906_v14 = vmul.f32 %v7161_v63, %v7805_v13  ;;  %v1230_v53 = vmul.f32 %v7153_v60, %v1146_v57  ;;  %v9027_v19 = vmax.f32 %v7966_v51, 0.0 }
 0x297   : > { %v7950_v18 = vpack.c.bf16 %v2311_v20, %v2310_v33  ;;  %v1681_v42 = vadd.f32 %v1617_v29, %v1293_v58  ;;  %v822_v6 = vpop.permute.xlu1 %821  ;;  %v7978_v30 = vadd.f32 %v7746_v50, %v7709_v23  ;;  %v7986_v13 = vadd.f32 %v7702_v46, %v7746_v50 }
 0x298   : > { %v7952_v61 = vpack.c.bf16 %v2309_v37, %v2308_v15  ;;  %5749 = vxpose.xlu1.b32.cont [10/16] (narrow) %v2289_v3, 64  ;;  %v1292_v15 = vadd.f32 %v1228_v2, %v904_v31  ;;  %v1294_v29 = vadd.f32 %v1230_v53, %v906_v14  ;;  %v7998_v53 = vadd.f32 %v7707_v43, %v7746_v50 }
 0x299   : > { %v1752_v40 = vadd.f32 %v7625_v27, %v1681_v42  ;;  %v9026_v58 = vmax.f32 %v7978_v30, 0.0  ;;  %v907_v42 = vmul.f32 %v7161_v63, %v822_v6  ;;  %v9025_v46 = vmax.f32 %v7986_v13, 0.0 }
 0x29a   : > { %5785 = vxpose.xlu0.b32.cont [14/16] (narrow) %v2309_v37, 64  ;;  %v9024_v6 = vmax.f32 %v7998_v53, 0.0  ;;  %v9066_v36 = vmax.f32 %v7978_v30, 0.0  ;;  %v9068_v38 = vmax.f32 %v7998_v53, 0.0 }
 0x29b   : > { %v1816_v57 = vmax.f32 %v1752_v40, 0.0 }
 0x29c   : > { %5750 = vxpose.xlu1.b32.cont [11/16] (narrow) %v9029_v45, 64  ;;  %v1150_v54 = vpop.permute.xlu1 %1149 }
 0x29d   : > { %v1231_v23 = vmul.f32 %v7153_v60, %v1150_v54 }
 0x29e   : > { %5786 = vxpose.xlu0.b32.cont [15/16] (narrow) %v2310_v33, 64 }
 0x29f   : > { %v1295_v54 = vadd.f32 %v1231_v23, %v907_v42 }
 0x2a0   : > { %5751 = vxpose.xlu1.b32.cont [12/16] (narrow) %v9028_v39, 64 }
 0x2a1   : > { %v1526_v22 = vpop.permute.xlu1 %1525 }
 0x2a2   : > { %v1616_v21 = vmul.f32 %v7159_v62, %v1526_v22  ;;  %5787 = vxpose.xlu0.b32.end [16/16] (narrow) %v2311_v20, 64 }
 0x2a4   : > { %v1680_v7 = vadd.f32 %v1616_v21, %v1292_v15  ;;  %5752 = vxpose.xlu1.b32.cont [13/16] (narrow) %v9027_v19, 64 }
 0x2a5   : > { %v1534_v33 = vpop.permute.xlu1 %1533 }
 0x2a6   : > { %v1751_v37 = vadd.f32 %v7625_v27, %v1680_v7  ;;  %v1618_v20 = vmul.f32 %v7159_v62, %v1534_v33 }
 0x2a8   : > { %v1815_v2 = vmax.f32 %v1751_v37, 0.0  ;;  %v1682_v31 = vadd.f32 %v1618_v20, %v1294_v29  ;;  %5753 = vxpose.xlu1.b32.cont [14/16] (narrow) %v9026_v58, 64  ;;  %v1158_v20 = vpop.permute.xlu0 %1157 }
 0x2a9   : > { %v1538_v14 = vpop.permute.xlu1 %1537 }
 0x2aa   : > { %v1851_v22 = vpack.c.bf16 %v1816_v57, %v1815_v2  ;;  %v1619_v15 = vmul.f32 %v7159_v62, %v1538_v14  ;;  %v1753_v21 = vadd.f32 %v7625_v27, %v1682_v31 }
 0x2ac   : > { %v1683_v40 = vadd.f32 %v1619_v15, %v1295_v54  ;;  %5754 = vxpose.xlu1.b32.cont [15/16] (narrow) %v9025_v46, 64  ;;  %6424 = vmatprep.mubr.msk.bf16.mxu1 %vm1894_vm0, %v1851_v22  ;;  %v1817_v33 = vmax.f32 %v1753_v21, 0.0 }
 0x2ae   : > { %v1754_v7 = vadd.f32 %v7625_v27, %v1683_v40  ;;  %v832_v29 = vpop.permute.xlu1 %831  ;;  %v1162_v40 = vpop.permute.xlu0 %1161 }
 0x2af   : > { %v909_v19 = vmul.f32 %v7161_v63, %v832_v29  ;;  %v6751_v29 = vld [vmem:[%s9042_s2] ss:$0 sm:$0xff] }
 0x2b0   : > { %v1818_v43 = vmax.f32 %v1754_v7, 0.0  ;;  %5755 = vxpose.xlu1.b32.end [16/16] (narrow) %v9024_v6, 64 }
 0x2b2   : > { %v1852_v23 = vpack.c.bf16 %v1818_v43, %v1817_v33 }
 0x2b3   : > { %v1154_v37 = vpop.permute.xlu1 %1153 }
 0x2b4   : > { %6425 = vmatmul.mubr.msk.bf16.gmra.mrb[24].mxu1 %vm1894_vm0, %v1852_v23 }
 0x2b5   : > { %v6402_v57 = vpop.f32.mrb[0].mxu1 }
 0x2b6   : > { %v2162_v42 = vadd.f32 %v6402_v57, %v7746_v50  ;;  %v2153_v2 = vpop.f32.mrb[1].mxu1  ;;  %v1232_v57 = vmul.f32 %v7153_v60, %v1154_v37 }
 0x2b7   : > { %v2154_v31 = vadd.f32 %v7746_v50, %v2153_v2  ;;  %v6403_v14 = vpop.f32.mrb[2].mxu1  ;;  %v1542_v2 = vpop.permute.xlu0 %1541 }
 0x2b8   : > { %v2165_v27 = vadd.f32 %v6403_v14, %v7746_v50  ;;  %v2156_v54 = vpop.f32.mrb[3].mxu1  ;;  %v837_v22 = vpop.permute.xlu1 %836  ;;  %v2314_v7 = vmax.f32 %v2162_v42, 0.0  ;;  %v908_v14 = vmul.f32 %v7161_v63, %v7812_v17 }
 0x2b9   : > { %v2312_v15 = vmax.f32 %v2154_v31, 0.0  ;;  %v2157_v21 = vadd.f32 %v7746_v50, %v2156_v54  ;;  %v1620_v54 = vmul.f32 %v7159_v62, %v1542_v2 }
 0x2ba   : > { %v2315_v33 = vmax.f32 %v2165_v27, 0.0  ;;  %v1296_v31 = vadd.f32 %v1232_v57, %v908_v14  ;;  %v910_v57 = vmul.f32 %v7161_v63, %v837_v22 }
 0x2bb   : > { %v2313_v43 = vmax.f32 %v2157_v21, 0.0  ;;  %5804 = vxpose.xlu0.b32.start [1/16] (narrow) %v2312_v15, 64  ;;  %v1554_v27 = vpop.permute.xlu0 %1553  ;;  %v1233_v21 = vmul.f32 %v7153_v60, %v1158_v20 }
 0x2bc   : > { %v8014_v23 = vpack.c.bf16 %v2315_v33, %v2314_v7  ;;  %v842_v6 = vpop.permute.xlu1 %841  ;;  %v1623_v45 = vmul.f32 %v7159_v62, %v1554_v27 }
 0x2bd   : > { %v8017_v46 = vpack.c.bf16 %v2313_v43, %v2312_v15  ;;  %v911_v37 = vmul.f32 %v7161_v63, %v842_v6  ;;  %v1684_v15 = vadd.f32 %v1620_v54, %v1296_v31 }
 0x2bf   : > { %5805 = vxpose.xlu0.b32.cont [2/16] (narrow) %v2313_v43, 64  ;;  %v1297_v43 = vadd.f32 %v1233_v21, %v909_v19  ;;  %v1755_v20 = vadd.f32 %v6751_v29, %v1684_v15 }
 0x2c1   : > { %v1166_v58 = vpop.permute.xlu1 %1165  ;;  %v1819_v19 = vmax.f32 %v1755_v20, 0.0 }
 0x2c2   : > { %v1235_v42 = vmul.f32 %v7153_v60, %v1166_v58  ;;  %v1234_v58 = vmul.f32 %v7153_v60, %v1162_v40 }
 0x2c3   : > { %5806 = vxpose.xlu0.b32.cont [3/16] (narrow) %v2314_v7, 64 }
 0x2c4   : > { %v1299_v39 = vadd.f32 %v1235_v42, %v911_v37  ;;  %v1298_v31 = vadd.f32 %v1234_v58, %v910_v57 }
 0x2c6   : > { %v1546_v17 = vpop.permute.xlu1 %1545  ;;  %v1687_v6 = vadd.f32 %v1623_v45, %v1299_v39  ;;  %v2344_v45 = vpack.c.bf16 %v2281_v11, %v2280_v41  ;;  %v2345_v41 = vpack.c.bf16 %v2283_v1, %v2282_v56  ;;  %v2348_v56 = vpack.c.bf16 %v2289_v3, %v2288_v44 }
 0x2c7   : > { %v1621_v2 = vmul.f32 %v7159_v62, %v1546_v17  ;;  %5807 = vxpose.xlu0.b32.cont [4/16] (narrow) %v2315_v33, 64  ;;  %v9064_v1 = vmax.f32 %v7959_v8, 0.0 }
 0x2c8   : > { %v1758_v27 = vadd.f32 %v6751_v29, %v1687_v6 }
 0x2c9   : > { %v1685_v7 = vadd.f32 %v1621_v2, %v1297_v43  ;;  %v2349_v12 = vpack.c.bf16 %v9064_v1, %v9063_v16 }
 0x2ca   : > { %v1550_v14 = vpop.permute.xlu1 %1549  ;;  %v1822_v37 = vmax.f32 %v1758_v27, 0.0 }
 0x2cb   : > { %v1756_v54 = vadd.f32 %v6751_v29, %v1685_v7  ;;  %v1622_v42 = vmul.f32 %v7159_v62, %v1550_v14 }
 0x2cd   : > { %v1820_v63 = vmax.f32 %v1756_v54, 0.0  ;;  %v1686_v22 = vadd.f32 %v1622_v42, %v1298_v31 }
 0x2cf   : > { %v1853_v21 = vpack.c.bf16 %v1820_v63, %v1819_v19  ;;  %v1757_v33 = vadd.f32 %v6751_v29, %v1686_v22  ;;  %v2346_v29 = vpack.c.bf16 %v2285_v34, %v2284_v59  ;;  %v9065_v59 = vmax.f32 %v7966_v51, 0.0 }
 0x2d0   : > { %v9067_v34 = vmax.f32 %v7986_v13, 0.0 }
 0x2d1   : > { %v1821_v60 = vmax.f32 %v1757_v33, 0.0  ;;  %6428 = vmatprep.mubr.msk.bf16.mxu1 %vm1894_vm0, %v1853_v21  ;;  %v2350_v28 = vpack.c.bf16 %v9066_v36, %v9065_v59 }
 0x2d2   : > { %v2351_v52 = vpack.c.bf16 %v9068_v38, %v9067_v34 }
 0x2d3   : > { %v1854_v40 = vpack.c.bf16 %v1822_v37, %v1821_v60 }
 0x2d5   : > { %6429 = vmatmul.mubr.msk.bf16.gmra.mrb[28].mxu1 %vm1894_vm0, %v1854_v40 }
 0x2d6   : > { %v6406_v39 = vpop.f32.mrb[4].mxu1  ;;  %6440 = vmatprep.mubr.msk.bf16.mxu1 %vm1894_vm0, %v2344_v45 }
 0x2d7   : > { %v2178_v62 = vadd.f32 %v6406_v39, %v7746_v50  ;;  %v2169_v15 = vpop.f32.mrb[5].mxu1 }
 0x2d8   : > { %v2170_v17 = vadd.f32 %v7746_v50, %v2169_v15  ;;  %v6407_v43 = vpop.f32.mrb[6].mxu1 }
 0x2d9   : > { %v2181_v57 = vadd.f32 %v6407_v43, %v7746_v50  ;;  %v2172_v2 = vpop.f32.mrb[7].mxu1  ;;  %v2318_v47 = vmax.f32 %v2178_v62, 0.0 }
 0x2da   : > { %v2316_v58 = vmax.f32 %v2170_v17, 0.0  ;;  %v2173_v55 = vadd.f32 %v7746_v50, %v2172_v2 }
 0x2db   : > { %v2319_v11 = vmax.f32 %v2181_v57, 0.0 }
 0x2dc   : > { %v2317_v20 = vmax.f32 %v2173_v55, 0.0  ;;  %5808 = vxpose.xlu0.b32.cont [5/16] (narrow) %v2316_v58, 64 }
 0x2dd   : > { %v8053_v6 = vpack.c.bf16 %v2319_v11, %v2318_v47  ;;  %6441 = vmatmul.mubr.msk.bf16.vlgmr.msra.gmra.mrb[32].mxu1 %vm1894_vm0, %v2345_v41 }
 0x2de   : > { %v2362_v7 = vpack.c.bf16 %v2317_v20, %v2316_v58  ;;  %6444 = vmatprep.mubr.msk.bf16.mxu1 %vm1894_vm0, %v2346_v29 }
 0x2e0   : > { %5809 = vxpose.xlu0.b32.cont [6/16] (narrow) %v2317_v20, 64 }
 0x2e4   : > { %5810 = vxpose.xlu0.b32.cont [7/16] (narrow) %v2318_v47, 64 }
 0x2e5   : > { %6445 = vmatmul.mubr.msk.bf16.gmra.mrb[36].mxu1 %vm1894_vm0, %v2347_v48 }
 0x2e6   : > { %6448 = vmatprep.mubr.msk.bf16.mxu1 %vm1894_vm0, %v2348_v56 }
 0x2e8   : > { %5811 = vxpose.xlu0.b32.cont [8/16] (narrow) %v2319_v11, 64 }
 0x2ed   : > { %6449 = vmatmul.mubr.msk.bf16.gmra.mrb[40].mxu1 %vm1894_vm0, %v2349_v12 }
 0x2ee   : > { %6452 = vmatprep.mubr.msk.bf16.mxu1 %vm1894_vm0, %v2350_v28 }
 0x2f5   : > { %6453 = vmatmul.mubr.msk.bf16.gmra.mrb[44].mxu1 %vm1894_vm0, %v2351_v52 }
 0x2f6   : > { %6456 = vmatprep.mubr.msk.bf16.mxu1 %vm1894_vm0, %v7758_v5 }
 0x2fb   : > { %v6410_v4 = vpop.f32.mrb[8].mxu1 }
 0x2fc   : > { %v2194_v44 = vadd.f32 %v6410_v4, %v7746_v50  ;;  %v2185_v26 = vpop.f32.mrb[9].mxu1  ;;  %v6752_v4 = vld [vmem:[%s9000_s4] ss:$0 sm:$0xff] }
 0x2fd   : > { %v2186_v9 = vadd.f32 %v7746_v50, %v2185_v26  ;;  %v6411_v3 = vpop.f32.mrb[10].mxu1  ;;  %6457 = vmatmul.mubr.msk.bf16.gmra.mrb[48].mxu1 %vm1894_vm0, %v7754_v10  ;;  %v6745_v10 = vld [vmem:[%s9003_s7 + $0x8] sm:$0xff]  }
 0x2fe   : > { %v2197_v8 = vadd.f32 %v6411_v3, %v7746_v50  ;;  %v2188_v51 = vpop.f32.mrb[11].mxu1  ;;  %6460 = vmatprep.mubr.msk.bf16.mxu1 %vm1894_vm0, %v7817_v35  ;;  %v2322_v13 = vmax.f32 %v2194_v44, 0.0  ;;  %6506 = vmatprep.subr.bf16.mxu0 %v6745_v10 }
 0x2ff   : > { %v2320_v30 = vmax.f32 %v2186_v9, 0.0  ;;  %v2189_v5 = vadd.f32 %v7746_v50, %v2188_v51  ;;  %6507 = vmatpush3.bf16.msra.mxu0 %v6745_v10 }
 0x300   : > { %v2323_v53 = vmax.f32 %v2197_v8, 0.0 }
 0x301   : > { %v2321_v14 = vmax.f32 %v2189_v5, 0.0  ;;  %5812 = vxpose.xlu0.b32.cont [9/16] (narrow) %v2320_v30, 64 }
 0x302   : > { %v2365_v31 = vpack.c.bf16 %v2323_v53, %v2322_v13 }
 0x303   : > { %v2364_v54 = vpack.c.bf16 %v2321_v14, %v2320_v30 }
 0x305   : > { %5813 = vxpose.xlu0.b32.cont [10/16] (narrow) %v2321_v14, 64  ;;  %6461 = vmatmul.mubr.msk.bf16.gmra.mrb[52].mxu1 %vm1894_vm0, %v7810_v0  ;;  %v6746_v0 = vld [vmem:[%s9003_s7 + $0x10] sm:$0xff]  }
 0x306   : > { %6464 = vmatprep.mubr.msk.bf16.mxu1 %vm1894_vm0, %v7865_v24  ;;  %6508 = vmatprep.subr.bf16.mxu0 %v6746_v0 }
 0x307   : > { %6509 = vmatpush3.bf16.msra.mxu0 %v6746_v0 }
 0x309   : > { %5814 = vxpose.xlu0.b32.cont [11/16] (narrow) %v2322_v13, 64 }
 0x30d   : > { %5815 = vxpose.xlu0.b32.cont [12/16] (narrow) %v2323_v53, 64  ;;  %6465 = vmatmul.mubr.msk.bf16.gmra.mrb[56].mxu1 %vm1894_vm0, %v7860_v49 }
 0x30e   : > { %6468 = vmatprep.mubr.msk.bf16.mxu1 %vm1894_vm0, %v7952_v61 }
 0x315   : > { %6469 = vmatmul.mubr.msk.bf16.gmra.mrb[60].mxu1 %vm1894_vm0, %v7950_v18 }
 0x316   : > { %6472 = vmatprep.mubr.msk.bf16.mxu1 %vm1894_vm0, %v8017_v46 }
 0x31c   : > { %v6414_v35 = vpop.f32.mrb[12].mxu1 }
 0x31d   : > { %v2210_v49 = vadd.f32 %v6414_v35, %v7746_v50  ;;  %v2201_v24 = vpop.f32.mrb[13].mxu1  ;;  %6473 = vmatmul.mubr.msk.bf16.gmra.mrb[64].mxu1 %vm1894_vm0, %v8014_v23  ;;  %v6747_v23 = vld [vmem:[%s9003_s7 + $0x18] sm:$0xff]   ;;  %v8161_v35 = vld [vmem:[%s9005_s9 + $0x28] sm:$0xff] }
 0x31e   : > { %v2202_v61 = vadd.f32 %v7746_v50, %v2201_v24  ;;  %v6415_v42 = vpop.f32.mrb[14].mxu1  ;;  %6476 = vmatprep.mubr.msk.bf16.mxu1 %vm1894_vm0, %v2362_v7  ;;  %6510 = vmatprep.subr.bf16.mxu0 %v6747_v23  ;;  %v3424_v24 = vld [vmem:[%s9005_s9 + $0x40] sm:$0xff] }
 0x31f   : > { %v2213_v18 = vadd.f32 %v6415_v42, %v7746_v50  ;;  %v2204_v46 = vpop.f32.mrb[15].mxu1  ;;  %v2326_v63 = vmax.f32 %v2210_v49, 0.0  ;;  %6511 = vmatpush3.bf16.msra.mxu0 %v6747_v23 }
 0x320   : > { %v2324_v19 = vmax.f32 %v2202_v61, 0.0  ;;  %v2205_v27 = vadd.f32 %v7746_v50, %v2204_v46  ;;  %v3428_v61 = vld [vmem:[%s9005_s9 + $0x60] sm:$0xff] }
 0x321   : > { %v2327_v22 = vmax.f32 %v2213_v18, 0.0  ;;  %v6185_v18 = vcombine.low %v3424_v24, %v3428_v61  ;;  %v6186_v46 = vcombine.high %v3424_v24, %v3428_v61 }
 0x322   : > { %v2325_v21 = vmax.f32 %v2205_v27, 0.0  ;;  %5816 = vxpose.xlu0.b32.cont [13/16] (narrow) %v2324_v19, 64 }
 0x323   : > { %v2367_v33 = vpack.c.bf16 %v2327_v22, %v2326_v63 }
 0x324   : > { %v2366_v37 = vpack.c.bf16 %v2325_v21, %v2324_v19 }
 0x325   : > { %6477 = vmatmul.mubr.msk.bf16.gmra.mrb[68].mxu1 %vm1894_vm0, %v8053_v6 }
 0x326   : > { %5817 = vxpose.xlu0.b32.cont [14/16] (narrow) %v2325_v21, 64  ;;  %6480 = vmatprep.mubr.msk.bf16.mxu1 %vm1894_vm0, %v2364_v54  ;;  %v8156_v54 = vld [vmem:[%s9005_s9 + $0x8] sm:$0xff]  ;;  %v3432_v21 = vld [vmem:[%s9005_s9 + $0x80] sm:$0xff] }
 0x327   : > { %v6180_v49 = vcombine.high %v8156_v54, %v8161_v35 }
 0x329   : > { %4153 = vmatprep.subr.bf16.mxu0 %v6180_v49 }
 0x32a   : > { %5818 = vxpose.xlu0.b32.cont [15/16] (narrow) %v2326_v63, 64 }
 0x32d   : > { %6481 = vmatmul.mubr.msk.bf16.gmra.mrb[72].mxu1 %vm1894_vm0, %v2365_v31  ;;  %v3420_v31 = vld [vmem:[%s9005_s9 + $0x20] sm:$0xff] }
 0x32e   : > { %5819 = vxpose.xlu0.b32.end [16/16] (narrow) %v2327_v22, 64  ;;  %6484 = vmatprep.mubr.msk.bf16.mxu1 %vm1894_vm0, %v2366_v37 }
 0x335   : > { %6485 = vmatmul.mubr.msk.bf16.gmra.mrb[76].mxu1 %vm1894_vm0, %v2367_v33  ;;  %v3436_v33 = vld [vmem:[%s9005_s9 + $0xa0] sm:$0xff] }
 0x341   : > { %v6418_v60 = vpop.f32.mrb[16].mxu1 }
 0x342   : > { %v2226_v40 = vadd.f32 %v6418_v60, %v7746_v50  ;;  %v2217_v45 = vpop.f32.mrb[17].mxu1  ;;  %v6193_v60 = vcombine.low %v3432_v21, %v3436_v33 }
 0x343   : > { %v2218_v39 = vadd.f32 %v7746_v50, %v2217_v45  ;;  %v6419_v62 = vpop.f32.mrb[18].mxu1 }
 0x344   : > { %v2229_v15 = vadd.f32 %v6419_v62, %v7746_v50  ;;  %v2220_v17 = vpop.f32.mrb[19].mxu1  ;;  %v2330_v2 = vmax.f32 %v2226_v40, 0.0  ;;  %v6194_v40 = vcombine.high %v3432_v21, %v3436_v33 }
 0x345   : > { %v2328_v43 = vmax.f32 %v2218_v39, 0.0  ;;  %v2221_v57 = vadd.f32 %v7746_v50, %v2220_v17 }
 0x346   : > { %v2331_v58 = vmax.f32 %v2229_v15, 0.0 }
 0x347   : > { %v2329_v55 = vmax.f32 %v2221_v57, 0.0  ;;  %5836 = vxpose.xlu1.b32.start [1/16] (narrow) %v2328_v43, 64 }
 0x348   : > { %v2369_v41 = vpack.c.bf16 %v2331_v58, %v2330_v2 }
 0x349   : > { %v2368_v47 = vpack.c.bf16 %v2329_v55, %v2328_v43  ;;  %v8180_v43 = vld [vmem:[%s9002_s6] ss:$0 sm:$0xff] }
 0x34b   : > { %5837 = vxpose.xlu1.b32.cont [2/16] (narrow) %v2329_v55, 64  ;;  %6488 = vmatprep.mubr.msk.bf16.mxu1 %vm1894_vm0, %v2368_v47 }
 0x34c   : > { %6489 = vmatmul.mubr.msk.bf16.gmra.mrb[80].mxu1 %vm1894_vm0, %v2369_v41 }
 0x34f   : > { %5838 = vxpose.xlu1.b32.cont [3/16] (narrow) %v2330_v2, 64 }
 0x353   : > { %5839 = vxpose.xlu1.b32.cont [4/16] (narrow) %v2331_v58, 64 }
 0x362   : > { %v6422_v11 = vpop.f32.mrb[20].mxu1 }
 0x363   : > { %v2242_v29 = vadd.f32 %v6422_v11, %v7746_v50  ;;  %v2233_v20 = vpop.f32.mrb[21].mxu1 }
 0x364   : > { %v2234_v6 = vadd.f32 %v7746_v50, %v2233_v20  ;;  %v6423_v7 = vpop.f32.mrb[22].mxu1 }
 0x365   : > { %v2245_v48 = vadd.f32 %v6423_v7, %v7746_v50  ;;  %v2236_v56 = vpop.f32.mrb[23].mxu1  ;;  %v2334_v12 = vmax.f32 %v2242_v29, 0.0 }
 0x366   : > { %v2332_v16 = vmax.f32 %v2234_v6, 0.0  ;;  %v2237_v1 = vadd.f32 %v7746_v50, %v2236_v56 }
 0x367   : > { %v2335_v59 = vmax.f32 %v2245_v48, 0.0 }
 0x368   : > { %v2333_v36 = vmax.f32 %v2237_v1, 0.0  ;;  %5840 = vxpose.xlu1.b32.cont [5/16] (narrow) %v2332_v16, 64  ;;  %v3425_v1 = vld [vmem:[%s9005_s9 + $0x48] sm:$0xff] }
 0x369   : > { %v2371_v28 = vpack.c.bf16 %v2335_v59, %v2334_v12 }
 0x36a   : > { %v2370_v34 = vpack.c.bf16 %v2333_v36, %v2332_v16 }
 0x36c   : > { %5841 = vxpose.xlu1.b32.cont [6/16] (narrow) %v2333_v36, 64  ;;  %6492 = vmatprep.mubr.msk.bf16.mxu1 %vm1894_vm0, %v2370_v34  ;;  %v6179_v34 = vcombine.low %v8156_v54, %v8161_v35 }
 0x36d   : > { %6493 = vmatmul.mubr.msk.bf16.gmra.mrb[84].mxu1 %vm1894_vm0, %v2371_v28 }
 0x370   : > { %5842 = vxpose.xlu1.b32.cont [7/16] (narrow) %v2334_v12, 64  ;;  %v3429_v12 = vld [vmem:[%s9005_s9 + $0x68] sm:$0xff] }
 0x374   : > { %5843 = vxpose.xlu1.b32.cont [8/16] (narrow) %v2335_v59, 64 }
 0x387   : > { %v6426_v38 = vpop.f32.mrb[24].mxu1 }
 0x388   : > { %v2258_v52 = vadd.f32 %v6426_v38, %v7746_v50  ;;  %v2249_v32 = vpop.f32.mrb[25].mxu1  ;;  %v3416_v50 = vld [vmem:[%s9005_s9] sm:$0xff] }
 0x389   : > { %v2250_v44 = vadd.f32 %v6752_v4, %v2249_v32  ;;  %v6427_v26 = vpop.f32.mrb[26].mxu1  ;;  %v6177_v10 = vcombine.low %v3416_v50, %v3420_v31  ;;  %v6178_v0 = vcombine.high %v3416_v50, %v3420_v31  ;;  %v6188_v32 = vcombine.high %v3425_v1, %v3429_v12 }
 0x38a   : > { %v2261_v9 = vadd.f32 %v6752_v4, %v6427_v26  ;;  %v2252_v3 = vpop.f32.mrb[27].mxu1  ;;  %v2338_v30 = vmax.f32 %v2258_v52, 0.0  ;;  %v3433_v26 = vld [vmem:[%s9005_s9 + $0x88] sm:$0xff] }
 0x38b   : > { %v2336_v8 = vmax.f32 %v2250_v44, 0.0  ;;  %v2253_v51 = vadd.f32 %v6752_v4, %v2252_v3  ;;  %3800 = vmatprep.subr.bf16.mxu1 %v6178_v0 }
 0x38c   : > { %v2339_v5 = vmax.f32 %v2261_v9, 0.0  ;;  %3801 = vmatpush1.bf16.msra.mxu1 %v6177_v10  ;;  %v3437_v9 = vld [vmem:[%s9005_s9 + $0xa8] sm:$0xff] }
 0x38d   : > { %v2337_v13 = vmax.f32 %v2253_v51, 0.0  ;;  %5844 = vxpose.xlu1.b32.cont [9/16] (narrow) %v2336_v8, 64  ;;  %3802 = vmatprep.subr.bf16.mxu1 %v6186_v46  ;;  %v6195_v0 = vcombine.low %v3433_v26, %v3437_v9 }
 0x38e   : > { %v2373_v53 = vpack.c.bf16 %v2339_v5, %v2338_v30 }
 0x38f   : > { %v2372_v14 = vpack.c.bf16 %v2337_v13, %v2336_v8 }
 0x390   : > { %3803 = vmatpush1.bf16.msra.mxu1 %v6185_v18 }
 0x391   : > { %5845 = vxpose.xlu1.b32.cont [10/16] (narrow) %v2337_v13, 64  ;;  %6496 = vmatprep.mubr.msk.bf16.mxu1 %vm1894_vm0, %v2372_v14 }
 0x392   : > { %6497 = vmatmul.mubr.msk.bf16.gmra.mrb[88].mxu1 %vm1894_vm0, %v2373_v53  ;;  %3804 = vmatprep.subr.bf16.mxu1 %v6194_v40  ;;  %v6196_v53 = vcombine.high %v3433_v26, %v3437_v9  ;;  %v3441_v40 = vld [vmem:[%s9005_s9 + $0xc8] sm:$0xff] }
 0x394   : > { %3805 = vmatpush1.bf16.msra.mxu1 %v6193_v60  ;;  %v3444_v60 = vld [vmem:[%s9005_s9 + $0xe0] sm:$0xff] }
 0x395   : > { %5846 = vxpose.xlu1.b32.cont [11/16] (narrow) %v2338_v30, 64  ;;  %v6187_v30 = vcombine.low %v3425_v1, %v3429_v12 }
 0x399   : > { %5847 = vxpose.xlu1.b32.cont [12/16] (narrow) %v2339_v5, 64 }
 0x3a8   : > { %v6430_v42 = vpop.f32.mrb[28].mxu1 }
 0x3a9   : > { %v2274_v19 = vadd.f32 %v6752_v4, %v6430_v42  ;;  %v2265_v27 = vpop.f32.mrb[29].mxu1 }
 0x3aa   : > { %v2266_v63 = vadd.f32 %v6752_v4, %v2265_v27  ;;  %v6431_v22 = vpop.f32.mrb[30].mxu1 }
 0x3ab   : > { %v2277_v37 = vadd.f32 %v6752_v4, %v6431_v22  ;;  %v2268_v23 = vpop.f32.mrb[31].mxu1  ;;  %v2342_v62 = vmax.f32 %v2274_v19, 0.0 }
 0x3ac   : > { %v2340_v45 = vmax.f32 %v2266_v63, 0.0  ;;  %v2269_v39 = vadd.f32 %v6752_v4, %v2268_v23  ;;  %v3440_v23 = vld [vmem:[%s9005_s9 + $0xc0] sm:$0xff] }
 0x3ad   : > { %v2343_v15 = vmax.f32 %v2277_v37, 0.0 }
 0x3ae   : > { %v2341_v17 = vmax.f32 %v2269_v39, 0.0  ;;  %5848 = vxpose.xlu1.b32.cont [13/16] (narrow) %v2340_v45, 64 }
 0x3af   : > { %v2375_v57 = vpack.c.bf16 %v2343_v15, %v2342_v62 }
 0x3b0   : > { %v2374_v2 = vpack.c.bf16 %v2341_v17, %v2340_v45  ;;  %v6442_v58 = vpop.f32.mrb[32].mxu1 }
 0x3b1   : > { %v2554_v55 = vadd.f32 %v6442_v58, %v8180_v43  ;;  %v2545_v41 = vpop.f32.mrb[33].mxu1 }
 0x3b2   : > { %v2546_v47 = vadd.f32 %v8180_v43, %v2545_v41  ;;  %v6443_v11 = vpop.f32.mrb[34].mxu1  ;;  %5849 = vxpose.xlu1.b32.cont [14/16] (narrow) %v2341_v17, 64  ;;  %6500 = vmatprep.mubr.msk.bf16.mxu1 %vm1894_vm0, %v2374_v2  ;;  %v3445_v17 = vld [vmem:[%s9005_s9 + $0xe8] sm:$0xff] }
 0x3b3   : > { %v2557_v29 = vadd.f32 %v6443_v11, %v8180_v43  ;;  %v2548_v20 = vpop.f32.mrb[35].mxu1  ;;  %6501 = vmatmul.mubr.msk.bf16.gmra.mrb[92].mxu1 %vm1894_vm0, %v2375_v57  ;;  %v2802_v7 = vmax.f32 %v2554_v55, 0.0  ;;  %v6203_v58 = vcombine.low %v3441_v40, %v3445_v17  ;;  %v6204_v55 = vcombine.high %v3441_v40, %v3445_v17  ;;  %v3448_v11 = vld [vmem:[%s9005_s9 + $0x100] sm:$0xff] }
 0x3b4   : > { %v2549_v6 = vadd.f32 %v8180_v43, %v2548_v20  ;;  %3832 = vmatprep.mubr.bf16.mxu1 %v9050_v25  ;;  %v2800_v56 = vmax.f32 %v2546_v47, 0.0  ;;  %v3449_v20 = vld [vmem:[%s9005_s9 + $0x108] sm:$0xff] }
 0x3b5   : > { %v2803_v48 = vmax.f32 %v2557_v29, 0.0  ;;  %v3452_v29 = vld [vmem:[%s9005_s9 + $0x120] sm:$0xff] }
 0x3b6   : > { %v2801_v16 = vmax.f32 %v2549_v6, 0.0  ;;  %5850 = vxpose.xlu1.b32.cont [15/16] (narrow) %v2342_v62, 64  ;;  %v6201_v62 = vcombine.low %v3440_v23, %v3444_v60 }
 0x3b7   : > { %v2865_v59 = vpack.c.bf16 %v2803_v48, %v2802_v7  ;;  %v6209_v7 = vcombine.low %v3448_v11, %v3452_v29  ;;  %v6210_v48 = vcombine.high %v3448_v11, %v3452_v29 }
 0x3b8   : > { %v2864_v36 = vpack.c.bf16 %v2801_v16, %v2800_v56  ;;  %v6446_v28 = vpop.f32.mrb[36].mxu1  ;;  %v3453_v56 = vld [vmem:[%s9005_s9 + $0x128] sm:$0xff] }
 0x3b9   : > { %v2570_v38 = vadd.f32 %v6446_v28, %v8180_v43  ;;  %v2561_v52 = vpop.f32.mrb[37].mxu1  ;;  %v6211_v12 = vcombine.low %v3449_v20, %v3453_v56 }
 0x3ba   : > { %v2562_v4 = vadd.f32 %v8180_v43, %v2561_v52  ;;  %v6447_v44 = vpop.f32.mrb[38].mxu1  ;;  %6512 = vmatprep.mubr.msk.bf16.mxu0 %vm1894_vm0, %v2864_v36  ;;  %5851 = vxpose.xlu1.b32.end [16/16] (narrow) %v2343_v15, 64  ;;  %v6202_v15 = vcombine.high %v3440_v23, %v3444_v60 }
 0x3bb   : > { %v2573_v3 = vadd.f32 %v6447_v44, %v8180_v43  ;;  %v2564_v8 = vpop.f32.mrb[39].mxu1  ;;  %6513 = vmatmul.mubr.msk.bf16.vlgmr.msra.gmra.mrb[32].mxu0 %vm1894_vm0, %v2865_v59  ;;  %v2806_v5 = vmax.f32 %v2570_v38, 0.0  ;;  %v6212_v59 = vcombine.high %v3449_v20, %v3453_v56  ;;  %v3460_v56 = vld [vmem:[%s9005_s9 + $0x160] sm:$0xff] }
 0x3bc   : > { %v2565_v51 = vadd.f32 %v8180_v43, %v2564_v8  ;;  %4154 = vmatpush1.bf16.msra.mxu0 %v6179_v34  ;;  %v2804_v14 = vmax.f32 %v2562_v4, 0.0  ;;  %3806 = vmatprep.subr.bf16.mxu1 %v6202_v15 }
 0x3bd   : > { %v2807_v13 = vmax.f32 %v2573_v3, 0.0  ;;  %4155 = vmatprep.subr.bf16.mxu0 %v6188_v32  ;;  %3807 = vmatpush1.bf16.msra.mxu1 %v6201_v62 }
 0x3be   : > { %v2805_v50 = vmax.f32 %v2565_v51, 0.0  ;;  %3808 = vmatprep.subr.bf16.mxu1 %v6210_v48  ;;  %v3456_v48 = vld [vmem:[%s9005_s9 + $0x140] sm:$0xff] }
 0x3bf   : > { %v2867_v31 = vpack.c.bf16 %v2807_v13, %v2806_v5 }
 0x3c0   : > { %v2866_v54 = vpack.c.bf16 %v2805_v50, %v2804_v14  ;;  %v6450_v10 = vpop.f32.mrb[40].mxu1  ;;  %4156 = vmatpush1.bf16.msra.mxu0 %v6187_v30 }
 0x3c1   : > { %v2586_v35 = vadd.f32 %v6450_v10, %v8180_v43  ;;  %v2577_v49 = vpop.f32.mrb[41].mxu1  ;;  %4157 = vmatprep.subr.bf16.mxu0 %v6196_v53  ;;  %3809 = vmatpush1.bf16.msra.mxu1 %v6209_v7 }
 0x3c2   : > { %v2578_v24 = vadd.f32 %v8180_v43, %v2577_v49  ;;  %v6451_v61 = vpop.f32.mrb[42].mxu1  ;;  %6516 = vmatprep.mubr.msk.bf16.mxu0 %vm1894_vm0, %v2866_v54 }
 0x3c3   : > { %v2589_v42 = vadd.f32 %v6451_v61, %v8180_v43  ;;  %v2580_v18 = vpop.f32.mrb[43].mxu1  ;;  %6517 = vmatmul.mubr.msk.bf16.gmra.mrb[36].mxu0 %vm1894_vm0, %v2867_v31  ;;  %v2810_v19 = vmax.f32 %v2586_v35, 0.0 }
 0x3c4   : > { %v2581_v46 = vadd.f32 %v8180_v43, %v2580_v18  ;;  %4158 = vmatpush1.bf16.msra.mxu0 %v6195_v0  ;;  %v2808_v63 = vmax.f32 %v2578_v24, 0.0 }
 0x3c5   : > { %v2811_v27 = vmax.f32 %v2589_v42, 0.0  ;;  %4159 = vmatprep.subr.bf16.mxu0 %v6204_v55 }
 0x3c6   : > { %v2809_v22 = vmax.f32 %v2581_v46, 0.0 }
 0x3c7   : > { %v2869_v21 = vpack.c.bf16 %v2811_v27, %v2810_v19 }
 0x3c8   : > { %v2868_v33 = vpack.c.bf16 %v2809_v22, %v2808_v63  ;;  %v6454_v37 = vpop.f32.mrb[44].mxu1  ;;  %4160 = vmatpush1.bf16.msra.mxu0 %v6203_v58 }
 0x3c9   : > { %v2602_v45 = vadd.f32 %v6454_v37, %v8180_v43  ;;  %v2593_v39 = vpop.f32.mrb[45].mxu1  ;;  %4161 = vmatprep.subr.bf16.mxu0 %v6212_v59  ;;  %v6217_v59 = vcombine.low %v3456_v48, %v3460_v56 }
 0x3ca   : > { %v2594_v57 = vadd.f32 %v8180_v43, %v2593_v39  ;;  %v6455_v2 = vpop.f32.mrb[46].mxu1  ;;  %6520 = vmatprep.mubr.msk.bf16.mxu0 %vm1894_vm0, %v2868_v33 }
 0x3cb   : > { %v2605_v41 = vadd.f32 %v6455_v2, %v8180_v43  ;;  %v2596_v47 = vpop.f32.mrb[47].mxu1  ;;  %6521 = vmatmul.mubr.msk.bf16.gmra.mrb[40].mxu0 %vm1894_vm0, %v2869_v21  ;;  %v2814_v16 = vmax.f32 %v2602_v45, 0.0 }
 0x3cc   : > { %v2597_v6 = vadd.f32 %v8180_v43, %v2596_v47  ;;  %v2812_v36 = vmax.f32 %v2594_v57, 0.0  ;;  %4162 = vmatpush1.bf16.msra.mxu0 %v6211_v12 }
 0x3cd   : > { %v2815_v1 = vmax.f32 %v2605_v41, 0.0 }
 0x3ce   : > { %v2813_v28 = vmax.f32 %v2597_v6, 0.0 }
 0x3cf   : > { %v2871_v34 = vpack.c.bf16 %v2815_v1, %v2814_v16  ;;  %v3457_v16 = vld [vmem:[%s9005_s9 + $0x148] sm:$0xff] }
 0x3d0   : > { %v2870_v38 = vpack.c.bf16 %v2813_v28, %v2812_v36  ;;  %v6458_v52 = vpop.f32.mrb[48].mxu1  ;;  %v6218_v36 = vcombine.high %v3456_v48, %v3460_v56  ;;  %v3461_v28 = vld [vmem:[%s9005_s9 + $0x168] sm:$0xff] }
 0x3d1   : > { %v2618_v32 = vadd.f32 %v6458_v52, %v8180_v43  ;;  %v2609_v4 = vpop.f32.mrb[49].mxu1  ;;  %v6220_v52 = vcombine.high %v3457_v16, %v3461_v28 }
 0x3d2   : > { %v2610_v44 = vadd.f32 %v8180_v43, %v2609_v4  ;;  %v6459_v26 = vpop.f32.mrb[50].mxu1  ;;  %6524 = vmatprep.mubr.msk.bf16.mxu0 %vm1894_vm0, %v2870_v38  ;;  %v6219_v38 = vcombine.low %v3457_v16, %v3461_v28  ;;  %3810 = vmatprep.subr.bf16.mxu1 %v6218_v36 }
 0x3d3   : > { %v2621_v9 = vadd.f32 %v6459_v26, %v8180_v43  ;;  %v2612_v3 = vpop.f32.mrb[51].mxu1  ;;  %6525 = vmatmul.mubr.msk.bf16.gmra.mrb[44].mxu0 %vm1894_vm0, %v2871_v34  ;;  %v2818_v51 = vmax.f32 %v2618_v32, 0.0  ;;  %v3468_v26 = vld [vmem:[%s9005_s9 + $0x1a0] sm:$0xff]  ;;  %4163 = vmatprep.subr.bf16.mxu0 %v6220_v52 }
 0x3d4   : > { %v2613_v8 = vadd.f32 %v8180_v43, %v2612_v3  ;;  %v2816_v5 = vmax.f32 %v2610_v44, 0.0  ;;  %v3464_v44 = vld [vmem:[%s9005_s9 + $0x180] sm:$0xff]  ;;  %3811 = vmatpush1.bf16.msra.mxu1 %v6217_v59  ;;  %4164 = vmatpush1.bf16.msra.mxu0 %v6219_v38 }
 0x3d5   : > { %v2819_v30 = vmax.f32 %v2621_v9, 0.0  ;;  %v3465_v9 = vld [vmem:[%s9005_s9 + $0x188] sm:$0xff]  ;;  %v3472_v52 = vld [vmem:[%s9005_s9 + $0x1c0] sm:$0xff] }
 0x3d6   : > { %v2817_v13 = vmax.f32 %v2613_v8, 0.0 }
 0x3d7   : > { %v2873_v53 = vpack.c.bf16 %v2819_v30, %v2818_v51  ;;  %v6225_v51 = vcombine.low %v3464_v44, %v3468_v26  ;;  %v6226_v30 = vcombine.high %v3464_v44, %v3468_v26 }
 0x3d8   : > { %v2872_v14 = vpack.c.bf16 %v2817_v13, %v2816_v5  ;;  %v6462_v50 = vpop.f32.mrb[52].mxu1  ;;  %v3469_v5 = vld [vmem:[%s9005_s9 + $0x1a8] sm:$0xff] }
 0x3d9   : > { %v2634_v31 = vadd.f32 %v6462_v50, %v8180_v43  ;;  %v2625_v54 = vpop.f32.mrb[53].mxu1  ;;  %v6228_v50 = vcombine.high %v3465_v9, %v3469_v5  ;;  %3812 = vmatprep.subr.bf16.mxu1 %v6226_v30 }
 0x3da   : > { %v2626_v10 = vadd.f32 %v8180_v43, %v2625_v54  ;;  %v6463_v0 = vpop.f32.mrb[54].mxu1  ;;  %6528 = vmatprep.mubr.msk.bf16.mxu0 %vm1894_vm0, %v2872_v14  ;;  %v6227_v14 = vcombine.low %v3465_v9, %v3469_v5  ;;  %3813 = vmatpush1.bf16.msra.mxu1 %v6225_v51 }
 0x3db   : > { %v2637_v35 = vadd.f32 %v6463_v0, %v8180_v43  ;;  %v2628_v49 = vpop.f32.mrb[55].mxu1  ;;  %6529 = vmatmul.mubr.msk.bf16.gmra.mrb[48].mxu0 %vm1894_vm0, %v2873_v53  ;;  %v2822_v61 = vmax.f32 %v2634_v31, 0.0  ;;  %4165 = vmatprep.subr.bf16.mxu0 %v6228_v50  ;;  %v8344_v50 = vld [vmem:[%s9005_s9 + $0x18] sm:$0xff] }
 0x3dc   : > { %v2629_v24 = vadd.f32 %v8180_v43, %v2628_v49  ;;  %v2820_v18 = vmax.f32 %v2626_v10, 0.0  ;;  %4166 = vmatpush1.bf16.msra.mxu0 %v6227_v14  ;;  %v8339_v14 = vld [vmem:[%s9005_s9 + $0x30] sm:$0xff] }
 0x3dd   : > { %v2823_v42 = vmax.f32 %v2637_v35, 0.0 }
 0x3de   : > { %v2821_v46 = vmax.f32 %v2629_v24, 0.0 }
 0x3df   : > { %v2875_v19 = vpack.c.bf16 %v2823_v42, %v2822_v61 }
 0x3e0   : > { %v2874_v27 = vpack.c.bf16 %v2821_v46, %v2820_v18  ;;  %v6466_v63 = vpop.f32.mrb[56].mxu1 }
 0x3e1   : > { %v2650_v22 = vadd.f32 %v6466_v63, %v8180_v43  ;;  %v2641_v21 = vpop.f32.mrb[57].mxu1 }
 0x3e2   : > { %v2642_v33 = vadd.f32 %v8180_v43, %v2641_v21  ;;  %v6467_v37 = vpop.f32.mrb[58].mxu1  ;;  %6532 = vmatprep.mubr.msk.bf16.mxu0 %vm1894_vm0, %v2874_v27 }
 0x3e3   : > { %v2653_v23 = vadd.f32 %v6467_v37, %v8180_v43  ;;  %v2644_v60 = vpop.f32.mrb[59].mxu1  ;;  %6533 = vmatmul.mubr.msk.bf16.gmra.mrb[52].mxu0 %vm1894_vm0, %v2875_v19  ;;  %v2826_v45 = vmax.f32 %v2650_v22, 0.0 }
 0x3e4   : > { %v2645_v40 = vadd.f32 %v8180_v43, %v2644_v60  ;;  %v2824_v62 = vmax.f32 %v2642_v33, 0.0 }
 0x3e5   : > { %v2827_v39 = vmax.f32 %v2653_v23, 0.0 }
 0x3e6   : > { %v2825_v15 = vmax.f32 %v2645_v40, 0.0 }
 0x3e7   : > { %v2877_v17 = vpack.c.bf16 %v2827_v39, %v2826_v45 }
 0x3e8   : > { %v2876_v57 = vpack.c.bf16 %v2825_v15, %v2824_v62  ;;  %v6470_v2 = vpop.f32.mrb[60].mxu1 }
 0x3e9   : > { %v2666_v58 = vadd.f32 %v6470_v2, %v8180_v43  ;;  %v2657_v55 = vpop.f32.mrb[61].mxu1 }
 0x3ea   : > { %v2658_v41 = vadd.f32 %v8180_v43, %v2657_v55  ;;  %v6471_v47 = vpop.f32.mrb[62].mxu1  ;;  %6536 = vmatprep.mubr.msk.bf16.mxu0 %vm1894_vm0, %v2876_v57 }
 0x3eb   : > { %v2669_v11 = vadd.f32 %v6471_v47, %v8180_v43  ;;  %v2660_v29 = vpop.f32.mrb[63].mxu1  ;;  %6537 = vmatmul.mubr.msk.bf16.gmra.mrb[56].mxu0 %vm1894_vm0, %v2877_v17  ;;  %v2830_v6 = vmax.f32 %v2666_v58, 0.0 }
 0x3ec   : > { %v2661_v20 = vadd.f32 %v8180_v43, %v2660_v29  ;;  %v2828_v1 = vmax.f32 %v2658_v41, 0.0 }
 0x3ed   : > { %v2831_v7 = vmax.f32 %v2669_v11, 0.0 }
 0x3ee   : > { %v2829_v12 = vmax.f32 %v2661_v20, 0.0 }
 0x3ef   : > { %v2879_v34 = vpack.c.bf16 %v2831_v7, %v2830_v6 }
 0x3f0   : > { %v2878_v32 = vpack.c.bf16 %v2829_v12, %v2828_v1  ;;  %v6474_v4 = vpop.f32.mrb[64].mxu1 }
 0x3f1   : > { %v2682_v3 = vadd.f32 %v6474_v4, %v8180_v43  ;;  %v2673_v8 = vpop.f32.mrb[65].mxu1  ;;  %v3473_v4 = vld [vmem:[%s9005_s9 + $0x1c8] sm:$0xff] }
 0x3f2   : > { %v2674_v13 = vadd.f32 %v8180_v43, %v2673_v8  ;;  %v6475_v53 = vpop.f32.mrb[66].mxu1  ;;  %6540 = vmatprep.mubr.msk.bf16.mxu0 %vm1894_vm0, %v2878_v32  ;;  %v3476_v32 = vld [vmem:[%s9005_s9 + $0x1e0] sm:$0xff]  ;;  %v3477_v8 = vld [vmem:[%s9005_s9 + $0x1e8] sm:$0xff] }
 0x3f3   : > { %v2685_v31 = vadd.f32 %v6475_v53, %v8180_v43  ;;  %v2676_v54 = vpop.f32.mrb[67].mxu1  ;;  %6541 = vmatmul.mubr.msk.bf16.gmra.mrb[60].mxu0 %vm1894_vm0, %v2879_v34  ;;  %v2834_v0 = vmax.f32 %v2682_v3, 0.0  ;;  %v6233_v9 = vcombine.low %v3472_v52, %v3476_v32  ;;  %v6234_v3 = vcombine.high %v3472_v52, %v3476_v32  ;;  %v8334_v53 = vld [vmem:[%s9005_s9 + $0x10] sm:$0xff] }
 0x3f4   : > { %v2677_v10 = vadd.f32 %v8180_v43, %v2676_v54  ;;  %v2832_v49 = vmax.f32 %v2674_v13, 0.0  ;;  %v6235_v30 = vcombine.low %v3473_v4, %v3477_v8  ;;  %v6236_v5 = vcombine.high %v3473_v4, %v3477_v8 }
 0x3f5   : > { %v2835_v35 = vmax.f32 %v2685_v31, 0.0  ;;  %3814 = vmatprep.subr.bf16.mxu1 %v6234_v3  ;;  %v6181_v31 = vcombine.low %v8334_v53, %v8339_v14  ;;  %v6182_v54 = vcombine.high %v8334_v53, %v8339_v14  ;;  %v3442_v14 = vld [vmem:[%s9005_s9 + $0xd0] sm:$0xff] }
 0x3f6   : > { %v2833_v24 = vmax.f32 %v2677_v10, 0.0  ;;  %4167 = vmatprep.subr.bf16.mxu0 %v6236_v5  ;;  %3815 = vmatpush1.bf16.msra.mxu1 %v6233_v9  ;;  %v8353_v10 = vld [vmem:[%s9005_s9 + $0x38] sm:$0xff] }
 0x3f7   : > { %v2881_v61 = vpack.c.bf16 %v2835_v35, %v2834_v0  ;;  %4168 = vmatpush1.bf16.msra.mxu0 %v6235_v30  ;;  %v6183_v35 = vcombine.low %v8344_v50, %v8353_v10  ;;  %4506 = vmatprep.subr.bf16.mxu1 %v6182_v54  ;;  %v8384_v54 = vld [vmem:[%s9004_s8] ss:$0 sm:$0xff] }
 0x3f8   : > { %v2880_v42 = vpack.c.bf16 %v2833_v24, %v2832_v49  ;;  %v6478_v18 = vpop.f32.mrb[68].mxu1  ;;  %v6184_v49 = vcombine.high %v8344_v50, %v8353_v10  ;;  %v3446_v50 = vld [vmem:[%s9005_s9 + $0xf0] sm:$0xff]  ;;  %v3443_v10 = vld [vmem:[%s9005_s9 + $0xd8] sm:$0xff] }
 0x3f9   : > { %v2698_v46 = vadd.f32 %v6478_v18, %v8180_v43  ;;  %v2689_v19 = vpop.f32.mrb[69].mxu1 }
 0x3fa   : > { %v2690_v27 = vadd.f32 %v8180_v43, %v2689_v19  ;;  %v6479_v63 = vpop.f32.mrb[70].mxu1  ;;  %6544 = vmatprep.mubr.msk.bf16.mxu0 %vm1894_vm0, %v2880_v42  ;;  %4859 = vmatprep.subr.bf16.mxu0 %v6184_v49 }
 0x3fb   : > { %v2701_v22 = vadd.f32 %v6479_v63, %v8180_v43  ;;  %v2692_v21 = vpop.f32.mrb[71].mxu1  ;;  %6545 = vmatmul.mubr.msk.bf16.gmra.mrb[64].mxu0 %vm1894_vm0, %v2881_v61  ;;  %v2838_v37 = vmax.f32 %v2698_v46, 0.0 }
 0x3fc   : > { %v2693_v33 = vadd.f32 %v8180_v43, %v2692_v21  ;;  %v2836_v60 = vmax.f32 %v2690_v27, 0.0 }
 0x3fd   : > { %v2839_v23 = vmax.f32 %v2701_v22, 0.0 }
 0x3fe   : > { %v2837_v40 = vmax.f32 %v2693_v33, 0.0 }
 0x3ff   : > { %v2883_v45 = vpack.c.bf16 %v2839_v23, %v2838_v37 }
 0x400   : > { %v2882_v39 = vpack.c.bf16 %v2837_v40, %v2836_v60  ;;  %v6482_v62 = vpop.f32.mrb[72].mxu1 }
 0x401   : > { %v2714_v15 = vadd.f32 %v6482_v62, %v8180_v43  ;;  %v2705_v17 = vpop.f32.mrb[73].mxu1 }
 0x402   : > { %v2706_v57 = vadd.f32 %v8180_v43, %v2705_v17  ;;  %v6483_v2 = vpop.f32.mrb[74].mxu1  ;;  %6548 = vmatprep.mubr.msk.bf16.mxu0 %vm1894_vm0, %v2882_v39 }
 0x403   : > { %v2717_v58 = vadd.f32 %v6483_v2, %v8180_v43  ;;  %v2708_v55 = vpop.f32.mrb[75].mxu1  ;;  %6549 = vmatmul.mubr.msk.bf16.gmra.mrb[68].mxu0 %vm1894_vm0, %v2883_v45  ;;  %v2842_v47 = vmax.f32 %v2714_v15, 0.0 }
 0x404   : > { %v2709_v41 = vadd.f32 %v8180_v43, %v2708_v55  ;;  %v2840_v29 = vmax.f32 %v2706_v57, 0.0 }
 0x405   : > { %v2843_v11 = vmax.f32 %v2717_v58, 0.0 }
 0x406   : > { %v2841_v20 = vmax.f32 %v2709_v41, 0.0 }
 0x407   : > { %v2885_v6 = vpack.c.bf16 %v2843_v11, %v2842_v47 }
 0x408   : > { %v2884_v7 = vpack.c.bf16 %v2841_v20, %v2840_v29  ;;  %v6486_v48 = vpop.f32.mrb[76].mxu1 }
 0x409   : > { %v2730_v56 = vadd.f32 %v6486_v48, %v8180_v43  ;;  %v2721_v16 = vpop.f32.mrb[77].mxu1 }
 0x40a   : > { %v2722_v1 = vadd.f32 %v8180_v43, %v2721_v16  ;;  %v6487_v12 = vpop.f32.mrb[78].mxu1  ;;  %6552 = vmatprep.mubr.msk.bf16.mxu0 %vm1894_vm0, %v2884_v7 }
 0x40b   : > { %v2733_v59 = vadd.f32 %v6487_v12, %v8180_v43  ;;  %v2724_v36 = vpop.f32.mrb[79].mxu1  ;;  %6553 = vmatmul.mubr.msk.bf16.gmra.mrb[72].mxu0 %vm1894_vm0, %v2885_v6  ;;  %v2846_v34 = vmax.f32 %v2730_v56, 0.0 }
 0x40c   : > { %v2725_v28 = vadd.f32 %v8180_v43, %v2724_v36  ;;  %v2844_v44 = vmax.f32 %v2722_v1, 0.0 }
 0x40d   : > { %v2847_v38 = vmax.f32 %v2733_v59, 0.0 }
 0x40e   : > { %v2845_v26 = vmax.f32 %v2725_v28, 0.0 }
 0x40f   : > { %v2887_v51 = vpack.c.bf16 %v2847_v38, %v2846_v34 }
 0x410   : > { %v2886_v13 = vpack.c.bf16 %v2845_v26, %v2844_v44 }
 0x412   : > { %6556 = vmatprep.mubr.msk.bf16.mxu0 %vm1894_vm0, %v2886_v13 }
 0x413   : > { %6557 = vmatmul.mubr.msk.bf16.gmra.mrb[76].mxu0 %vm1894_vm0, %v2887_v51 }
 0x41f   : > { %v6490_v0 = vpop.f32.mrb[80].mxu1 }
 0x420   : > { %v2746_v24 = vadd.f32 %v6490_v0, %v8180_v43  ;;  %v2737_v61 = vpop.f32.mrb[81].mxu1 }
 0x421   : > { %v2738_v42 = vadd.f32 %v8180_v43, %v2737_v61  ;;  %v6491_v18 = vpop.f32.mrb[82].mxu1 }
 0x422   : > { %v2749_v46 = vadd.f32 %v6491_v18, %v8180_v43  ;;  %v2740_v19 = vpop.f32.mrb[83].mxu1  ;;  %v2850_v63 = vmax.f32 %v2746_v24, 0.0 }
 0x423   : > { %v2741_v27 = vadd.f32 %v8180_v43, %v2740_v19  ;;  %v2848_v21 = vmax.f32 %v2738_v42, 0.0 }
 0x424   : > { %v2851_v22 = vmax.f32 %v2749_v46, 0.0 }
 0x425   : > { %v2849_v33 = vmax.f32 %v2741_v27, 0.0 }
 0x426   : > { %v2889_v37 = vpack.c.bf16 %v2851_v22, %v2850_v63 }
 0x427   : > { %v2888_v23 = vpack.c.bf16 %v2849_v33, %v2848_v21 }
 0x429   : > { %6560 = vmatprep.mubr.msk.bf16.mxu0 %vm1894_vm0, %v2888_v23  ;;  %v3430_v23 = vld [vmem:[%s9005_s9 + $0x70] sm:$0xff] }
 0x42a   : > { %6561 = vmatmul.mubr.msk.bf16.gmra.mrb[80].mxu0 %vm1894_vm0, %v2889_v37  ;;  %v3426_v37 = vld [vmem:[%s9005_s9 + $0x50] sm:$0xff] }
 0x440   : > { %v6494_v60 = vpop.f32.mrb[84].mxu1 }
 0x441   : > { %v2762_v40 = vadd.f32 %v6494_v60, %v8180_v43  ;;  %v2753_v45 = vpop.f32.mrb[85].mxu1 }
 0x442   : > { %v2754_v39 = vadd.f32 %v8180_v43, %v2753_v45  ;;  %v6495_v62 = vpop.f32.mrb[86].mxu1  ;;  %v3431_v45 = vld [vmem:[%s9005_s9 + $0x78] sm:$0xff] }
 0x443   : > { %v2765_v15 = vadd.f32 %v6495_v62, %v8180_v43  ;;  %v2756_v17 = vpop.f32.mrb[87].mxu1  ;;  %v2854_v2 = vmax.f32 %v2762_v40, 0.0  ;;  %v3427_v40 = vld [vmem:[%s9005_s9 + $0x58] sm:$0xff] }
 0x444   : > { %v2757_v57 = vadd.f32 %v8180_v43, %v2756_v17  ;;  %v2852_v55 = vmax.f32 %v2754_v39, 0.0 }
 0x445   : > { %v2855_v58 = vmax.f32 %v2765_v15, 0.0 }
 0x446   : > { %v2853_v41 = vmax.f32 %v2757_v57, 0.0  ;;  %v6190_v57 = vcombine.high %v3426_v37, %v3430_v23 }
 0x447   : > { %v2891_v47 = vpack.c.bf16 %v2855_v58, %v2854_v2  ;;  %v3434_v2 = vld [vmem:[%s9005_s9 + $0x90] sm:$0xff] }
 0x448   : > { %v2890_v11 = vpack.c.bf16 %v2853_v41, %v2852_v55  ;;  %v3438_v58 = vld [vmem:[%s9005_s9 + $0xb0] sm:$0xff] }
 0x44a   : > { %6564 = vmatprep.mubr.msk.bf16.mxu0 %vm1894_vm0, %v2890_v11  ;;  %v3435_v11 = vld [vmem:[%s9005_s9 + $0x98] sm:$0xff] }
 0x44b   : > { %6565 = vmatmul.mubr.msk.bf16.gmra.mrb[84].mxu0 %vm1894_vm0, %v2891_v47  ;;  %v6192_v47 = vcombine.high %v3427_v40, %v3431_v45 }
 0x465   : > { %v6498_v29 = vpop.f32.mrb[88].mxu1 }
 0x466   : > { %v2778_v20 = vadd.f32 %v6498_v29, %v8180_v43  ;;  %v2769_v6 = vpop.f32.mrb[89].mxu1  ;;  %v3439_v29 = vld [vmem:[%s9005_s9 + $0xb8] sm:$0xff] }
 0x467   : > { %v2770_v7 = vadd.f32 %v8180_v43, %v2769_v6  ;;  %v6499_v48 = vpop.f32.mrb[90].mxu1 }
 0x468   : > { %v2781_v56 = vadd.f32 %v6499_v48, %v8180_v43  ;;  %v2772_v16 = vpop.f32.mrb[91].mxu1  ;;  %v2858_v12 = vmax.f32 %v2778_v20, 0.0 }
 0x469   : > { %v2773_v1 = vadd.f32 %v8180_v43, %v2772_v16  ;;  %v2856_v36 = vmax.f32 %v2770_v7, 0.0  ;;  %v6189_v7 = vcombine.low %v3426_v37, %v3430_v23  ;;  %v6198_v16 = vcombine.high %v3434_v2, %v3438_v58 }
 0x46a   : > { %v2859_v59 = vmax.f32 %v2781_v56, 0.0  ;;  %v6191_v56 = vcombine.low %v3427_v40, %v3431_v45 }
 0x46b   : > { %v2857_v28 = vmax.f32 %v2773_v1, 0.0 }
 0x46c   : > { %v2893_v34 = vpack.c.bf16 %v2859_v59, %v2858_v12  ;;  %v6200_v59 = vcombine.high %v3435_v11, %v3439_v29 }
 0x46d   : > { %v2892_v38 = vpack.c.bf16 %v2857_v28, %v2856_v36 }
 0x46f   : > { %6568 = vmatprep.mubr.msk.bf16.mxu0 %vm1894_vm0, %v2892_v38  ;;  %v6197_v38 = vcombine.low %v3434_v2, %v3438_v58 }
 0x470   : > { %6569 = vmatmul.mubr.msk.bf16.gmra.mrb[88].mxu0 %vm1894_vm0, %v2893_v34 }
 0x486   : > { %v6502_v52 = vpop.f32.mrb[92].mxu1 }
 0x487   : > { %v2794_v32 = vadd.f32 %v6502_v52, %v8180_v43  ;;  %v2785_v4 = vpop.f32.mrb[93].mxu1 }
 0x488   : > { %v2786_v44 = vadd.f32 %v8180_v43, %v2785_v4  ;;  %v6503_v26 = vpop.f32.mrb[94].mxu1  ;;  %v6199_v4 = vcombine.low %v3435_v11, %v3439_v29 }
 0x489   : > { %v2797_v9 = vadd.f32 %v6503_v26, %v8180_v43  ;;  %v2788_v3 = vpop.f32.mrb[95].mxu1  ;;  %v2862_v51 = vmax.f32 %v2794_v32, 0.0 }
 0x48a   : > { %v2789_v8 = vadd.f32 %v8180_v43, %v2788_v3  ;;  %v2860_v5 = vmax.f32 %v2786_v44, 0.0  ;;  %v6206_v44 = vcombine.high %v3442_v14, %v3446_v50 }
 0x48b   : > { %v2863_v30 = vmax.f32 %v2797_v9, 0.0 }
 0x48c   : > { %v2861_v13 = vmax.f32 %v2789_v8, 0.0  ;;  %v3450_v8 = vld [vmem:[%s9005_s9 + $0x110] sm:$0xff] }
 0x48d   : > { %v2895_v0 = vpack.c.bf16 %v2863_v30, %v2862_v51  ;;  %v3454_v51 = vld [vmem:[%s9005_s9 + $0x130] sm:$0xff] }
 0x48e   : > { %v2894_v49 = vpack.c.bf16 %v2861_v13, %v2860_v5  ;;  %v6514_v24 = vpop.f32.mrb[32].mxu0  ;;  %v3451_v13 = vld [vmem:[%s9005_s9 + $0x118] sm:$0xff] }
 0x48f   : > { %v3074_v61 = vadd.f32 %v6514_v24, %v8384_v54  ;;  %v3065_v42 = vpop.f32.mrb[33].mxu0  ;;  %v6205_v24 = vcombine.low %v3442_v14, %v3446_v50 }
 0x490   : > { %v3066_v18 = vadd.f32 %v8384_v54, %v3065_v42  ;;  %v6515_v46 = vpop.f32.mrb[34].mxu0  ;;  %6572 = vmatprep.mubr.msk.bf16.mxu0 %vm1894_vm0, %v2894_v49 }
 0x491   : > { %v3077_v43 = vadd.f32 %v6515_v46, %v8384_v54  ;;  %v3068_v19 = vpop.f32.mrb[35].mxu0  ;;  %6573 = vmatmul.mubr.msk.bf16.gmra.mrb[92].mxu0 %vm1894_vm0, %v2895_v0  ;;  %v3322_v63 = vmax.f32 %v3074_v61, 0.0  ;;  %v3455_v0 = vld [vmem:[%s9005_s9 + $0x138] sm:$0xff]  ;;  %v6214_v46 = vcombine.high %v3450_v8, %v3454_v51 }
 0x492   : > { %v3069_v27 = vadd.f32 %v8384_v54, %v3068_v19  ;;  %4185 = vmatprep.mubr.bf16.mxu0 %v9050_v25  ;;  %v3320_v21 = vmax.f32 %v3066_v18, 0.0  ;;  %v6215_v40 = vcombine.low %v3451_v13, %v3455_v0 }
 0x493   : > { %v3323_v22 = vmax.f32 %v3077_v43, 0.0 }
 0x494   : > { %v3321_v33 = vmax.f32 %v3069_v27, 0.0  ;;  %v6216_v27 = vcombine.high %v3451_v13, %v3455_v0 }
 0x495   : > { %v8399_v60 = vpack.c.bf16 %v3323_v22, %v3322_v63 }
 0x496   : > { %v8407_v39 = vpack.c.bf16 %v3321_v33, %v3320_v21  ;;  %v6518_v62 = vpop.f32.mrb[36].mxu0  ;;  %v6213_v33 = vcombine.low %v3450_v8, %v3454_v51  ;;  %v3463_v51 = vld [vmem:[%s9005_s9 + $0x178] sm:$0xff] }
 0x497   : > { %v3090_v15 = vadd.f32 %v6518_v62, %v8384_v54  ;;  %v3081_v17 = vpop.f32.mrb[37].mxu0 }
 0x498   : > { %v3082_v55 = vadd.f32 %v8384_v54, %v3081_v17  ;;  %v6519_v41 = vpop.f32.mrb[38].mxu0  ;;  %3833 = vmatmul.mubr.bf16.vlgmr.msra.gmra.mrb[96].mxu1 %v8407_v39 }
 0x499   : > { %v3093_v20 = vadd.f32 %v6519_v41, %v8384_v54  ;;  %v3084_v6 = vpop.f32.mrb[39].mxu0  ;;  %4186 = vmatmul.mubr.bf16.vlgmr.msra.gmra.mrb[96].mxu0 %v8407_v39  ;;  %4507 = vmatpush1.bf16.msra.mxu1 %v6181_v31  ;;  %v3326_v1 = vmax.f32 %v3090_v15, 0.0 }
 0x49a   : > { %v3085_v48 = vadd.f32 %v8384_v54, %v3084_v6  ;;  %4860 = vmatpush1.bf16.msra.mxu0 %v6183_v35  ;;  %3842 = vmatprep.mubr.bf16.mxu1 %v9050_v25  ;;  %v3324_v36 = vmax.f32 %v3082_v55, 0.0  ;;  %v3447_v35 = vld [vmem:[%s9005_s9 + $0xf8] sm:$0xff] }
 0x49b   : > { %v3327_v12 = vmax.f32 %v3093_v20, 0.0  ;;  %4195 = vmatprep.mubr.bf16.mxu0 %v9050_v25  ;;  %4508 = vmatprep.subr.bf16.mxu1 %v6190_v57  ;;  %v6208_v3 = vcombine.high %v3443_v10, %v3447_v35  ;;  %v6207_v18 = vcombine.low %v3443_v10, %v3447_v35 }
 0x49c   : > { %v3325_v53 = vmax.f32 %v3085_v48, 0.0  ;;  %4861 = vmatprep.subr.bf16.mxu0 %v6192_v47 }
 0x49d   : > { %v8441_v31 = vpack.c.bf16 %v3327_v12, %v3326_v1  ;;  %4509 = vmatpush1.bf16.msra.mxu1 %v6189_v7 }
 0x49e   : > { %v8449_v28 = vpack.c.bf16 %v3325_v53, %v3324_v36  ;;  %v6522_v34 = vpop.f32.mrb[40].mxu0  ;;  %4862 = vmatpush1.bf16.msra.mxu0 %v6191_v56  ;;  %4510 = vmatprep.subr.bf16.mxu1 %v6198_v16 }
 0x49f   : > { %v3106_v52 = vadd.f32 %v6522_v34, %v8384_v54  ;;  %v3097_v32 = vpop.f32.mrb[41].mxu0  ;;  %4863 = vmatprep.subr.bf16.mxu0 %v6200_v59 }
 0x4a0   : > { %v3098_v26 = vadd.f32 %v8384_v54, %v3097_v32  ;;  %v6523_v9 = vpop.f32.mrb[42].mxu0  ;;  %3843 = vmatmul.mubr.bf16.gmra.mrb[100].mxu1 %v8399_v60  ;;  %v3458_v32 = vld [vmem:[%s9005_s9 + $0x150] sm:$0xff] }
 0x4a1   : > { %v3109_v30 = vadd.f32 %v6523_v9, %v8384_v54  ;;  %v3100_v5 = vpop.f32.mrb[43].mxu0  ;;  %4196 = vmatmul.mubr.bf16.gmra.mrb[100].mxu0 %v8399_v60  ;;  %3852 = vmatprep.mubr.bf16.mxu1 %v9050_v25  ;;  %v3330_v61 = vmax.f32 %v3106_v52, 0.0 }
 0x4a2   : > { %v3101_v49 = vadd.f32 %v8384_v54, %v3100_v5  ;;  %4205 = vmatprep.mubr.bf16.mxu0 %v9050_v25  ;;  %4511 = vmatpush1.bf16.msra.mxu1 %v6197_v38  ;;  %v3328_v43 = vmax.f32 %v3098_v26, 0.0 }
 0x4a3   : > { %v3331_v42 = vmax.f32 %v3109_v30, 0.0  ;;  %4864 = vmatpush1.bf16.msra.mxu0 %v6199_v4  ;;  %4512 = vmatprep.subr.bf16.mxu1 %v6206_v44  ;;  %v3462_v4 = vld [vmem:[%s9005_s9 + $0x170] sm:$0xff]  ;;  %v3459_v44 = vld [vmem:[%s9005_s9 + $0x158] sm:$0xff] }
 0x4a4   : > { %v3329_v19 = vmax.f32 %v3101_v49, 0.0  ;;  %4865 = vmatprep.subr.bf16.mxu0 %v6208_v3  ;;  %v6221_v3 = vcombine.low %v3458_v32, %v3462_v4  ;;  %v6222_v8 = vcombine.high %v3458_v32, %v3462_v4  ;;  %v6223_v5 = vcombine.low %v3459_v44, %v3463_v51 }
 0x4a5   : > { %v8471_v63 = vpack.c.bf16 %v3331_v42, %v3330_v61  ;;  %v6224_v13 = vcombine.high %v3459_v44, %v3463_v51 }
 0x4a6   : > { %v8473_v22 = vpack.c.bf16 %v3329_v19, %v3328_v43  ;;  %v6526_v21 = vpop.f32.mrb[44].mxu0  ;;  %4513 = vmatpush1.bf16.msra.mxu1 %v6205_v24 }
 0x4a7   : > { %v3122_v37 = vadd.f32 %v6526_v21, %v8384_v54  ;;  %v3113_v23 = vpop.f32.mrb[45].mxu0  ;;  %4866 = vmatpush1.bf16.msra.mxu0 %v6207_v18  ;;  %4514 = vmatprep.subr.bf16.mxu1 %v6214_v46 }
 0x4a8   : > { %v3114_v45 = vadd.f32 %v8384_v54, %v3113_v23  ;;  %v6527_v62 = vpop.f32.mrb[46].mxu0  ;;  %3853 = vmatmul.mubr.bf16.gmra.mrb[104].mxu1 %v8449_v28  ;;  %4867 = vmatprep.subr.bf16.mxu0 %v6216_v27 }
 0x4a9   : > { %v3125_v15 = vadd.f32 %v6527_v62, %v8384_v54  ;;  %v3116_v17 = vpop.f32.mrb[47].mxu0  ;;  %4206 = vmatmul.mubr.bf16.gmra.mrb[104].mxu0 %v8449_v28  ;;  %3862 = vmatprep.mubr.bf16.mxu1 %v9050_v25  ;;  %v3334_v2 = vmax.f32 %v3122_v37, 0.0 }
 0x4aa   : > { %v3117_v57 = vadd.f32 %v8384_v54, %v3116_v17  ;;  %4215 = vmatprep.mubr.bf16.mxu0 %v9050_v25  ;;  %4515 = vmatpush1.bf16.msra.mxu1 %v6213_v33  ;;  %v3332_v55 = vmax.f32 %v3114_v45, 0.0 }
 0x4ab   : > { %v3335_v58 = vmax.f32 %v3125_v15, 0.0  ;;  %4868 = vmatpush1.bf16.msra.mxu0 %v6215_v40  ;;  %4516 = vmatprep.subr.bf16.mxu1 %v6222_v8 }
 0x4ac   : > { %v3333_v41 = vmax.f32 %v3117_v57, 0.0  ;;  %4869 = vmatprep.subr.bf16.mxu0 %v6224_v13 }
 0x4ad   : > { %v8483_v47 = vpack.c.bf16 %v3335_v58, %v3334_v2 }
 0x4ae   : > { %v8485_v11 = vpack.c.bf16 %v3333_v41, %v3332_v55  ;;  %v6530_v29 = vpop.f32.mrb[48].mxu0  ;;  %4517 = vmatpush1.bf16.msra.mxu1 %v6221_v3 }
 0x4af   : > { %v3138_v20 = vadd.f32 %v6530_v29, %v8384_v54  ;;  %v3129_v6 = vpop.f32.mrb[49].mxu0  ;;  %4870 = vmatpush1.bf16.msra.mxu0 %v6223_v5 }
 0x4b0   : > { %v3130_v7 = vadd.f32 %v8384_v54, %v3129_v6  ;;  %v6531_v48 = vpop.f32.mrb[50].mxu0  ;;  %3863 = vmatmul.mubr.bf16.gmra.mrb[108].mxu1 %v8441_v31 }
 0x4b1   : > { %v3141_v56 = vadd.f32 %v6531_v48, %v8384_v54  ;;  %v3132_v16 = vpop.f32.mrb[51].mxu0  ;;  %4216 = vmatmul.mubr.bf16.gmra.mrb[108].mxu0 %v8441_v31  ;;  %3872 = vmatprep.mubr.bf16.mxu1 %v9050_v25  ;;  %v3338_v12 = vmax.f32 %v3138_v20, 0.0 }
 0x4b2   : > { %v3133_v1 = vadd.f32 %v8384_v54, %v3132_v16  ;;  %4225 = vmatprep.mubr.bf16.mxu0 %v9050_v25  ;;  %v3336_v36 = vmax.f32 %v3130_v7, 0.0 }
 0x4b3   : > { %v3339_v59 = vmax.f32 %v3141_v56, 0.0 }
 0x4b4   : > { %v3337_v53 = vmax.f32 %v3133_v1, 0.0 }
 0x4b5   : > { %v8495_v14 = vpack.c.bf16 %v3339_v59, %v3338_v12 }
 0x4b6   : > { %v8497_v50 = vpack.c.bf16 %v3337_v53, %v3336_v36  ;;  %v6534_v10 = vpop.f32.mrb[52].mxu0 }
 0x4b7   : > { %v3154_v35 = vadd.f32 %v6534_v10, %v8384_v54  ;;  %v3145_v34 = vpop.f32.mrb[53].mxu0 }
 0x4b8   : > { %v3146_v38 = vadd.f32 %v8384_v54, %v3145_v34  ;;  %v6535_v52 = vpop.f32.mrb[54].mxu0  ;;  %3873 = vmatmul.mubr.bf16.gmra.mrb[112].mxu1 %v8473_v22 }
 0x4b9   : > { %v3157_v26 = vadd.f32 %v6535_v52, %v8384_v54  ;;  %v3148_v9 = vpop.f32.mrb[55].mxu0  ;;  %4226 = vmatmul.mubr.bf16.gmra.mrb[112].mxu0 %v8473_v22  ;;  %3882 = vmatprep.mubr.bf16.mxu1 %v9050_v25  ;;  %v3342_v0 = vmax.f32 %v3154_v35, 0.0 }
 0x4ba   : > { %v3149_v30 = vadd.f32 %v8384_v54, %v3148_v9  ;;  %4235 = vmatprep.mubr.bf16.mxu0 %v9050_v25  ;;  %v3340_v24 = vmax.f32 %v3146_v38, 0.0 }
 0x4bb   : > { %v3343_v49 = vmax.f32 %v3157_v26, 0.0 }
 0x4bc   : > { %v3341_v61 = vmax.f32 %v3149_v30, 0.0 }
 0x4bd   : > { %v8519_v42 = vpack.c.bf16 %v3343_v49, %v3342_v0  ;;  %v3466_v49 = vld [vmem:[%s9005_s9 + $0x190] sm:$0xff] }
 0x4be   : > { %v8521_v18 = vpack.c.bf16 %v3341_v61, %v3340_v24  ;;  %v6538_v46 = vpop.f32.mrb[56].mxu0  ;;  %v3470_v24 = vld [vmem:[%s9005_s9 + $0x1b0] sm:$0xff]  ;;  %v3467_v61 = vld [vmem:[%s9005_s9 + $0x198] sm:$0xff] }
 0x4bf   : > { %v3170_v43 = vadd.f32 %v6538_v46, %v8384_v54  ;;  %v3161_v19 = vpop.f32.mrb[57].mxu0 }
 0x4c0   : > { %v3162_v27 = vadd.f32 %v8384_v54, %v3161_v19  ;;  %v6539_v21 = vpop.f32.mrb[58].mxu0  ;;  %3883 = vmatmul.mubr.bf16.gmra.mrb[116].mxu1 %v8471_v63  ;;  %v6229_v19 = vcombine.low %v3466_v49, %v3470_v24 }
 0x4c1   : > { %v3173_v33 = vadd.f32 %v6539_v21, %v8384_v54  ;;  %v3164_v37 = vpop.f32.mrb[59].mxu0  ;;  %4236 = vmatmul.mubr.bf16.gmra.mrb[116].mxu0 %v8471_v63  ;;  %3892 = vmatprep.mubr.bf16.mxu1 %v9050_v25  ;;  %v3346_v40 = vmax.f32 %v3170_v43, 0.0  ;;  %v3471_v21 = vld [vmem:[%s9005_s9 + $0x1b8] sm:$0xff] }
 0x4c2   : > { %v3165_v23 = vadd.f32 %v8384_v54, %v3164_v37  ;;  %4245 = vmatprep.mubr.bf16.mxu0 %v9050_v25  ;;  %v3344_v62 = vmax.f32 %v3162_v27, 0.0  ;;  %v6230_v27 = vcombine.high %v3466_v49, %v3470_v24  ;;  %v6231_v37 = vcombine.low %v3467_v61, %v3471_v21  ;;  %v3474_v24 = vld [vmem:[%s9005_s9 + $0x1d0] sm:$0xff] }
 0x4c3   : > { %v3347_v45 = vmax.f32 %v3173_v33, 0.0 }
 0x4c4   : > { %v3345_v15 = vmax.f32 %v3165_v23, 0.0  ;;  %v6232_v23 = vcombine.high %v3467_v61, %v3471_v21  ;;  %4518 = vmatprep.subr.bf16.mxu1 %v6230_v27  ;;  %v3478_v61 = vld [vmem:[%s9005_s9 + $0x1f0] sm:$0xff]  ;;  %v3479_v27 = vld [vmem:[%s9005_s9 + $0x1f8] sm:$0xff] }
 0x4c5   : > { %v8531_v17 = vpack.c.bf16 %v3347_v45, %v3346_v40  ;;  %4519 = vmatpush1.bf16.msra.mxu1 %v6229_v19  ;;  %v6238_v19 = vcombine.high %v3474_v24, %v3478_v61 }
 0x4c6   : > { %v8533_v57 = vpack.c.bf16 %v3345_v15, %v3344_v62  ;;  %v6542_v2 = vpop.f32.mrb[60].mxu0  ;;  %4871 = vmatprep.subr.bf16.mxu0 %v6232_v23 }
 0x4c7   : > { %v3186_v58 = vadd.f32 %v6542_v2, %v8384_v54  ;;  %v3177_v55 = vpop.f32.mrb[61].mxu0  ;;  %4872 = vmatpush1.bf16.msra.mxu0 %v6231_v37  ;;  %4520 = vmatprep.subr.bf16.mxu1 %v6238_v19 }
 0x4c8   : > { %v3178_v41 = vadd.f32 %v8384_v54, %v3177_v55  ;;  %v6543_v29 = vpop.f32.mrb[62].mxu0  ;;  %3893 = vmatmul.mubr.bf16.gmra.mrb[120].mxu1 %v8485_v11 }
 0x4c9   : > { %v3189_v20 = vadd.f32 %v6543_v29, %v8384_v54  ;;  %v3180_v6 = vpop.f32.mrb[63].mxu0  ;;  %4246 = vmatmul.mubr.bf16.gmra.mrb[120].mxu0 %v8485_v11  ;;  %3902 = vmatprep.mubr.bf16.mxu1 %v9050_v25  ;;  %v3350_v48 = vmax.f32 %v3186_v58, 0.0 }
 0x4ca   : > { %v3181_v7 = vadd.f32 %v8384_v54, %v3180_v6  ;;  %4255 = vmatprep.mubr.bf16.mxu0 %v9050_v25  ;;  %v3348_v16 = vmax.f32 %v3178_v41, 0.0 }
 0x4cb   : > { %v3351_v56 = vmax.f32 %v3189_v20, 0.0 }
 0x4cc   : > { %v3349_v1 = vmax.f32 %v3181_v7, 0.0 }
 0x4cd   : > { %v8543_v12 = vpack.c.bf16 %v3351_v56, %v3350_v48 }
 0x4ce   : > { %v8545_v59 = vpack.c.bf16 %v3349_v1, %v3348_v16  ;;  %v6546_v36 = vpop.f32.mrb[64].mxu0 }
 0x4cf   : > { %v3202_v53 = vadd.f32 %v6546_v36, %v8384_v54  ;;  %v3193_v10 = vpop.f32.mrb[65].mxu0 }
 0x4d0   : > { %v3194_v35 = vadd.f32 %v8384_v54, %v3193_v10  ;;  %v6547_v34 = vpop.f32.mrb[66].mxu0  ;;  %3903 = vmatmul.mubr.bf16.gmra.mrb[124].mxu1 %v8483_v47 }
 0x4d1   : > { %v3205_v38 = vadd.f32 %v6547_v34, %v8384_v54  ;;  %v3196_v52 = vpop.f32.mrb[67].mxu0  ;;  %4256 = vmatmul.mubr.bf16.gmra.mrb[124].mxu0 %v8483_v47  ;;  %3912 = vmatprep.mubr.bf16.mxu1 %v9050_v25  ;;  %v3354_v4 = vmax.f32 %v3202_v53, 0.0 }
 0x4d2   : > { %v3197_v32 = vadd.f32 %v8384_v54, %v3196_v52  ;;  %4265 = vmatprep.mubr.bf16.mxu0 %v9050_v25  ;;  %v3352_v26 = vmax.f32 %v3194_v35, 0.0 }
 0x4d3   : > { %v3355_v44 = vmax.f32 %v3205_v38, 0.0 }
 0x4d4   : > { %v3353_v9 = vmax.f32 %v3197_v32, 0.0 }
 0x4d5   : > { %v8555_v3 = vpack.c.bf16 %v3355_v44, %v3354_v4 }
 0x4d6   : > { %v8557_v8 = vpack.c.bf16 %v3353_v9, %v3352_v26  ;;  %v6550_v51 = vpop.f32.mrb[68].mxu0 }
 0x4d7   : > { %v3218_v30 = vadd.f32 %v6550_v51, %v8384_v54  ;;  %v3209_v5 = vpop.f32.mrb[69].mxu0 }
 0x4d8   : > { %v3210_v13 = vadd.f32 %v8384_v54, %v3209_v5  ;;  %v6551_v0 = vpop.f32.mrb[70].mxu0  ;;  %3913 = vmatmul.mubr.bf16.gmra.mrb[128].mxu1 %v8497_v50 }
 0x4d9   : > { %v3221_v46 = vadd.f32 %v6551_v0, %v8384_v54  ;;  %v3212_v43 = vpop.f32.mrb[71].mxu0  ;;  %4266 = vmatmul.mubr.bf16.gmra.mrb[128].mxu0 %v8497_v50  ;;  %3922 = vmatprep.mubr.bf16.mxu1 %v9050_v25  ;;  %v3358_v40 = vmax.f32 %v3218_v30, 0.0 }
 0x4da   : > { %v3213_v33 = vadd.f32 %v8384_v54, %v3212_v43  ;;  %4275 = vmatprep.mubr.bf16.mxu0 %v9050_v25  ;;  %v3356_v62 = vmax.f32 %v3210_v13, 0.0  ;;  %v6237_v43 = vcombine.low %v3474_v24, %v3478_v61 }
 0x4db   : > { %v3359_v45 = vmax.f32 %v3221_v46, 0.0  ;;  %v3475_v46 = vld [vmem:[%s9005_s9 + $0x1d8] sm:$0xff] }
 0x4dc   : > { %v3357_v15 = vmax.f32 %v3213_v33, 0.0  ;;  %v6239_v21 = vcombine.low %v3475_v46, %v3479_v27  ;;  %v6240_v33 = vcombine.high %v3475_v46, %v3479_v27  ;;  %4521 = vmatpush1.bf16.msra.mxu1 %v6237_v43 }
 0x4dd   : > { %v8579_v2 = vpack.c.bf16 %v3359_v45, %v3358_v40 }
 0x4de   : > { %v8581_v58 = vpack.c.bf16 %v3357_v15, %v3356_v62  ;;  %v6554_v55 = vpop.f32.mrb[72].mxu0  ;;  %4873 = vmatprep.subr.bf16.mxu0 %v6240_v33 }
 0x4df   : > { %v3234_v41 = vadd.f32 %v6554_v55, %v8384_v54  ;;  %v3225_v29 = vpop.f32.mrb[73].mxu0  ;;  %4874 = vmatpush1.bf16.msra.mxu0 %v6239_v21 }
 0x4e0   : > { %v3226_v20 = vadd.f32 %v8384_v54, %v3225_v29  ;;  %v6555_v6 = vpop.f32.mrb[74].mxu0  ;;  %3923 = vmatmul.mubr.bf16.gmra.mrb[132].mxu1 %v8495_v14 }
 0x4e1   : > { %v3237_v7 = vadd.f32 %v6555_v6, %v8384_v54  ;;  %v3228_v48 = vpop.f32.mrb[75].mxu0  ;;  %4276 = vmatmul.mubr.bf16.gmra.mrb[132].mxu0 %v8495_v14  ;;  %3932 = vmatprep.mubr.bf16.mxu1 %v9050_v25  ;;  %v3362_v16 = vmax.f32 %v3234_v41, 0.0 }
 0x4e2   : > { %v3229_v56 = vadd.f32 %v8384_v54, %v3228_v48  ;;  %4285 = vmatprep.mubr.bf16.mxu0 %v9050_v25  ;;  %v3360_v36 = vmax.f32 %v3226_v20, 0.0 }
 0x4e3   : > { %v3363_v1 = vmax.f32 %v3237_v7, 0.0 }
 0x4e4   : > { %v3361_v53 = vmax.f32 %v3229_v56, 0.0 }
 0x4e5   : > { %v8591_v10 = vpack.c.bf16 %v3363_v1, %v3362_v16 }
 0x4e6   : > { %v8593_v35 = vpack.c.bf16 %v3361_v53, %v3360_v36  ;;  %v6558_v34 = vpop.f32.mrb[76].mxu0 }
 0x4e7   : > { %v3250_v38 = vadd.f32 %v6558_v34, %v8384_v54  ;;  %v3241_v52 = vpop.f32.mrb[77].mxu0 }
 0x4e8   : > { %v3242_v32 = vadd.f32 %v8384_v54, %v3241_v52  ;;  %v6559_v4 = vpop.f32.mrb[78].mxu0  ;;  %3933 = vmatmul.mubr.bf16.gmra.mrb[136].mxu1 %v8521_v18 }
 0x4e9   : > { %v3253_v44 = vadd.f32 %v6559_v4, %v8384_v54  ;;  %v3244_v26 = vpop.f32.mrb[79].mxu0  ;;  %4286 = vmatmul.mubr.bf16.gmra.mrb[136].mxu0 %v8521_v18  ;;  %3942 = vmatprep.mubr.bf16.mxu1 %v9050_v25  ;;  %v3366_v51 = vmax.f32 %v3250_v38, 0.0 }
 0x4ea   : > { %v3245_v9 = vadd.f32 %v8384_v54, %v3244_v26  ;;  %4295 = vmatprep.mubr.bf16.mxu0 %v9050_v25  ;;  %v3364_v5 = vmax.f32 %v3242_v32, 0.0 }
 0x4eb   : > { %v3367_v30 = vmax.f32 %v3253_v44, 0.0 }
 0x4ec   : > { %v3365_v13 = vmax.f32 %v3245_v9, 0.0 }
 0x4ed   : > { %v8603_v0 = vpack.c.bf16 %v3367_v30, %v3366_v51 }
 0x4ee   : > { %v8605_v49 = vpack.c.bf16 %v3365_v13, %v3364_v5 }
 0x4f0   : > { %3943 = vmatmul.mubr.bf16.gmra.mrb[140].mxu1 %v8519_v42 }
 0x4f1   : > { %4296 = vmatmul.mubr.bf16.gmra.mrb[140].mxu0 %v8519_v42  ;;  %3952 = vmatprep.mubr.bf16.mxu1 %v9050_v25 }
 0x4f2   : > { %4305 = vmatprep.mubr.bf16.mxu0 %v9050_v25 }
 0x4f8   : > { %3953 = vmatmul.mubr.bf16.gmra.mrb[144].mxu1 %v8533_v57 }
 0x4f9   : > { %4306 = vmatmul.mubr.bf16.gmra.mrb[144].mxu0 %v8533_v57  ;;  %3962 = vmatprep.mubr.bf16.mxu1 %v9050_v25 }
 0x4fa   : > { %4315 = vmatprep.mubr.bf16.mxu0 %v9050_v25 }
 0x4fd   : > { %v6562_v37 = vpop.f32.mrb[80].mxu0 }
 0x4fe   : > { %v3266_v23 = vadd.f32 %v6562_v37, %v8384_v54  ;;  %v3257_v40 = vpop.f32.mrb[81].mxu0 }
 0x4ff   : > { %v3258_v45 = vadd.f32 %v8384_v54, %v3257_v40  ;;  %v6563_v62 = vpop.f32.mrb[82].mxu0 }
 0x500   : > { %v3269_v15 = vadd.f32 %v6563_v62, %v8384_v54  ;;  %v3260_v55 = vpop.f32.mrb[83].mxu0  ;;  %3963 = vmatmul.mubr.bf16.gmra.mrb[148].mxu1 %v8531_v17  ;;  %v3370_v29 = vmax.f32 %v3266_v23, 0.0 }
 0x501   : > { %v3261_v41 = vadd.f32 %v8384_v54, %v3260_v55  ;;  %4316 = vmatmul.mubr.bf16.gmra.mrb[148].mxu0 %v8531_v17  ;;  %3972 = vmatprep.mubr.bf16.mxu1 %v9050_v25  ;;  %v3368_v6 = vmax.f32 %v3258_v45, 0.0 }
 0x502   : > { %v3371_v20 = vmax.f32 %v3269_v15, 0.0  ;;  %4325 = vmatprep.mubr.bf16.mxu0 %v9050_v25 }
 0x503   : > { %v3369_v7 = vmax.f32 %v3261_v41, 0.0 }
 0x504   : > { %v8635_v48 = vpack.c.bf16 %v3371_v20, %v3370_v29 }
 0x505   : > { %v8637_v56 = vpack.c.bf16 %v3369_v7, %v3368_v6 }
 0x508   : > { %3973 = vmatmul.mubr.bf16.gmra.mrb[152].mxu1 %v8545_v59 }
 0x509   : > { %4326 = vmatmul.mubr.bf16.gmra.mrb[152].mxu0 %v8545_v59  ;;  %3982 = vmatprep.mubr.bf16.mxu1 %v9050_v25 }
 0x50a   : > { %4335 = vmatprep.mubr.bf16.mxu0 %v9050_v25 }
 0x510   : > { %3983 = vmatmul.mubr.bf16.gmra.mrb[156].mxu1 %v8543_v12 }
 0x511   : > { %4336 = vmatmul.mubr.bf16.gmra.mrb[156].mxu0 %v8543_v12  ;;  %3992 = vmatprep.mubr.bf16.mxu1 %v9050_v25 }
 0x512   : > { %4345 = vmatprep.mubr.bf16.mxu0 %v9050_v25 }
 0x518   : > { %3993 = vmatmul.mubr.bf16.gmra.mrb[160].mxu1 %v8557_v8 }
 0x519   : > { %4346 = vmatmul.mubr.bf16.gmra.mrb[160].mxu0 %v8557_v8  ;;  %4002 = vmatprep.mubr.bf16.mxu1 %v9050_v25 }
 0x51a   : > { %4355 = vmatprep.mubr.bf16.mxu0 %v9050_v25 }
 0x51e   : > { %v6566_v16 = vpop.f32.mrb[84].mxu0 }
 0x51f   : > { %v3282_v1 = vadd.f32 %v6566_v16, %v8384_v54  ;;  %v3273_v36 = vpop.f32.mrb[85].mxu0 }
 0x520   : > { %v3274_v53 = vadd.f32 %v8384_v54, %v3273_v36  ;;  %v6567_v34 = vpop.f32.mrb[86].mxu0  ;;  %4003 = vmatmul.mubr.bf16.gmra.mrb[164].mxu1 %v8555_v3 }
 0x521   : > { %v3285_v38 = vadd.f32 %v6567_v34, %v8384_v54  ;;  %v3276_v52 = vpop.f32.mrb[87].mxu0  ;;  %4356 = vmatmul.mubr.bf16.gmra.mrb[164].mxu0 %v8555_v3  ;;  %4012 = vmatprep.mubr.bf16.mxu1 %v9050_v25  ;;  %v3374_v4 = vmax.f32 %v3282_v1, 0.0 }
 0x522   : > { %v3277_v32 = vadd.f32 %v8384_v54, %v3276_v52  ;;  %4365 = vmatprep.mubr.bf16.mxu0 %v9050_v25  ;;  %v3372_v26 = vmax.f32 %v3274_v53, 0.0 }
 0x523   : > { %v3375_v44 = vmax.f32 %v3285_v38, 0.0 }
 0x524   : > { %v3373_v9 = vmax.f32 %v3277_v32, 0.0 }
 0x525   : > { %v8659_v51 = vpack.c.bf16 %v3375_v44, %v3374_v4 }
 0x526   : > { %v8661_v30 = vpack.c.bf16 %v3373_v9, %v3372_v26 }
 0x528   : > { %4013 = vmatmul.mubr.bf16.gmra.mrb[168].mxu1 %v8581_v58 }
 0x529   : > { %4366 = vmatmul.mubr.bf16.gmra.mrb[168].mxu0 %v8581_v58  ;;  %4022 = vmatprep.mubr.bf16.mxu1 %v9050_v25 }
 0x52a   : > { %4375 = vmatprep.mubr.bf16.mxu0 %v9050_v25 }
 0x530   : > { %4023 = vmatmul.mubr.bf16.gmra.mrb[172].mxu1 %v8579_v2 }
 0x531   : > { %4376 = vmatmul.mubr.bf16.gmra.mrb[172].mxu0 %v8579_v2  ;;  %4032 = vmatprep.mubr.bf16.mxu1 %v9050_v25 }
 0x532   : > { %4385 = vmatprep.mubr.bf16.mxu0 %v9050_v25 }
 0x538   : > { %4033 = vmatmul.mubr.bf16.gmra.mrb[176].mxu1 %v8593_v35 }
 0x539   : > { %4386 = vmatmul.mubr.bf16.gmra.mrb[176].mxu0 %v8593_v35  ;;  %4042 = vmatprep.mubr.bf16.mxu1 %v9050_v25 }
 0x53a   : > { %4395 = vmatprep.mubr.bf16.mxu0 %v9050_v25 }
 0x540   : > { %4043 = vmatmul.mubr.bf16.gmra.mrb[180].mxu1 %v8591_v10 }
 0x541   : > { %4396 = vmatmul.mubr.bf16.gmra.mrb[180].mxu0 %v8591_v10  ;;  %4052 = vmatprep.mubr.bf16.mxu1 %v9050_v25 }
 0x542   : > { %4405 = vmatprep.mubr.bf16.mxu0 %v9050_v25 }
 0x543   : > { %v6570_v5 = vpop.f32.mrb[88].mxu0 }
 0x544   : > { %v3298_v13 = vadd.f32 %v6570_v5, %v8384_v54  ;;  %v3289_v24 = vpop.f32.mrb[89].mxu0 }
 0x545   : > { %v3290_v61 = vadd.f32 %v8384_v54, %v3289_v24  ;;  %v6571_v46 = vpop.f32.mrb[90].mxu0 }
 0x546   : > { %v3301_v43 = vadd.f32 %v6571_v46, %v8384_v54  ;;  %v3292_v19 = vpop.f32.mrb[91].mxu0  ;;  %v3378_v21 = vmax.f32 %v3298_v13, 0.0 }
 0x547   : > { %v3293_v27 = vadd.f32 %v8384_v54, %v3292_v19  ;;  %v3376_v37 = vmax.f32 %v3290_v61, 0.0 }
 0x548   : > { %v3379_v33 = vmax.f32 %v3301_v43, 0.0  ;;  %4053 = vmatmul.mubr.bf16.gmra.mrb[184].mxu1 %v8605_v49 }
 0x549   : > { %v3377_v23 = vmax.f32 %v3293_v27, 0.0  ;;  %4406 = vmatmul.mubr.bf16.gmra.mrb[184].mxu0 %v8605_v49  ;;  %4062 = vmatprep.mubr.bf16.mxu1 %v9050_v25 }
 0x54a   : > { %v8686_v40 = vpack.c.bf16 %v3379_v33, %v3378_v21  ;;  %4415 = vmatprep.mubr.bf16.mxu0 %v9050_v25 }
 0x54b   : > { %v8689_v45 = vpack.c.bf16 %v3377_v23, %v3376_v37 }
 0x550   : > { %4063 = vmatmul.mubr.bf16.gmra.mrb[188].mxu1 %v8603_v0 }
 0x551   : > { %4416 = vmatmul.mubr.bf16.gmra.mrb[188].mxu0 %v8603_v0  ;;  %4072 = vmatprep.mubr.bf16.mxu1 %v9050_v25 }
 0x552   : > { %4425 = vmatprep.mubr.bf16.mxu0 %v9050_v25 }
 0x558   : > { %4073 = vmatmul.mubr.bf16.gmra.mrb[192].mxu1 %v8637_v56 }
 0x559   : > { %4426 = vmatmul.mubr.bf16.gmra.mrb[192].mxu0 %v8637_v56  ;;  %4082 = vmatprep.mubr.bf16.mxu1 %v9050_v25 }
 0x55a   : > { %4435 = vmatprep.mubr.bf16.mxu0 %v9050_v25 }
 0x560   : > { %4083 = vmatmul.mubr.bf16.gmra.mrb[196].mxu1 %v8635_v48 }
 0x561   : > { %4436 = vmatmul.mubr.bf16.gmra.mrb[196].mxu0 %v8635_v48  ;;  %4092 = vmatprep.mubr.bf16.mxu1 %v9050_v25 }
 0x562   : > { %4445 = vmatprep.mubr.bf16.mxu0 %v9050_v25 }
 0x564   : > { %v6574_v62 = vpop.f32.mrb[92].mxu0 }
 0x565   : > { %v3314_v15 = vadd.f32 %v6574_v62, %v8384_v54  ;;  %v3305_v55 = vpop.f32.mrb[93].mxu0 }
 0x566   : > { %v3306_v41 = vadd.f32 %v8384_v54, %v3305_v55  ;;  %v6575_v29 = vpop.f32.mrb[94].mxu0 }
 0x567   : > { %v3317_v20 = vadd.f32 %v6575_v29, %v8384_v54  ;;  %v3308_v6 = vpop.f32.mrb[95].mxu0  ;;  %v3382_v16 = vmax.f32 %v3314_v15, 0.0 }
 0x568   : > { %v3309_v7 = vadd.f32 %v8384_v54, %v3308_v6  ;;  %4093 = vmatmul.mubr.bf16.gmra.mrb[200].mxu1 %v8661_v30  ;;  %v3380_v36 = vmax.f32 %v3306_v41, 0.0 }
 0x569   : > { %v3383_v1 = vmax.f32 %v3317_v20, 0.0  ;;  %4446 = vmatmul.mubr.bf16.gmra.mrb[200].mxu0 %v8661_v30  ;;  %4102 = vmatprep.mubr.bf16.mxu1 %v9050_v25 }
 0x56a   : > { %v3381_v53 = vmax.f32 %v3309_v7, 0.0  ;;  %4455 = vmatprep.mubr.bf16.mxu0 %v9050_v25 }
 0x56b   : > { %v8711_v34 = vpack.c.bf16 %v3383_v1, %v3382_v16  ;;  %v3834_v38 = vpop.f32.mrb[96].mxu1 }
 0x56c   : > { %v8713_v52 = vpack.c.bf16 %v3381_v53, %v3380_v36  ;;  %v3836_v32 = vpop.f32.mrb[97].mxu1  ;;  %v4187_v4 = vpop.f32.mrb[96].mxu0 }
 0x56d   : > { %v3838_v54 = vpop.f32.mrb[98].mxu1  ;;  %v4189_v44 = vpop.f32.mrb[97].mxu0 }
 0x56e   : > { %v5212_v26 = vmax.f32 %v3834_v38, %v3838_v54  ;;  %v3840_v9 = vpop.f32.mrb[99].mxu1  ;;  %v4191_v5 = vpop.f32.mrb[98].mxu0 }
 0x56f   : > { %v5275_v13 = vmax.f32 %v3836_v32, %v3840_v9  ;;  %v5338_v24 = vmax.f32 %v4187_v4, %v4191_v5  ;;  %v4193_v61 = vpop.f32.mrb[99].mxu0 }
 0x570   : > { %v5401_v46 = vmax.f32 %v4189_v44, %v4193_v61  ;;  %4103 = vmatmul.mubr.bf16.gmra.mrb[204].mxu1 %v8659_v51 }
 0x571   : > { %4456 = vmatmul.mubr.bf16.gmra.mrb[204].mxu0 %v8659_v51  ;;  %4112 = vmatprep.mubr.bf16.mxu1 %v9050_v25 }
 0x572   : > { %4465 = vmatprep.mubr.bf16.mxu0 %v9050_v25 }
 0x573   : > { %v3844_v43 = vpop.f32.mrb[100].mxu1 }
 0x574   : > { %v5213_v19 = vmax.f32 %v5212_v26, %v3844_v43  ;;  %v3846_v27 = vpop.f32.mrb[101].mxu1  ;;  %v4197_v21 = vpop.f32.mrb[100].mxu0 }
 0x575   : > { %v5276_v33 = vmax.f32 %v5275_v13, %v3846_v27  ;;  %v5339_v37 = vmax.f32 %v5338_v24, %v4197_v21  ;;  %v3848_v23 = vpop.f32.mrb[102].mxu1  ;;  %v4199_v62 = vpop.f32.mrb[101].mxu0 }
 0x576   : > { %v5214_v15 = vmax.f32 %v5213_v19, %v3848_v23  ;;  %v5402_v55 = vmax.f32 %v5401_v46, %v4199_v62  ;;  %v3850_v41 = vpop.f32.mrb[103].mxu1  ;;  %v4201_v29 = vpop.f32.mrb[102].mxu0 }
 0x577   : > { %v5277_v20 = vmax.f32 %v5276_v33, %v3850_v41  ;;  %v5340_v6 = vmax.f32 %v5339_v37, %v4201_v29  ;;  %v4203_v7 = vpop.f32.mrb[103].mxu0 }
 0x578   : > { %v5403_v16 = vmax.f32 %v5402_v55, %v4203_v7  ;;  %4113 = vmatmul.mubr.bf16.gmra.mrb[208].mxu1 %v8689_v45 }
 0x579   : > { %4466 = vmatmul.mubr.bf16.gmra.mrb[208].mxu0 %v8689_v45  ;;  %4122 = vmatprep.mubr.bf16.mxu1 %v9050_v25 }
 0x57a   : > { %4475 = vmatprep.mubr.bf16.mxu0 %v9050_v25 }
 0x57b   : > { %v3854_v1 = vpop.f32.mrb[104].mxu1 }
 0x57c   : > { %v5215_v36 = vmax.f32 %v5214_v15, %v3854_v1  ;;  %v3856_v53 = vpop.f32.mrb[105].mxu1  ;;  %v4207_v38 = vpop.f32.mrb[104].mxu0 }
 0x57d   : > { %v5278_v32 = vmax.f32 %v5277_v20, %v3856_v53  ;;  %v5341_v4 = vmax.f32 %v5340_v6, %v4207_v38  ;;  %v3858_v54 = vpop.f32.mrb[106].mxu1  ;;  %v4209_v44 = vpop.f32.mrb[105].mxu0 }
 0x57e   : > { %v5216_v26 = vmax.f32 %v5215_v36, %v3858_v54  ;;  %v5404_v9 = vmax.f32 %v5403_v16, %v4209_v44  ;;  %v3860_v5 = vpop.f32.mrb[107].mxu1  ;;  %v4211_v13 = vpop.f32.mrb[106].mxu0 }
 0x57f   : > { %v5279_v24 = vmax.f32 %v5278_v32, %v3860_v5  ;;  %v5342_v61 = vmax.f32 %v5341_v4, %v4211_v13  ;;  %v4213_v46 = vpop.f32.mrb[107].mxu0 }
 0x580   : > { %v5405_v43 = vmax.f32 %v5404_v9, %v4213_v46  ;;  %4123 = vmatmul.mubr.bf16.gmra.mrb[212].mxu1 %v8686_v40 }
 0x581   : > { %4476 = vmatmul.mubr.bf16.gmra.mrb[212].mxu0 %v8686_v40  ;;  %4132 = vmatprep.mubr.bf16.mxu1 %v9050_v25 }
 0x582   : > { %4485 = vmatprep.mubr.bf16.mxu0 %v9050_v25 }
 0x583   : > { %v3864_v19 = vpop.f32.mrb[108].mxu1 }
 0x584   : > { %v5217_v27 = vmax.f32 %v5216_v26, %v3864_v19  ;;  %v3866_v21 = vpop.f32.mrb[109].mxu1  ;;  %v4217_v33 = vpop.f32.mrb[108].mxu0 }
 0x585   : > { %v5280_v37 = vmax.f32 %v5279_v24, %v3866_v21  ;;  %v5343_v23 = vmax.f32 %v5342_v61, %v4217_v33  ;;  %v3868_v62 = vpop.f32.mrb[110].mxu1  ;;  %v4219_v15 = vpop.f32.mrb[109].mxu0 }
 0x586   : > { %v5218_v55 = vmax.f32 %v5217_v27, %v3868_v62  ;;  %v5406_v41 = vmax.f32 %v5405_v43, %v4219_v15  ;;  %v3870_v29 = vpop.f32.mrb[111].mxu1  ;;  %v4221_v20 = vpop.f32.mrb[110].mxu0 }
 0x587   : > { %v5281_v6 = vmax.f32 %v5280_v37, %v3870_v29  ;;  %v5344_v7 = vmax.f32 %v5343_v23, %v4221_v20  ;;  %v4223_v16 = vpop.f32.mrb[111].mxu0 }
 0x588   : > { %v5407_v1 = vmax.f32 %v5406_v41, %v4223_v16  ;;  %4133 = vmatmul.mubr.bf16.gmra.mrb[216].mxu1 %v8713_v52 }
 0x589   : > { %4486 = vmatmul.mubr.bf16.gmra.mrb[216].mxu0 %v8713_v52  ;;  %4142 = vmatprep.mubr.bf16.mxu1 %v9050_v25 }
 0x58a   : > { %4495 = vmatprep.mubr.bf16.mxu0 %v9050_v25 }
 0x58b   : > { %v3874_v36 = vpop.f32.mrb[112].mxu1 }
 0x58c   : > { %v5219_v53 = vmax.f32 %v5218_v55, %v3874_v36  ;;  %v3876_v38 = vpop.f32.mrb[113].mxu1  ;;  %v4227_v32 = vpop.f32.mrb[112].mxu0 }
 0x58d   : > { %v5282_v4 = vmax.f32 %v5281_v6, %v3876_v38  ;;  %v5345_v54 = vmax.f32 %v5344_v7, %v4227_v32  ;;  %v3878_v44 = vpop.f32.mrb[114].mxu1  ;;  %v4229_v26 = vpop.f32.mrb[113].mxu0 }
 0x58e   : > { %v5220_v9 = vmax.f32 %v5219_v53, %v3878_v44  ;;  %v5408_v5 = vmax.f32 %v5407_v1, %v4229_v26  ;;  %v3880_v13 = vpop.f32.mrb[115].mxu1  ;;  %v4231_v24 = vpop.f32.mrb[114].mxu0 }
 0x58f   : > { %v5283_v61 = vmax.f32 %v5282_v4, %v3880_v13  ;;  %v5346_v46 = vmax.f32 %v5345_v54, %v4231_v24  ;;  %v4233_v43 = vpop.f32.mrb[115].mxu0 }
 0x590   : > { %v5409_v19 = vmax.f32 %v5408_v5, %v4233_v43  ;;  %4143 = vmatmul.mubr.bf16.gmra.mrb[220].mxu1 %v8711_v34 }
 0x591   : > { %4496 = vmatmul.mubr.bf16.gmra.mrb[220].mxu0 %v8711_v34  ;;  %4538 = vmatprep.mubr.bf16.mxu1 %v9050_v25 }
 0x592   : > { %4891 = vmatprep.mubr.bf16.mxu0 %v9050_v25 }
 0x593   : > { %v3884_v27 = vpop.f32.mrb[116].mxu1 }
 0x594   : > { %v5221_v21 = vmax.f32 %v5220_v9, %v3884_v27  ;;  %v3886_v33 = vpop.f32.mrb[117].mxu1  ;;  %v4237_v37 = vpop.f32.mrb[116].mxu0 }
 0x595   : > { %v5284_v23 = vmax.f32 %v5283_v61, %v3886_v33  ;;  %v5347_v62 = vmax.f32 %v5346_v46, %v4237_v37  ;;  %v3888_v15 = vpop.f32.mrb[118].mxu1  ;;  %v4239_v55 = vpop.f32.mrb[117].mxu0 }
 0x596   : > { %v5222_v41 = vmax.f32 %v5221_v21, %v3888_v15  ;;  %v5410_v29 = vmax.f32 %v5409_v19, %v4239_v55  ;;  %v3890_v20 = vpop.f32.mrb[119].mxu1  ;;  %v4241_v6 = vpop.f32.mrb[118].mxu0 }
 0x597   : > { %v5285_v7 = vmax.f32 %v5284_v23, %v3890_v20  ;;  %v5348_v16 = vmax.f32 %v5347_v62, %v4241_v6  ;;  %v4243_v1 = vpop.f32.mrb[119].mxu0 }
 0x598   : > { %v5411_v36 = vmax.f32 %v5410_v29, %v4243_v1  ;;  %4539 = vmatmul.mubr.bf16.vlgmr.msra.gmra.mrb[224].mxu1 %v8407_v39 }
 0x599   : > { %4892 = vmatmul.mubr.bf16.vlgmr.msra.gmra.mrb[224].mxu0 %v8407_v39  ;;  %4548 = vmatprep.mubr.bf16.mxu1 %v9050_v25 }
 0x59a   : > { %4901 = vmatprep.mubr.bf16.mxu0 %v9050_v25 }
 0x59b   : > { %v3894_v53 = vpop.f32.mrb[120].mxu1 }
 0x59c   : > { %v5223_v38 = vmax.f32 %v5222_v41, %v3894_v53  ;;  %v3896_v32 = vpop.f32.mrb[121].mxu1  ;;  %v4247_v4 = vpop.f32.mrb[120].mxu0 }
 0x59d   : > { %v5286_v54 = vmax.f32 %v5285_v7, %v3896_v32  ;;  %v5349_v44 = vmax.f32 %v5348_v16, %v4247_v4  ;;  %v3898_v26 = vpop.f32.mrb[122].mxu1  ;;  %v4249_v9 = vpop.f32.mrb[121].mxu0 }
 0x59e   : > { %v5224_v5 = vmax.f32 %v5223_v38, %v3898_v26  ;;  %v5412_v13 = vmax.f32 %v5411_v36, %v4249_v9  ;;  %v3900_v24 = vpop.f32.mrb[123].mxu1  ;;  %v4251_v61 = vpop.f32.mrb[122].mxu0 }
 0x59f   : > { %v5287_v46 = vmax.f32 %v5286_v54, %v3900_v24  ;;  %v5350_v43 = vmax.f32 %v5349_v44, %v4251_v61  ;;  %v4253_v19 = vpop.f32.mrb[123].mxu0 }
 0x5a0   : > { %v5413_v39 = vmax.f32 %v5412_v13, %v4253_v19  ;;  %4549 = vmatmul.mubr.bf16.gmra.mrb[228].mxu1 %v8399_v60 }
 0x5a1   : > { %4902 = vmatmul.mubr.bf16.gmra.mrb[228].mxu0 %v8399_v60  ;;  %4558 = vmatprep.mubr.bf16.mxu1 %v9050_v25 }
 0x5a2   : > { %4911 = vmatprep.mubr.bf16.mxu0 %v9050_v25 }
 0x5a3   : > { %v3904_v27 = vpop.f32.mrb[124].mxu1 }
 0x5a4   : > { %v5225_v21 = vmax.f32 %v5224_v5, %v3904_v27  ;;  %v3906_v33 = vpop.f32.mrb[125].mxu1  ;;  %v4257_v37 = vpop.f32.mrb[124].mxu0 }
 0x5a5   : > { %v5288_v23 = vmax.f32 %v5287_v46, %v3906_v33  ;;  %v5351_v62 = vmax.f32 %v5350_v43, %v4257_v37  ;;  %v3908_v15 = vpop.f32.mrb[126].mxu1  ;;  %v4259_v55 = vpop.f32.mrb[125].mxu0 }
 0x5a6   : > { %v5226_v41 = vmax.f32 %v5225_v21, %v3908_v15  ;;  %v5414_v29 = vmax.f32 %v5413_v39, %v4259_v55  ;;  %v3910_v20 = vpop.f32.mrb[127].mxu1  ;;  %v4261_v6 = vpop.f32.mrb[126].mxu0 }
 0x5a7   : > { %v5289_v7 = vmax.f32 %v5288_v23, %v3910_v20  ;;  %v5352_v16 = vmax.f32 %v5351_v62, %v4261_v6  ;;  %v4263_v1 = vpop.f32.mrb[127].mxu0 }
 0x5a8   : > { %v5415_v60 = vmax.f32 %v5414_v29, %v4263_v1  ;;  %4559 = vmatmul.mubr.bf16.gmra.mrb[232].mxu1 %v8449_v28 }
 0x5a9   : > { %4912 = vmatmul.mubr.bf16.gmra.mrb[232].mxu0 %v8449_v28  ;;  %4568 = vmatprep.mubr.bf16.mxu1 %v9050_v25 }
 0x5aa   : > { %4921 = vmatprep.mubr.bf16.mxu0 %v9050_v25 }
 0x5ab   : > { %v3914_v36 = vpop.f32.mrb[128].mxu1 }
 0x5ac   : > { %v5227_v53 = vmax.f32 %v5226_v41, %v3914_v36  ;;  %v3916_v38 = vpop.f32.mrb[129].mxu1  ;;  %v4267_v32 = vpop.f32.mrb[128].mxu0 }
 0x5ad   : > { %v5290_v4 = vmax.f32 %v5289_v7, %v3916_v38  ;;  %v5353_v54 = vmax.f32 %v5352_v16, %v4267_v32  ;;  %v3918_v44 = vpop.f32.mrb[130].mxu1  ;;  %v4269_v26 = vpop.f32.mrb[129].mxu0 }
 0x5ae   : > { %v5228_v9 = vmax.f32 %v5227_v53, %v3918_v44  ;;  %v5416_v5 = vmax.f32 %v5415_v60, %v4269_v26  ;;  %v3920_v13 = vpop.f32.mrb[131].mxu1  ;;  %v4271_v24 = vpop.f32.mrb[130].mxu0 }
 0x5af   : > { %v5291_v61 = vmax.f32 %v5290_v4, %v3920_v13  ;;  %v5354_v46 = vmax.f32 %v5353_v54, %v4271_v24  ;;  %v4273_v43 = vpop.f32.mrb[131].mxu0 }
 0x5b0   : > { %v5417_v28 = vmax.f32 %v5416_v5, %v4273_v43  ;;  %4569 = vmatmul.mubr.bf16.gmra.mrb[236].mxu1 %v8441_v31 }
 0x5b1   : > { %4922 = vmatmul.mubr.bf16.gmra.mrb[236].mxu0 %v8441_v31  ;;  %4578 = vmatprep.mubr.bf16.mxu1 %v9050_v25 }
 0x5b2   : > { %4931 = vmatprep.mubr.bf16.mxu0 %v9050_v25 }
 0x5b3   : > { %v3924_v19 = vpop.f32.mrb[132].mxu1 }
 0x5b4   : > { %v5229_v39 = vmax.f32 %v5228_v9, %v3924_v19  ;;  %v3926_v27 = vpop.f32.mrb[133].mxu1  ;;  %v4277_v21 = vpop.f32.mrb[132].mxu0 }
 0x5b5   : > { %v5292_v33 = vmax.f32 %v5291_v61, %v3926_v27  ;;  %v5355_v37 = vmax.f32 %v5354_v46, %v4277_v21  ;;  %v3928_v23 = vpop.f32.mrb[134].mxu1  ;;  %v4279_v62 = vpop.f32.mrb[133].mxu0 }
 0x5b6   : > { %v5230_v15 = vmax.f32 %v5229_v39, %v3928_v23  ;;  %v5418_v55 = vmax.f32 %v5417_v28, %v4279_v62  ;;  %v3930_v41 = vpop.f32.mrb[135].mxu1  ;;  %v4281_v29 = vpop.f32.mrb[134].mxu0 }
 0x5b7   : > { %v5293_v20 = vmax.f32 %v5292_v33, %v3930_v41  ;;  %v5356_v6 = vmax.f32 %v5355_v37, %v4281_v29  ;;  %v4283_v7 = vpop.f32.mrb[135].mxu0 }
 0x5b8   : > { %v5419_v31 = vmax.f32 %v5418_v55, %v4283_v7  ;;  %4579 = vmatmul.mubr.bf16.gmra.mrb[240].mxu1 %v8473_v22 }
 0x5b9   : > { %4932 = vmatmul.mubr.bf16.gmra.mrb[240].mxu0 %v8473_v22  ;;  %4588 = vmatprep.mubr.bf16.mxu1 %v9050_v25 }
 0x5ba   : > { %4941 = vmatprep.mubr.bf16.mxu0 %v9050_v25 }
 0x5bb   : > { %v3934_v16 = vpop.f32.mrb[136].mxu1 }
 0x5bc   : > { %v5231_v1 = vmax.f32 %v5230_v15, %v3934_v16  ;;  %v3936_v60 = vpop.f32.mrb[137].mxu1  ;;  %v4287_v36 = vpop.f32.mrb[136].mxu0 }
 0x5bd   : > { %v5294_v53 = vmax.f32 %v5293_v20, %v3936_v60  ;;  %v5357_v38 = vmax.f32 %v5356_v6, %v4287_v36  ;;  %v3938_v32 = vpop.f32.mrb[138].mxu1  ;;  %v4289_v4 = vpop.f32.mrb[137].mxu0 }
 0x5be   : > { %v5232_v54 = vmax.f32 %v5231_v1, %v3938_v32  ;;  %v5420_v44 = vmax.f32 %v5419_v31, %v4289_v4  ;;  %v3940_v26 = vpop.f32.mrb[139].mxu1  ;;  %v4291_v9 = vpop.f32.mrb[138].mxu0 }
 0x5bf   : > { %v5295_v5 = vmax.f32 %v5294_v53, %v3940_v26  ;;  %v5358_v13 = vmax.f32 %v5357_v38, %v4291_v9  ;;  %v4293_v24 = vpop.f32.mrb[139].mxu0 }
 0x5c0   : > { %v5421_v22 = vmax.f32 %v5420_v44, %v4293_v24  ;;  %4589 = vmatmul.mubr.bf16.gmra.mrb[244].mxu1 %v8471_v63 }
 0x5c1   : > { %4942 = vmatmul.mubr.bf16.gmra.mrb[244].mxu0 %v8471_v63  ;;  %4598 = vmatprep.mubr.bf16.mxu1 %v9050_v25 }
 0x5c2   : > { %4951 = vmatprep.mubr.bf16.mxu0 %v9050_v25 }
 0x5c3   : > { %v3944_v61 = vpop.f32.mrb[140].mxu1 }
 0x5c4   : > { %v5233_v46 = vmax.f32 %v5232_v54, %v3944_v61  ;;  %v3946_v43 = vpop.f32.mrb[141].mxu1  ;;  %v4297_v28 = vpop.f32.mrb[140].mxu0 }
 0x5c5   : > { %v5296_v19 = vmax.f32 %v5295_v5, %v3946_v43  ;;  %v5359_v39 = vmax.f32 %v5358_v13, %v4297_v28  ;;  %v3948_v27 = vpop.f32.mrb[142].mxu1  ;;  %v4299_v21 = vpop.f32.mrb[141].mxu0 }
 0x5c6   : > { %v5234_v33 = vmax.f32 %v5233_v46, %v3948_v27  ;;  %v5422_v37 = vmax.f32 %v5421_v22, %v4299_v21  ;;  %v3950_v23 = vpop.f32.mrb[143].mxu1  ;;  %v4301_v62 = vpop.f32.mrb[142].mxu0 }
 0x5c7   : > { %v5297_v15 = vmax.f32 %v5296_v19, %v3950_v23  ;;  %v5360_v55 = vmax.f32 %v5359_v39, %v4301_v62  ;;  %v4303_v41 = vpop.f32.mrb[143].mxu0 }
 0x5c8   : > { %v5423_v63 = vmax.f32 %v5422_v37, %v4303_v41  ;;  %4599 = vmatmul.mubr.bf16.gmra.mrb[248].mxu1 %v8485_v11 }
 0x5c9   : > { %4952 = vmatmul.mubr.bf16.gmra.mrb[248].mxu0 %v8485_v11  ;;  %4608 = vmatprep.mubr.bf16.mxu1 %v9050_v25 }
 0x5ca   : > { %4961 = vmatprep.mubr.bf16.mxu0 %v9050_v25 }
 0x5cb   : > { %v3954_v29 = vpop.f32.mrb[144].mxu1 }
 0x5cc   : > { %v5235_v20 = vmax.f32 %v5234_v33, %v3954_v29  ;;  %v3956_v6 = vpop.f32.mrb[145].mxu1  ;;  %v4307_v7 = vpop.f32.mrb[144].mxu0 }
 0x5cd   : > { %v5298_v31 = vmax.f32 %v5297_v15, %v3956_v6  ;;  %v5361_v16 = vmax.f32 %v5360_v55, %v4307_v7  ;;  %v3958_v1 = vpop.f32.mrb[146].mxu1  ;;  %v4309_v60 = vpop.f32.mrb[145].mxu0 }
 0x5ce   : > { %v5236_v36 = vmax.f32 %v5235_v20, %v3958_v1  ;;  %v5424_v53 = vmax.f32 %v5423_v63, %v4309_v60  ;;  %v3960_v38 = vpop.f32.mrb[147].mxu1  ;;  %v4311_v32 = vpop.f32.mrb[146].mxu0 }
 0x5cf   : > { %v5299_v4 = vmax.f32 %v5298_v31, %v3960_v38  ;;  %v5362_v54 = vmax.f32 %v5361_v16, %v4311_v32  ;;  %v4313_v44 = vpop.f32.mrb[147].mxu0 }
 0x5d0   : > { %v5425_v11 = vmax.f32 %v5424_v53, %v4313_v44  ;;  %4609 = vmatmul.mubr.bf16.gmra.mrb[252].mxu1 %v8483_v47 }
 0x5d1   : > { %4962 = vmatmul.mubr.bf16.gmra.mrb[252].mxu0 %v8483_v47  ;;  %4618 = vmatprep.mubr.bf16.mxu1 %v9050_v25 }
 0x5d2   : > { %4971 = vmatprep.mubr.bf16.mxu0 %v9050_v25 }
 0x5d3   : > { %v3964_v26 = vpop.f32.mrb[148].mxu1 }
 0x5d4   : > { %v5237_v9 = vmax.f32 %v5236_v36, %v3964_v26  ;;  %v3966_v5 = vpop.f32.mrb[149].mxu1  ;;  %v4317_v13 = vpop.f32.mrb[148].mxu0 }
 0x5d5   : > { %v5300_v24 = vmax.f32 %v5299_v4, %v3966_v5  ;;  %v5363_v22 = vmax.f32 %v5362_v54, %v4317_v13  ;;  %v3968_v61 = vpop.f32.mrb[150].mxu1  ;;  %v4319_v46 = vpop.f32.mrb[149].mxu0 }
 0x5d6   : > { %v5238_v43 = vmax.f32 %v5237_v9, %v3968_v61  ;;  %v5426_v28 = vmax.f32 %v5425_v11, %v4319_v46  ;;  %v3970_v19 = vpop.f32.mrb[151].mxu1  ;;  %v4321_v39 = vpop.f32.mrb[150].mxu0 }
 0x5d7   : > { %v5301_v27 = vmax.f32 %v5300_v24, %v3970_v19  ;;  %v5364_v21 = vmax.f32 %v5363_v22, %v4321_v39  ;;  %v4323_v33 = vpop.f32.mrb[151].mxu0 }
 0x5d8   : > { %v5427_v47 = vmax.f32 %v5426_v28, %v4323_v33  ;;  %4619 = vmatmul.mubr.bf16.gmra.mrb[0].mxu1 %v8497_v50 }
 0x5d9   : > { %4972 = vmatmul.mubr.bf16.gmra.mrb[0].mxu0 %v8497_v50  ;;  %4628 = vmatprep.mubr.bf16.mxu1 %v9050_v25 }
 0x5da   : > { %4981 = vmatprep.mubr.bf16.mxu0 %v9050_v25 }
 0x5db   : > { %v3974_v37 = vpop.f32.mrb[152].mxu1 }
 0x5dc   : > { %v5239_v23 = vmax.f32 %v5238_v43, %v3974_v37  ;;  %v3976_v62 = vpop.f32.mrb[153].mxu1  ;;  %v4327_v15 = vpop.f32.mrb[152].mxu0 }
 0x5dd   : > { %v5302_v55 = vmax.f32 %v5301_v27, %v3976_v62  ;;  %v5365_v41 = vmax.f32 %v5364_v21, %v4327_v15  ;;  %v3978_v63 = vpop.f32.mrb[154].mxu1  ;;  %v4329_v29 = vpop.f32.mrb[153].mxu0 }
 0x5de   : > { %v5240_v20 = vmax.f32 %v5239_v23, %v3978_v63  ;;  %v5428_v6 = vmax.f32 %v5427_v47, %v4329_v29  ;;  %v3980_v7 = vpop.f32.mrb[155].mxu1  ;;  %v4331_v31 = vpop.f32.mrb[154].mxu0 }
 0x5df   : > { %v5303_v16 = vmax.f32 %v5302_v55, %v3980_v7  ;;  %v5366_v1 = vmax.f32 %v5365_v41, %v4331_v31  ;;  %v4333_v60 = vpop.f32.mrb[155].mxu0 }
 0x5e0   : > { %v5429_v50 = vmax.f32 %v5428_v6, %v4333_v60  ;;  %4629 = vmatmul.mubr.bf16.gmra.mrb[4].mxu1 %v8495_v14 }
 0x5e1   : > { %4982 = vmatmul.mubr.bf16.gmra.mrb[4].mxu0 %v8495_v14  ;;  %4638 = vmatprep.mubr.bf16.mxu1 %v9050_v25 }
 0x5e2   : > { %4991 = vmatprep.mubr.bf16.mxu0 %v9050_v25 }
 0x5e3   : > { %v3984_v36 = vpop.f32.mrb[156].mxu1 }
 0x5e4   : > { %v5241_v53 = vmax.f32 %v5240_v20, %v3984_v36  ;;  %v3986_v38 = vpop.f32.mrb[157].mxu1  ;;  %v4337_v32 = vpop.f32.mrb[156].mxu0 }
 0x5e5   : > { %v5304_v4 = vmax.f32 %v5303_v16, %v3986_v38  ;;  %v5367_v54 = vmax.f32 %v5366_v1, %v4337_v32  ;;  %v3988_v44 = vpop.f32.mrb[158].mxu1  ;;  %v4339_v11 = vpop.f32.mrb[157].mxu0 }
 0x5e6   : > { %v5242_v26 = vmax.f32 %v5241_v53, %v3988_v44  ;;  %v5430_v9 = vmax.f32 %v5429_v50, %v4339_v11  ;;  %v3990_v5 = vpop.f32.mrb[159].mxu1  ;;  %v4341_v13 = vpop.f32.mrb[158].mxu0 }
 0x5e7   : > { %v5305_v24 = vmax.f32 %v5304_v4, %v3990_v5  ;;  %v5368_v22 = vmax.f32 %v5367_v54, %v4341_v13  ;;  %v4343_v61 = vpop.f32.mrb[159].mxu0 }
 0x5e8   : > { %v5431_v14 = vmax.f32 %v5430_v9, %v4343_v61  ;;  %4639 = vmatmul.mubr.bf16.gmra.mrb[8].mxu1 %v8521_v18 }
 0x5e9   : > { %4992 = vmatmul.mubr.bf16.gmra.mrb[8].mxu0 %v8521_v18  ;;  %4648 = vmatprep.mubr.bf16.mxu1 %v9050_v25 }
 0x5ea   : > { %5001 = vmatprep.mubr.bf16.mxu0 %v9050_v25 }
 0x5eb   : > { %v3994_v46 = vpop.f32.mrb[160].mxu1 }
 0x5ec   : > { %v5243_v43 = vmax.f32 %v5242_v26, %v3994_v46  ;;  %v3996_v28 = vpop.f32.mrb[161].mxu1  ;;  %v4347_v19 = vpop.f32.mrb[160].mxu0 }
 0x5ed   : > { %v5306_v39 = vmax.f32 %v5305_v24, %v3996_v28  ;;  %v5369_v27 = vmax.f32 %v5368_v22, %v4347_v19  ;;  %v3998_v21 = vpop.f32.mrb[162].mxu1  ;;  %v4349_v33 = vpop.f32.mrb[161].mxu0 }
 0x5ee   : > { %v5244_v47 = vmax.f32 %v5243_v43, %v3998_v21  ;;  %v5432_v37 = vmax.f32 %v5431_v14, %v4349_v33  ;;  %v4000_v23 = vpop.f32.mrb[163].mxu1  ;;  %v4351_v62 = vpop.f32.mrb[162].mxu0 }
 0x5ef   : > { %v5307_v15 = vmax.f32 %v5306_v39, %v4000_v23  ;;  %v5370_v55 = vmax.f32 %v5369_v27, %v4351_v62  ;;  %v4353_v41 = vpop.f32.mrb[163].mxu0 }
 0x5f0   : > { %v5433_v18 = vmax.f32 %v5432_v37, %v4353_v41  ;;  %4649 = vmatmul.mubr.bf16.gmra.mrb[12].mxu1 %v8519_v42 }
 0x5f1   : > { %5002 = vmatmul.mubr.bf16.gmra.mrb[12].mxu0 %v8519_v42  ;;  %4658 = vmatprep.mubr.bf16.mxu1 %v9050_v25 }
 0x5f2   : > { %5011 = vmatprep.mubr.bf16.mxu0 %v9050_v25 }
 0x5f3   : > { %v4004_v63 = vpop.f32.mrb[164].mxu1 }
 0x5f4   : > { %v5245_v29 = vmax.f32 %v5244_v47, %v4004_v63  ;;  %v4006_v20 = vpop.f32.mrb[165].mxu1  ;;  %v4357_v6 = vpop.f32.mrb[164].mxu0 }
 0x5f5   : > { %v5308_v7 = vmax.f32 %v5307_v15, %v4006_v20  ;;  %v5371_v31 = vmax.f32 %v5370_v55, %v4357_v6  ;;  %v4008_v16 = vpop.f32.mrb[166].mxu1  ;;  %v4359_v1 = vpop.f32.mrb[165].mxu0 }
 0x5f6   : > { %v5246_v60 = vmax.f32 %v5245_v29, %v4008_v16  ;;  %v5434_v50 = vmax.f32 %v5433_v18, %v4359_v1  ;;  %v4010_v36 = vpop.f32.mrb[167].mxu1  ;;  %v4361_v53 = vpop.f32.mrb[166].mxu0 }
 0x5f7   : > { %v5309_v38 = vmax.f32 %v5308_v7, %v4010_v36  ;;  %v5372_v32 = vmax.f32 %v5371_v31, %v4361_v53  ;;  %v4363_v4 = vpop.f32.mrb[167].mxu0 }
 0x5f8   : > { %v5435_v42 = vmax.f32 %v5434_v50, %v4363_v4  ;;  %4659 = vmatmul.mubr.bf16.gmra.mrb[16].mxu1 %v8533_v57 }
 0x5f9   : > { %5012 = vmatmul.mubr.bf16.gmra.mrb[16].mxu0 %v8533_v57  ;;  %4668 = vmatprep.mubr.bf16.mxu1 %v9050_v25 }
 0x5fa   : > { %5021 = vmatprep.mubr.bf16.mxu0 %v9050_v25 }
 0x5fb   : > { %v4014_v54 = vpop.f32.mrb[168].mxu1 }
 0x5fc   : > { %v5247_v44 = vmax.f32 %v5246_v60, %v4014_v54  ;;  %v4016_v11 = vpop.f32.mrb[169].mxu1  ;;  %v4367_v26 = vpop.f32.mrb[168].mxu0 }
 0x5fd   : > { %v5310_v9 = vmax.f32 %v5309_v38, %v4016_v11  ;;  %v5373_v5 = vmax.f32 %v5372_v32, %v4367_v26  ;;  %v4018_v13 = vpop.f32.mrb[170].mxu1  ;;  %v4369_v24 = vpop.f32.mrb[169].mxu0 }
 0x5fe   : > { %v5248_v22 = vmax.f32 %v5247_v44, %v4018_v13  ;;  %v5436_v61 = vmax.f32 %v5435_v42, %v4369_v24  ;;  %v4020_v14 = vpop.f32.mrb[171].mxu1  ;;  %v4371_v46 = vpop.f32.mrb[170].mxu0 }
 0x5ff   : > { %v5311_v43 = vmax.f32 %v5310_v9, %v4020_v14  ;;  %v5374_v28 = vmax.f32 %v5373_v5, %v4371_v46  ;;  %v4373_v19 = vpop.f32.mrb[171].mxu0 }
 0x600   : > { %v5437_v57 = vmax.f32 %v5436_v61, %v4373_v19  ;;  %4669 = vmatmul.mubr.bf16.gmra.mrb[20].mxu1 %v8531_v17 }
 0x601   : > { %5022 = vmatmul.mubr.bf16.gmra.mrb[20].mxu0 %v8531_v17  ;;  %4678 = vmatprep.mubr.bf16.mxu1 %v9050_v25 }
 0x602   : > { %5031 = vmatprep.mubr.bf16.mxu0 %v9050_v25 }
 0x603   : > { %v4024_v39 = vpop.f32.mrb[172].mxu1 }
 0x604   : > { %v5249_v27 = vmax.f32 %v5248_v22, %v4024_v39  ;;  %v4026_v21 = vpop.f32.mrb[173].mxu1  ;;  %v4377_v33 = vpop.f32.mrb[172].mxu0 }
 0x605   : > { %v5312_v47 = vmax.f32 %v5311_v43, %v4026_v21  ;;  %v5375_v37 = vmax.f32 %v5374_v28, %v4377_v33  ;;  %v4028_v23 = vpop.f32.mrb[174].mxu1  ;;  %v4379_v62 = vpop.f32.mrb[173].mxu0 }
 0x606   : > { %v5250_v15 = vmax.f32 %v5249_v27, %v4028_v23  ;;  %v5438_v55 = vmax.f32 %v5437_v57, %v4379_v62  ;;  %v4030_v41 = vpop.f32.mrb[175].mxu1  ;;  %v4381_v18 = vpop.f32.mrb[174].mxu0 }
 0x607   : > { %v5313_v63 = vmax.f32 %v5312_v47, %v4030_v41  ;;  %v5376_v29 = vmax.f32 %v5375_v37, %v4381_v18  ;;  %v4383_v20 = vpop.f32.mrb[175].mxu0 }
 0x608   : > { %v5439_v17 = vmax.f32 %v5438_v55, %v4383_v20  ;;  %4679 = vmatmul.mubr.bf16.gmra.mrb[24].mxu1 %v8545_v59 }
 0x609   : > { %5032 = vmatmul.mubr.bf16.gmra.mrb[24].mxu0 %v8545_v59  ;;  %4688 = vmatprep.mubr.bf16.mxu1 %v9050_v25 }
 0x60a   : > { %5041 = vmatprep.mubr.bf16.mxu0 %v9050_v25 }
 0x60b   : > { %v4034_v6 = vpop.f32.mrb[176].mxu1 }
 0x60c   : > { %v5251_v7 = vmax.f32 %v5250_v15, %v4034_v6  ;;  %v4036_v31 = vpop.f32.mrb[177].mxu1  ;;  %v4387_v16 = vpop.f32.mrb[176].mxu0 }
 0x60d   : > { %v5314_v1 = vmax.f32 %v5313_v63, %v4036_v31  ;;  %v5377_v60 = vmax.f32 %v5376_v29, %v4387_v16  ;;  %v4038_v50 = vpop.f32.mrb[178].mxu1  ;;  %v4389_v36 = vpop.f32.mrb[177].mxu0 }
 0x60e   : > { %v5252_v53 = vmax.f32 %v5251_v7, %v4038_v50  ;;  %v5440_v38 = vmax.f32 %v5439_v17, %v4389_v36  ;;  %v4040_v32 = vpop.f32.mrb[179].mxu1  ;;  %v4391_v4 = vpop.f32.mrb[178].mxu0 }
 0x60f   : > { %v5315_v42 = vmax.f32 %v5314_v1, %v4040_v32  ;;  %v5378_v54 = vmax.f32 %v5377_v60, %v4391_v4  ;;  %v4393_v44 = vpop.f32.mrb[179].mxu0 }
 0x610   : > { %v5441_v59 = vmax.f32 %v5440_v38, %v4393_v44  ;;  %4689 = vmatmul.mubr.bf16.gmra.mrb[28].mxu1 %v8543_v12 }
 0x611   : > { %5042 = vmatmul.mubr.bf16.gmra.mrb[28].mxu0 %v8543_v12  ;;  %4698 = vmatprep.mubr.bf16.mxu1 %v9050_v25 }
 0x612   : > { %5051 = vmatprep.mubr.bf16.mxu0 %v9050_v25 }
 0x613   : > { %v4044_v11 = vpop.f32.mrb[180].mxu1 }
 0x614   : > { %v5253_v26 = vmax.f32 %v5252_v53, %v4044_v11  ;;  %v4046_v9 = vpop.f32.mrb[181].mxu1  ;;  %v4397_v5 = vpop.f32.mrb[180].mxu0 }
 0x615   : > { %v5316_v13 = vmax.f32 %v5315_v42, %v4046_v9  ;;  %v5379_v24 = vmax.f32 %v5378_v54, %v4397_v5  ;;  %v4048_v22 = vpop.f32.mrb[182].mxu1  ;;  %v4399_v61 = vpop.f32.mrb[181].mxu0 }
 0x616   : > { %v5254_v14 = vmax.f32 %v5253_v26, %v4048_v22  ;;  %v5442_v46 = vmax.f32 %v5441_v59, %v4399_v61  ;;  %v4050_v43 = vpop.f32.mrb[183].mxu1  ;;  %v4401_v28 = vpop.f32.mrb[182].mxu0 }
 0x617   : > { %v5317_v19 = vmax.f32 %v5316_v13, %v4050_v43  ;;  %v5380_v57 = vmax.f32 %v5379_v24, %v4401_v28  ;;  %v4403_v39 = vpop.f32.mrb[183].mxu0 }
 0x618   : > { %v5443_v12 = vmax.f32 %v5442_v46, %v4403_v39  ;;  %4699 = vmatmul.mubr.bf16.gmra.mrb[32].mxu1 %v8557_v8 }
 0x619   : > { %5052 = vmatmul.mubr.bf16.gmra.mrb[32].mxu0 %v8557_v8  ;;  %4708 = vmatprep.mubr.bf16.mxu1 %v9050_v25 }
 0x61a   : > { %5061 = vmatprep.mubr.bf16.mxu0 %v9050_v25 }
 0x61b   : > { %v4054_v27 = vpop.f32.mrb[184].mxu1 }
 0x61c   : > { %v5255_v21 = vmax.f32 %v5254_v14, %v4054_v27  ;;  %v4056_v33 = vpop.f32.mrb[185].mxu1  ;;  %v4407_v47 = vpop.f32.mrb[184].mxu0 }
 0x61d   : > { %v5318_v37 = vmax.f32 %v5317_v19, %v4056_v33  ;;  %v5381_v23 = vmax.f32 %v5380_v57, %v4407_v47  ;;  %v4058_v62 = vpop.f32.mrb[186].mxu1  ;;  %v4409_v15 = vpop.f32.mrb[185].mxu0 }
 0x61e   : > { %v5256_v55 = vmax.f32 %v5255_v21, %v4058_v62  ;;  %v5444_v41 = vmax.f32 %v5443_v12, %v4409_v15  ;;  %v4060_v18 = vpop.f32.mrb[187].mxu1  ;;  %v4411_v63 = vpop.f32.mrb[186].mxu0 }
 0x61f   : > { %v5319_v29 = vmax.f32 %v5318_v37, %v4060_v18  ;;  %v5382_v20 = vmax.f32 %v5381_v23, %v4411_v63  ;;  %v4413_v17 = vpop.f32.mrb[187].mxu0 }
 0x620   : > { %v5445_v8 = vmax.f32 %v5444_v41, %v4413_v17  ;;  %4709 = vmatmul.mubr.bf16.gmra.mrb[36].mxu1 %v8555_v3 }
 0x621   : > { %5062 = vmatmul.mubr.bf16.gmra.mrb[36].mxu0 %v8555_v3  ;;  %4718 = vmatprep.mubr.bf16.mxu1 %v9050_v25 }
 0x622   : > { %5071 = vmatprep.mubr.bf16.mxu0 %v9050_v25 }
 0x623   : > { %v4064_v6 = vpop.f32.mrb[188].mxu1 }
 0x624   : > { %v5257_v7 = vmax.f32 %v5256_v55, %v4064_v6  ;;  %v4066_v31 = vpop.f32.mrb[189].mxu1  ;;  %v4417_v16 = vpop.f32.mrb[188].mxu0 }
 0x625   : > { %v5320_v1 = vmax.f32 %v5319_v29, %v4066_v31  ;;  %v5383_v60 = vmax.f32 %v5382_v20, %v4417_v16  ;;  %v4068_v50 = vpop.f32.mrb[190].mxu1  ;;  %v4419_v36 = vpop.f32.mrb[189].mxu0 }
 0x626   : > { %v5258_v53 = vmax.f32 %v5257_v7, %v4068_v50  ;;  %v5446_v38 = vmax.f32 %v5445_v8, %v4419_v36  ;;  %v4070_v32 = vpop.f32.mrb[191].mxu1  ;;  %v4421_v4 = vpop.f32.mrb[190].mxu0 }
 0x627   : > { %v5321_v42 = vmax.f32 %v5320_v1, %v4070_v32  ;;  %v5384_v54 = vmax.f32 %v5383_v60, %v4421_v4  ;;  %v4423_v44 = vpop.f32.mrb[191].mxu0 }
 0x628   : > { %v5447_v3 = vmax.f32 %v5446_v38, %v4423_v44  ;;  %4719 = vmatmul.mubr.bf16.gmra.mrb[40].mxu1 %v8581_v58 }
 0x629   : > { %5072 = vmatmul.mubr.bf16.gmra.mrb[40].mxu0 %v8581_v58  ;;  %4728 = vmatprep.mubr.bf16.mxu1 %v9050_v25 }
 0x62a   : > { %5081 = vmatprep.mubr.bf16.mxu0 %v9050_v25 }
 0x62b   : > { %v4074_v59 = vpop.f32.mrb[192].mxu1 }
 0x62c   : > { %v5259_v11 = vmax.f32 %v5258_v53, %v4074_v59  ;;  %v4076_v26 = vpop.f32.mrb[193].mxu1  ;;  %v4427_v9 = vpop.f32.mrb[192].mxu0 }
 0x62d   : > { %v5322_v5 = vmax.f32 %v5321_v42, %v4076_v26  ;;  %v5385_v13 = vmax.f32 %v5384_v54, %v4427_v9  ;;  %v4078_v24 = vpop.f32.mrb[194].mxu1  ;;  %v4429_v22 = vpop.f32.mrb[193].mxu0 }
 0x62e   : > { %v5260_v61 = vmax.f32 %v5259_v11, %v4078_v24  ;;  %v5448_v14 = vmax.f32 %v5447_v3, %v4429_v22  ;;  %v4080_v46 = vpop.f32.mrb[195].mxu1  ;;  %v4431_v43 = vpop.f32.mrb[194].mxu0 }
 0x62f   : > { %v5323_v28 = vmax.f32 %v5322_v5, %v4080_v46  ;;  %v5386_v19 = vmax.f32 %v5385_v13, %v4431_v43  ;;  %v4433_v57 = vpop.f32.mrb[195].mxu0 }
 0x630   : > { %v5449_v58 = vmax.f32 %v5448_v14, %v4433_v57  ;;  %4729 = vmatmul.mubr.bf16.gmra.mrb[44].mxu1 %v8579_v2 }
 0x631   : > { %5082 = vmatmul.mubr.bf16.gmra.mrb[44].mxu0 %v8579_v2  ;;  %4738 = vmatprep.mubr.bf16.mxu1 %v9050_v25 }
 0x632   : > { %5091 = vmatprep.mubr.bf16.mxu0 %v9050_v25 }
 0x633   : > { %v4084_v39 = vpop.f32.mrb[196].mxu1 }
 0x634   : > { %v5261_v12 = vmax.f32 %v5260_v61, %v4084_v39  ;;  %v4086_v27 = vpop.f32.mrb[197].mxu1  ;;  %v4437_v21 = vpop.f32.mrb[196].mxu0 }
 0x635   : > { %v5324_v33 = vmax.f32 %v5323_v28, %v4086_v27  ;;  %v5387_v47 = vmax.f32 %v5386_v19, %v4437_v21  ;;  %v4088_v37 = vpop.f32.mrb[198].mxu1  ;;  %v4439_v23 = vpop.f32.mrb[197].mxu0 }
 0x636   : > { %v5262_v62 = vmax.f32 %v5261_v12, %v4088_v37  ;;  %v5450_v15 = vmax.f32 %v5449_v58, %v4439_v23  ;;  %v4090_v55 = vpop.f32.mrb[199].mxu1  ;;  %v4441_v41 = vpop.f32.mrb[198].mxu0 }
 0x637   : > { %v5325_v18 = vmax.f32 %v5324_v33, %v4090_v55  ;;  %v5388_v63 = vmax.f32 %v5387_v47, %v4441_v41  ;;  %v4443_v29 = vpop.f32.mrb[199].mxu0 }
 0x638   : > { %v5451_v2 = vmax.f32 %v5450_v15, %v4443_v29  ;;  %4739 = vmatmul.mubr.bf16.gmra.mrb[48].mxu1 %v8593_v35 }
 0x639   : > { %5092 = vmatmul.mubr.bf16.gmra.mrb[48].mxu0 %v8593_v35  ;;  %4748 = vmatprep.mubr.bf16.mxu1 %v9050_v25 }
 0x63a   : > { %5101 = vmatprep.mubr.bf16.mxu0 %v9050_v25 }
 0x63b   : > { %v4094_v20 = vpop.f32.mrb[200].mxu1 }
 0x63c   : > { %v5263_v17 = vmax.f32 %v5262_v62, %v4094_v20  ;;  %v4096_v8 = vpop.f32.mrb[201].mxu1  ;;  %v4447_v6 = vpop.f32.mrb[200].mxu0 }
 0x63d   : > { %v5326_v7 = vmax.f32 %v5325_v18, %v4096_v8  ;;  %v5389_v31 = vmax.f32 %v5388_v63, %v4447_v6  ;;  %v4098_v16 = vpop.f32.mrb[202].mxu1  ;;  %v4449_v1 = vpop.f32.mrb[201].mxu0 }
 0x63e   : > { %v5264_v60 = vmax.f32 %v5263_v17, %v4098_v16  ;;  %v5452_v50 = vmax.f32 %v5451_v2, %v4449_v1  ;;  %v4100_v36 = vpop.f32.mrb[203].mxu1  ;;  %v4451_v53 = vpop.f32.mrb[202].mxu0 }
 0x63f   : > { %v5327_v38 = vmax.f32 %v5326_v7, %v4100_v36  ;;  %v5390_v32 = vmax.f32 %v5389_v31, %v4451_v53  ;;  %v4453_v4 = vpop.f32.mrb[203].mxu0 }
 0x640   : > { %v5453_v35 = vmax.f32 %v5452_v50, %v4453_v4  ;;  %4749 = vmatmul.mubr.bf16.gmra.mrb[52].mxu1 %v8591_v10 }
 0x641   : > { %5102 = vmatmul.mubr.bf16.gmra.mrb[52].mxu0 %v8591_v10  ;;  %4758 = vmatprep.mubr.bf16.mxu1 %v9050_v25 }
 0x642   : > { %5111 = vmatprep.mubr.bf16.mxu0 %v9050_v25 }
 0x643   : > { %v4104_v42 = vpop.f32.mrb[204].mxu1 }
 0x644   : > { %v5265_v54 = vmax.f32 %v5264_v60, %v4104_v42  ;;  %v4106_v44 = vpop.f32.mrb[205].mxu1  ;;  %v4457_v3 = vpop.f32.mrb[204].mxu0 }
 0x645   : > { %v5328_v59 = vmax.f32 %v5327_v38, %v4106_v44  ;;  %v5391_v11 = vmax.f32 %v5390_v32, %v4457_v3  ;;  %v4108_v26 = vpop.f32.mrb[206].mxu1  ;;  %v4459_v9 = vpop.f32.mrb[205].mxu0 }
 0x646   : > { %v5266_v5 = vmax.f32 %v5265_v54, %v4108_v26  ;;  %v5454_v13 = vmax.f32 %v5453_v35, %v4459_v9  ;;  %v4110_v24 = vpop.f32.mrb[207].mxu1  ;;  %v4461_v22 = vpop.f32.mrb[206].mxu0 }
 0x647   : > { %v5329_v61 = vmax.f32 %v5328_v59, %v4110_v24  ;;  %v5392_v14 = vmax.f32 %v5391_v11, %v4461_v22  ;;  %v4463_v46 = vpop.f32.mrb[207].mxu0 }
 0x648   : > { %v5455_v10 = vmax.f32 %v5454_v13, %v4463_v46  ;;  %4759 = vmatmul.mubr.bf16.gmra.mrb[56].mxu1 %v8605_v49 }
 0x649   : > { %5112 = vmatmul.mubr.bf16.gmra.mrb[56].mxu0 %v8605_v49  ;;  %4768 = vmatprep.mubr.bf16.mxu1 %v9050_v25 }
 0x64a   : > { %5121 = vmatprep.mubr.bf16.mxu0 %v9050_v25 }
 0x64b   : > { %v4114_v43 = vpop.f32.mrb[208].mxu1 }
 0x64c   : > { %v5267_v28 = vmax.f32 %v5266_v5, %v4114_v43  ;;  %v4116_v19 = vpop.f32.mrb[209].mxu1  ;;  %v4467_v57 = vpop.f32.mrb[208].mxu0 }
 0x64d   : > { %v5330_v58 = vmax.f32 %v5329_v61, %v4116_v19  ;;  %v5393_v39 = vmax.f32 %v5392_v14, %v4467_v57  ;;  %v4118_v12 = vpop.f32.mrb[210].mxu1  ;;  %v4469_v27 = vpop.f32.mrb[209].mxu0 }
 0x64e   : > { %v5268_v21 = vmax.f32 %v5267_v28, %v4118_v12  ;;  %v5456_v33 = vmax.f32 %v5455_v10, %v4469_v27  ;;  %v4120_v47 = vpop.f32.mrb[211].mxu1  ;;  %v4471_v37 = vpop.f32.mrb[210].mxu0 }
 0x64f   : > { %v5331_v23 = vmax.f32 %v5330_v58, %v4120_v47  ;;  %v5394_v62 = vmax.f32 %v5393_v39, %v4471_v37  ;;  %v4473_v15 = vpop.f32.mrb[211].mxu0 }
 0x650   : > { %v5457_v49 = vmax.f32 %v5456_v33, %v4473_v15  ;;  %4769 = vmatmul.mubr.bf16.gmra.mrb[60].mxu1 %v8603_v0 }
 0x651   : > { %5122 = vmatmul.mubr.bf16.gmra.mrb[60].mxu0 %v8603_v0  ;;  %4778 = vmatprep.mubr.bf16.mxu1 %v9050_v25 }
 0x652   : > { %5131 = vmatprep.mubr.bf16.mxu0 %v9050_v25 }
 0x653   : > { %v4124_v55 = vpop.f32.mrb[212].mxu1 }
 0x654   : > { %v5269_v41 = vmax.f32 %v5268_v21, %v4124_v55  ;;  %v4126_v18 = vpop.f32.mrb[213].mxu1  ;;  %v4477_v63 = vpop.f32.mrb[212].mxu0 }
 0x655   : > { %v5332_v29 = vmax.f32 %v5331_v23, %v4126_v18  ;;  %v5395_v2 = vmax.f32 %v5394_v62, %v4477_v63  ;;  %v4128_v20 = vpop.f32.mrb[214].mxu1  ;;  %v4479_v17 = vpop.f32.mrb[213].mxu0 }
 0x656   : > { %v5270_v8 = vmax.f32 %v5269_v41, %v4128_v20  ;;  %v5458_v6 = vmax.f32 %v5457_v49, %v4479_v17  ;;  %v4130_v7 = vpop.f32.mrb[215].mxu1  ;;  %v4481_v31 = vpop.f32.mrb[214].mxu0 }
 0x657   : > { %v5333_v16 = vmax.f32 %v5332_v29, %v4130_v7  ;;  %v5396_v1 = vmax.f32 %v5395_v2, %v4481_v31  ;;  %v4483_v60 = vpop.f32.mrb[215].mxu0 }
 0x658   : > { %v5459_v0 = vmax.f32 %v5458_v6, %v4483_v60  ;;  %4779 = vmatmul.mubr.bf16.gmra.mrb[64].mxu1 %v8637_v56 }
 0x659   : > { %5132 = vmatmul.mubr.bf16.gmra.mrb[64].mxu0 %v8637_v56  ;;  %4788 = vmatprep.mubr.bf16.mxu1 %v9050_v25 }
 0x65a   : > { %5141 = vmatprep.mubr.bf16.mxu0 %v9050_v25 }
 0x65b   : > { %v4134_v50 = vpop.f32.mrb[216].mxu1 }
 0x65c   : > { %v5271_v36 = vmax.f32 %v5270_v8, %v4134_v50  ;;  %v4136_v53 = vpop.f32.mrb[217].mxu1  ;;  %v4487_v38 = vpop.f32.mrb[216].mxu0 }
 0x65d   : > { %v5334_v32 = vmax.f32 %v5333_v16, %v4136_v53  ;;  %v5397_v4 = vmax.f32 %v5396_v1, %v4487_v38  ;;  %v4138_v35 = vpop.f32.mrb[218].mxu1  ;;  %v4489_v42 = vpop.f32.mrb[217].mxu0 }
 0x65e   : > { %v5272_v54 = vmax.f32 %v5271_v36, %v4138_v35  ;;  %v5460_v44 = vmax.f32 %v5459_v0, %v4489_v42  ;;  %v4140_v3 = vpop.f32.mrb[219].mxu1  ;;  %v4491_v59 = vpop.f32.mrb[218].mxu0 }
 0x65f   : > { %v5335_v11 = vmax.f32 %v5334_v32, %v4140_v3  ;;  %v5398_v26 = vmax.f32 %v5397_v4, %v4491_v59  ;;  %v4493_v56 = vpop.f32.mrb[219].mxu0 }
 0x660   : > { %v5461_v9 = vmax.f32 %v5460_v44, %v4493_v56  ;;  %4789 = vmatmul.mubr.bf16.gmra.mrb[68].mxu1 %v8635_v48 }
 0x661   : > { %5142 = vmatmul.mubr.bf16.gmra.mrb[68].mxu0 %v8635_v48  ;;  %4798 = vmatprep.mubr.bf16.mxu1 %v9050_v25 }
 0x662   : > { %5151 = vmatprep.mubr.bf16.mxu0 %v9050_v25 }
 0x663   : > { %v4144_v5 = vpop.f32.mrb[220].mxu1 }
 0x664   : > { %v5273_v13 = vmax.f32 %v5272_v54, %v4144_v5  ;;  %v4146_v24 = vpop.f32.mrb[221].mxu1  ;;  %v4497_v22 = vpop.f32.mrb[220].mxu0 }
 0x665   : > { %v5336_v61 = vmax.f32 %v5335_v11, %v4146_v24  ;;  %v5399_v14 = vmax.f32 %v5398_v26, %v4497_v22  ;;  %v4148_v46 = vpop.f32.mrb[222].mxu1  ;;  %v4499_v10 = vpop.f32.mrb[221].mxu0 }
 0x666   : > { %v5274_v43 = vmax.f32 %v5273_v13, %v4148_v46  ;;  %v5462_v28 = vmax.f32 %v5461_v9, %v4499_v10  ;;  %v4150_v19 = vpop.f32.mrb[223].mxu1  ;;  %v4501_v48 = vpop.f32.mrb[222].mxu0 }
 0x667   : > { %v5337_v57 = vmax.f32 %v5336_v61, %v4150_v19  ;;  %v5400_v58 = vmax.f32 %v5399_v14, %v4501_v48  ;;  %v4503_v39 = vpop.f32.mrb[223].mxu0 }
 0x668   : > { %v5463_v12 = vmax.f32 %v5462_v28, %v4503_v39  ;;  %4799 = vmatmul.mubr.bf16.gmra.mrb[72].mxu1 %v8661_v30  ;;  %5732 = vst [vmem:[%s8846_s23] sm:$0xff] %v5274_v43 }
 0x669   : > { %5152 = vmatmul.mubr.bf16.gmra.mrb[72].mxu0 %v8661_v30  ;;  %4808 = vmatprep.mubr.bf16.mxu1 %v9050_v25  ;;  %5733 = vst [vmem:[%s8846_s23 + $0x8] sm:$0xff] %v5337_v57  ;;  %5734 = vst [vmem:[%s8846_s23 + $0x10] sm:$0xff] %v5400_v58 }
 0x66a   : > { %5161 = vmatprep.mubr.bf16.mxu0 %v9050_v25  ;;  %5735 = vst [vmem:[%s8846_s23 + $0x18] sm:$0xff] %v5463_v12 }
 0x66b   : > { %v4540_v27 = vpop.f32.mrb[224].mxu1 }
 0x66c   : > { %v4542_v21 = vpop.f32.mrb[225].mxu1  ;;  %v4893_v33 = vpop.f32.mrb[224].mxu0 }
 0x66d   : > { %v4544_v47 = vpop.f32.mrb[226].mxu1  ;;  %v4895_v37 = vpop.f32.mrb[225].mxu0 }
 0x66e   : > { %v5464_v30 = vmax.f32 %v4540_v27, %v4544_v47  ;;  %v4546_v23 = vpop.f32.mrb[227].mxu1  ;;  %v4897_v62 = vpop.f32.mrb[226].mxu0 }
 0x66f   : > { %v5527_v15 = vmax.f32 %v4542_v21, %v4546_v23  ;;  %v5590_v49 = vmax.f32 %v4893_v33, %v4897_v62  ;;  %v4899_v55 = vpop.f32.mrb[227].mxu0 }
 0x670   : > { %v5653_v41 = vmax.f32 %v4895_v37, %v4899_v55  ;;  %4809 = vmatmul.mubr.bf16.gmra.mrb[76].mxu1 %v8659_v51 }
 0x671   : > { %5162 = vmatmul.mubr.bf16.gmra.mrb[76].mxu0 %v8659_v51  ;;  %4818 = vmatprep.mubr.bf16.mxu1 %v9050_v25 }
 0x672   : > { %5171 = vmatprep.mubr.bf16.mxu0 %v9050_v25 }
 0x673   : > { %v4550_v18 = vpop.f32.mrb[228].mxu1 }
 0x674   : > { %v5465_v63 = vmax.f32 %v5464_v30, %v4550_v18  ;;  %v4552_v29 = vpop.f32.mrb[229].mxu1  ;;  %v4903_v2 = vpop.f32.mrb[228].mxu0 }
 0x675   : > { %v5528_v20 = vmax.f32 %v5527_v15, %v4552_v29  ;;  %v5591_v17 = vmax.f32 %v5590_v49, %v4903_v2  ;;  %v4554_v8 = vpop.f32.mrb[230].mxu1  ;;  %v4905_v6 = vpop.f32.mrb[229].mxu0 }
 0x676   : > { %v5466_v7 = vmax.f32 %v5465_v63, %v4554_v8  ;;  %v5654_v31 = vmax.f32 %v5653_v41, %v4905_v6  ;;  %v4556_v16 = vpop.f32.mrb[231].mxu1  ;;  %v4907_v1 = vpop.f32.mrb[230].mxu0 }
 0x677   : > { %v5529_v60 = vmax.f32 %v5528_v20, %v4556_v16  ;;  %v5592_v0 = vmax.f32 %v5591_v17, %v4907_v1  ;;  %v4909_v50 = vpop.f32.mrb[231].mxu0 }
 0x678   : > { %v5655_v51 = vmax.f32 %v5654_v31, %v4909_v50  ;;  %4819 = vmatmul.mubr.bf16.gmra.mrb[80].mxu1 %v8689_v45 }
 0x679   : > { %5172 = vmatmul.mubr.bf16.gmra.mrb[80].mxu0 %v8689_v45  ;;  %4828 = vmatprep.mubr.bf16.mxu1 %v9050_v25 }
 0x67a   : > { %5181 = vmatprep.mubr.bf16.mxu0 %v9050_v25 }
 0x67b   : > { %v4560_v36 = vpop.f32.mrb[232].mxu1 }
 0x67c   : > { %v5467_v53 = vmax.f32 %v5466_v7, %v4560_v36  ;;  %v4562_v38 = vpop.f32.mrb[233].mxu1  ;;  %v4913_v32 = vpop.f32.mrb[232].mxu0 }
 0x67d   : > { %v5530_v4 = vmax.f32 %v5529_v60, %v4562_v38  ;;  %v5593_v35 = vmax.f32 %v5592_v0, %v4913_v32  ;;  %v4564_v42 = vpop.f32.mrb[234].mxu1  ;;  %v4915_v54 = vpop.f32.mrb[233].mxu0 }
 0x67e   : > { %v5468_v44 = vmax.f32 %v5467_v53, %v4564_v42  ;;  %v5656_v3 = vmax.f32 %v5655_v51, %v4915_v54  ;;  %v4566_v59 = vpop.f32.mrb[235].mxu1  ;;  %v4917_v11 = vpop.f32.mrb[234].mxu0 }
 0x67f   : > { %v5531_v26 = vmax.f32 %v5530_v4, %v4566_v59  ;;  %v5594_v56 = vmax.f32 %v5593_v35, %v4917_v11  ;;  %v4919_v9 = vpop.f32.mrb[235].mxu0 }
 0x680   : > { %v5657_v45 = vmax.f32 %v5656_v3, %v4919_v9  ;;  %4829 = vmatmul.mubr.bf16.gmra.mrb[84].mxu1 %v8686_v40 }
 0x681   : > { %5182 = vmatmul.mubr.bf16.gmra.mrb[84].mxu0 %v8686_v40  ;;  %4838 = vmatprep.mubr.bf16.mxu1 %v9050_v25 }
 0x682   : > { %5191 = vmatprep.mubr.bf16.mxu0 %v9050_v25 }
 0x683   : > { %v4570_v5 = vpop.f32.mrb[236].mxu1 }
 0x684   : > { %v5469_v13 = vmax.f32 %v5468_v44, %v4570_v5  ;;  %v4572_v24 = vpop.f32.mrb[237].mxu1  ;;  %v4923_v22 = vpop.f32.mrb[236].mxu0 }
 0x685   : > { %v5532_v61 = vmax.f32 %v5531_v26, %v4572_v24  ;;  %v5595_v14 = vmax.f32 %v5594_v56, %v4923_v22  ;;  %v4574_v46 = vpop.f32.mrb[238].mxu1  ;;  %v4925_v10 = vpop.f32.mrb[237].mxu0 }
 0x686   : > { %v5470_v43 = vmax.f32 %v5469_v13, %v4574_v46  ;;  %v5658_v28 = vmax.f32 %v5657_v45, %v4925_v10  ;;  %v4576_v19 = vpop.f32.mrb[239].mxu1  ;;  %v4927_v48 = vpop.f32.mrb[238].mxu0 }
 0x687   : > { %v5533_v57 = vmax.f32 %v5532_v61, %v4576_v19  ;;  %v5596_v58 = vmax.f32 %v5595_v14, %v4927_v48  ;;  %v4929_v39 = vpop.f32.mrb[239].mxu0 }
 0x688   : > { %v5659_v40 = vmax.f32 %v5658_v28, %v4929_v39  ;;  %4839 = vmatmul.mubr.bf16.gmra.mrb[88].mxu1 %v8713_v52 }
 0x689   : > { %5192 = vmatmul.mubr.bf16.gmra.mrb[88].mxu0 %v8713_v52  ;;  %4848 = vmatprep.mubr.bf16.mxu1 %v9050_v25 }
 0x68a   : > { %5201 = vmatprep.mubr.bf16.mxu0 %v9050_v25 }
 0x68b   : > { %v4580_v12 = vpop.f32.mrb[240].mxu1 }
 0x68c   : > { %v5471_v27 = vmax.f32 %v5470_v43, %v4580_v12  ;;  %v4582_v21 = vpop.f32.mrb[241].mxu1  ;;  %v4933_v33 = vpop.f32.mrb[240].mxu0 }
 0x68d   : > { %v5534_v47 = vmax.f32 %v5533_v57, %v4582_v21  ;;  %v5597_v37 = vmax.f32 %v5596_v58, %v4933_v33  ;;  %v4584_v30 = vpop.f32.mrb[242].mxu1  ;;  %v4935_v23 = vpop.f32.mrb[241].mxu0 }
 0x68e   : > { %v5472_v62 = vmax.f32 %v5471_v27, %v4584_v30  ;;  %v5660_v15 = vmax.f32 %v5659_v40, %v4935_v23  ;;  %v4586_v49 = vpop.f32.mrb[243].mxu1  ;;  %v4937_v55 = vpop.f32.mrb[242].mxu0 }
 0x68f   : > { %v5535_v41 = vmax.f32 %v5534_v47, %v4586_v49  ;;  %v5598_v18 = vmax.f32 %v5597_v37, %v4937_v55  ;;  %v4939_v63 = vpop.f32.mrb[243].mxu0 }
 0x690   : > { %v5661_v52 = vmax.f32 %v5660_v15, %v4939_v63  ;;  %4849 = vmatmul.mubr.bf16.gmra.mrb[92].mxu1 %v8711_v34 }
 0x691   : > { %5202 = vmatmul.mubr.bf16.gmra.mrb[92].mxu0 %v8711_v34 }
 0x693   : > { %v4590_v25 = vpop.f32.mrb[244].mxu1 }
 0x694   : > { %v5473_v29 = vmax.f32 %v5472_v62, %v4590_v25  ;;  %v4592_v2 = vpop.f32.mrb[245].mxu1  ;;  %v4943_v20 = vpop.f32.mrb[244].mxu0 }
 0x695   : > { %v5536_v17 = vmax.f32 %v5535_v41, %v4592_v2  ;;  %v5599_v8 = vmax.f32 %v5598_v18, %v4943_v20  ;;  %v4594_v6 = vpop.f32.mrb[246].mxu1  ;;  %v4945_v7 = vpop.f32.mrb[245].mxu0 }
 0x696   : > { %v5474_v31 = vmax.f32 %v5473_v29, %v4594_v6  ;;  %v5662_v16 = vmax.f32 %v5661_v52, %v4945_v7  ;;  %v4596_v1 = vpop.f32.mrb[247].mxu1  ;;  %v4947_v60 = vpop.f32.mrb[246].mxu0 }
 0x697   : > { %v5537_v0 = vmax.f32 %v5536_v17, %v4596_v1  ;;  %v5600_v50 = vmax.f32 %v5599_v8, %v4947_v60  ;;  %v4949_v51 = vpop.f32.mrb[247].mxu0  ;;  %v5788_v52 = vpop.trf.xlu0 }
 0x698   : > { %v5663_v36 = vmax.f32 %v5662_v16, %v4949_v51  ;;  %5869 = vst [vmem:[%s8872_s26 + $0x8] sm:$0xff] %v5788_v52  ;;  %v5756_v29 = vpop.trf.xlu1 }
 0x699   : > { %5868 = vst [vmem:[%s8872_s26] sm:$0xff] %v5756_v29 }
 0x69b   : > { %v4600_v53 = vpop.f32.mrb[248].mxu1  ;;  %v5789_v20 = vpop.trf.xlu0 }
 0x69c   : > { %v5475_v38 = vmax.f32 %v5474_v31, %v4600_v53  ;;  %v4602_v32 = vpop.f32.mrb[249].mxu1  ;;  %v4953_v34 = vpop.f32.mrb[248].mxu0  ;;  %5873 = vst [vmem:[%s8872_s26 + $0x28] sm:$0xff] %v5789_v20 }
 0x69d   : > { %v5538_v4 = vmax.f32 %v5537_v0, %v4602_v32  ;;  %v5601_v35 = vmax.f32 %v5600_v50, %v4953_v34  ;;  %v4604_v42 = vpop.f32.mrb[250].mxu1  ;;  %v4955_v54 = vpop.f32.mrb[249].mxu0 }
 0x69e   : > { %v5476_v44 = vmax.f32 %v5475_v38, %v4604_v42  ;;  %v5664_v3 = vmax.f32 %v5663_v36, %v4955_v54  ;;  %v4606_v59 = vpop.f32.mrb[251].mxu1  ;;  %v4957_v11 = vpop.f32.mrb[250].mxu0 }
 0x69f   : > { %v5539_v26 = vmax.f32 %v5538_v4, %v4606_v59  ;;  %v5602_v56 = vmax.f32 %v5601_v35, %v4957_v11  ;;  %v4959_v9 = vpop.f32.mrb[251].mxu0  ;;  %v5757_v32 = vpop.trf.xlu1 }
 0x6a0   : > { %v5665_v45 = vmax.f32 %v5664_v3, %v4959_v9  ;;  %5872 = vst [vmem:[%s8872_s26 + $0x20] sm:$0xff] %v5757_v32  ;;  %v5790_v4 = vpop.trf.xlu0 }
 0x6a1   : > { %5877 = vst [vmem:[%s8872_s26 + $0x48] sm:$0xff] %v5790_v4 }
 0x6a3   : > { %v4610_v5 = vpop.f32.mrb[252].mxu1  ;;  %v5758_v42 = vpop.trf.xlu1 }
 0x6a4   : > { %v5477_v13 = vmax.f32 %v5476_v44, %v4610_v5  ;;  %v4612_v24 = vpop.f32.mrb[253].mxu1  ;;  %v4963_v22 = vpop.f32.mrb[252].mxu0  ;;  %5876 = vst [vmem:[%s8872_s26 + $0x40] sm:$0xff] %v5758_v42 }
 0x6a5   : > { %v5540_v61 = vmax.f32 %v5539_v26, %v4612_v24  ;;  %v5603_v14 = vmax.f32 %v5602_v56, %v4963_v22  ;;  %v4614_v46 = vpop.f32.mrb[254].mxu1  ;;  %v4965_v10 = vpop.f32.mrb[253].mxu0 }
 0x6a6   : > { %v5478_v43 = vmax.f32 %v5477_v13, %v4614_v46  ;;  %v5666_v28 = vmax.f32 %v5665_v45, %v4965_v10  ;;  %v4616_v19 = vpop.f32.mrb[255].mxu1  ;;  %v4967_v48 = vpop.f32.mrb[254].mxu0 }
 0x6a7   : > { %v5541_v57 = vmax.f32 %v5540_v61, %v4616_v19  ;;  %v5604_v58 = vmax.f32 %v5603_v14, %v4967_v48  ;;  %v4969_v39 = vpop.f32.mrb[255].mxu0  ;;  %v5791_v14 = vpop.trf.xlu0 }
 0x6a8   : > { %v5667_v40 = vmax.f32 %v5666_v28, %v4969_v39  ;;  %5881 = vst [vmem:[%s8872_s26 + $0x68] sm:$0xff] %v5791_v14  ;;  %v5759_v10 = vpop.trf.xlu1 }
 0x6a9   : > { %5880 = vst [vmem:[%s8872_s26 + $0x60] sm:$0xff] %v5759_v10 }
 0x6ab   : > { %v4620_v12 = vpop.f32.mrb[0].mxu1  ;;  %v5792_v28 = vpop.trf.xlu0 }
 0x6ac   : > { %v5479_v27 = vmax.f32 %v5478_v43, %v4620_v12  ;;  %v4622_v21 = vpop.f32.mrb[1].mxu1  ;;  %v4973_v33 = vpop.f32.mrb[0].mxu0  ;;  %5885 = vst [vmem:[%s8872_s26 + $0x88] sm:$0xff] %v5792_v28 }
 0x6ad   : > { %v5542_v47 = vmax.f32 %v5541_v57, %v4622_v21  ;;  %v5605_v37 = vmax.f32 %v5604_v58, %v4973_v33  ;;  %v4624_v30 = vpop.f32.mrb[2].mxu1  ;;  %v4975_v23 = vpop.f32.mrb[1].mxu0 }
 0x6ae   : > { %v5480_v62 = vmax.f32 %v5479_v27, %v4624_v30  ;;  %v5668_v15 = vmax.f32 %v5667_v40, %v4975_v23  ;;  %v4626_v49 = vpop.f32.mrb[3].mxu1  ;;  %v4977_v55 = vpop.f32.mrb[2].mxu0 }
 0x6af   : > { %v5543_v41 = vmax.f32 %v5542_v47, %v4626_v49  ;;  %v5606_v18 = vmax.f32 %v5605_v37, %v4977_v55  ;;  %v4979_v63 = vpop.f32.mrb[3].mxu0  ;;  %v5793_v49 = vpop.trf.xlu0 }
 0x6b0   : > { %v5669_v25 = vmax.f32 %v5668_v15, %v4979_v63  ;;  %5889 = vst [vmem:[%s8872_s26 + $0xa8] sm:$0xff] %v5793_v49 }
 0x6b3   : > { %v4630_v2 = vpop.f32.mrb[4].mxu1 }
 0x6b4   : > { %v5481_v17 = vmax.f32 %v5480_v62, %v4630_v2  ;;  %v4632_v8 = vpop.f32.mrb[5].mxu1  ;;  %v4983_v6 = vpop.f32.mrb[4].mxu0 }
 0x6b5   : > { %v5544_v7 = vmax.f32 %v5543_v41, %v4632_v8  ;;  %v5607_v31 = vmax.f32 %v5606_v18, %v4983_v6  ;;  %v4634_v16 = vpop.f32.mrb[6].mxu1  ;;  %v4985_v1 = vpop.f32.mrb[5].mxu0 }
 0x6b6   : > { %v5482_v60 = vmax.f32 %v5481_v17, %v4634_v16  ;;  %v5670_v0 = vmax.f32 %v5669_v25, %v4985_v1  ;;  %v4636_v50 = vpop.f32.mrb[7].mxu1  ;;  %v4987_v51 = vpop.f32.mrb[6].mxu0 }
 0x6b7   : > { %v5545_v36 = vmax.f32 %v5544_v7, %v4636_v50  ;;  %v5608_v53 = vmax.f32 %v5607_v31, %v4987_v51  ;;  %v4989_v38 = vpop.f32.mrb[7].mxu0  ;;  %v5760_v62 = vpop.trf.xlu1 }
 0x6b8   : > { %v5671_v34 = vmax.f32 %v5670_v0, %v4989_v38  ;;  %5884 = vst [vmem:[%s8872_s26 + $0x80] sm:$0xff] %v5760_v62 }
 0x6bb   : > { %v4640_v35 = vpop.f32.mrb[8].mxu1  ;;  %v5761_v41 = vpop.trf.xlu1 }
 0x6bc   : > { %v5483_v54 = vmax.f32 %v5482_v60, %v4640_v35  ;;  %v4642_v44 = vpop.f32.mrb[9].mxu1  ;;  %v4993_v3 = vpop.f32.mrb[8].mxu0  ;;  %5888 = vst [vmem:[%s8872_s26 + $0xa0] sm:$0xff] %v5761_v41 }
 0x6bd   : > { %v5546_v59 = vmax.f32 %v5545_v36, %v4642_v44  ;;  %v5609_v11 = vmax.f32 %v5608_v53, %v4993_v3  ;;  %v4644_v26 = vpop.f32.mrb[10].mxu1  ;;  %v4995_v56 = vpop.f32.mrb[9].mxu0 }
 0x6be   : > { %v5484_v9 = vmax.f32 %v5483_v54, %v4644_v26  ;;  %v5672_v45 = vmax.f32 %v5671_v34, %v4995_v56  ;;  %v4646_v5 = vpop.f32.mrb[11].mxu1  ;;  %v4997_v13 = vpop.f32.mrb[10].mxu0 }
 0x6bf   : > { %v5547_v24 = vmax.f32 %v5546_v59, %v4646_v5  ;;  %v5610_v22 = vmax.f32 %v5609_v11, %v4997_v13  ;;  %v4999_v61 = vpop.f32.mrb[11].mxu0  ;;  %v5794_v60 = vpop.trf.xlu0 }
 0x6c0   : > { %v5673_v46 = vmax.f32 %v5672_v45, %v4999_v61  ;;  %5893 = vst [vmem:[%s8872_s26 + $0xc8] sm:$0xff] %v5794_v60  ;;  %v5762_v50 = vpop.trf.xlu1 }
 0x6c1   : > { %5892 = vst [vmem:[%s8872_s26 + $0xc0] sm:$0xff] %v5762_v50 }
 0x6c3   : > { %v4650_v43 = vpop.f32.mrb[12].mxu1  ;;  %v5795_v36 = vpop.trf.xlu0 }
 0x6c4   : > { %v5485_v19 = vmax.f32 %v5484_v9, %v4650_v43  ;;  %v4652_v48 = vpop.f32.mrb[13].mxu1  ;;  %v5003_v57 = vpop.f32.mrb[12].mxu0  ;;  %5897 = vst [vmem:[%s8872_s26 + $0xe8] sm:$0xff] %v5795_v36 }
 0x6c5   : > { %v5548_v58 = vmax.f32 %v5547_v24, %v4652_v48  ;;  %v5611_v39 = vmax.f32 %v5610_v22, %v5003_v57  ;;  %v4654_v40 = vpop.f32.mrb[14].mxu1  ;;  %v5005_v12 = vpop.f32.mrb[13].mxu0 }
 0x6c6   : > { %v5486_v27 = vmax.f32 %v5485_v19, %v4654_v40  ;;  %v5674_v21 = vmax.f32 %v5673_v46, %v5005_v12  ;;  %v4656_v33 = vpop.f32.mrb[15].mxu1  ;;  %v5007_v47 = vpop.f32.mrb[14].mxu0 }
 0x6c7   : > { %v5549_v37 = vmax.f32 %v5548_v58, %v4656_v33  ;;  %v5612_v30 = vmax.f32 %v5611_v39, %v5007_v47  ;;  %v5009_v23 = vpop.f32.mrb[15].mxu0  ;;  %v5763_v9 = vpop.trf.xlu1 }
 0x6c8   : > { %v5675_v15 = vmax.f32 %v5674_v21, %v5009_v23  ;;  %5896 = vst [vmem:[%s8872_s26 + $0xe0] sm:$0xff] %v5763_v9  ;;  %v5820_v5 = vpop.trf.xlu0 }
 0x6c9   : > { %5870 = vst [vmem:[%s8872_s26 + $0x10] sm:$0xff] %v5820_v5 }
 0x6cb   : > { %v4660_v55 = vpop.f32.mrb[16].mxu1  ;;  %v5852_v24 = vpop.trf.xlu1 }
 0x6cc   : > { %v5487_v18 = vmax.f32 %v5486_v27, %v4660_v55  ;;  %v4662_v63 = vpop.f32.mrb[17].mxu1  ;;  %v5013_v52 = vpop.f32.mrb[16].mxu0  ;;  %5871 = vst [vmem:[%s8872_s26 + $0x18] sm:$0xff] %v5852_v24 }
 0x6cd   : > { %v5550_v25 = vmax.f32 %v5549_v37, %v4662_v63  ;;  %v5613_v29 = vmax.f32 %v5612_v30, %v5013_v52  ;;  %v4664_v2 = vpop.f32.mrb[18].mxu1  ;;  %v5015_v20 = vpop.f32.mrb[17].mxu0 }
 0x6ce   : > { %v5488_v17 = vmax.f32 %v5487_v18, %v4664_v2  ;;  %v5676_v8 = vmax.f32 %v5675_v15, %v5015_v20  ;;  %v4666_v6 = vpop.f32.mrb[19].mxu1  ;;  %v5017_v7 = vpop.f32.mrb[18].mxu0 }
 0x6cf   : > { %v5551_v31 = vmax.f32 %v5550_v25, %v4666_v6  ;;  %v5614_v16 = vmax.f32 %v5613_v29, %v5017_v7  ;;  %v5019_v1 = vpop.f32.mrb[19].mxu0  ;;  %v5821_v27 = vpop.trf.xlu0 }
 0x6d0   : > { %v5677_v0 = vmax.f32 %v5676_v8, %v5019_v1  ;;  %5874 = vst [vmem:[%s8872_s26 + $0x30] sm:$0xff] %v5821_v27  ;;  %v5853_v33 = vpop.trf.xlu1 }
 0x6d1   : > { %5875 = vst [vmem:[%s8872_s26 + $0x38] sm:$0xff] %v5853_v33 }
 0x6d3   : > { %v4670_v51 = vpop.f32.mrb[20].mxu1  ;;  %v5822_v37 = vpop.trf.xlu0 }
 0x6d4   : > { %v5489_v53 = vmax.f32 %v5488_v17, %v4670_v51  ;;  %v4672_v38 = vpop.f32.mrb[21].mxu1  ;;  %v5023_v32 = vpop.f32.mrb[20].mxu0  ;;  %5878 = vst [vmem:[%s8872_s26 + $0x50] sm:$0xff] %v5822_v37 }
 0x6d5   : > { %v5552_v34 = vmax.f32 %v5551_v31, %v4672_v38  ;;  %v5615_v4 = vmax.f32 %v5614_v16, %v5023_v32  ;;  %v4674_v35 = vpop.f32.mrb[22].mxu1  ;;  %v5025_v42 = vpop.f32.mrb[21].mxu0 }
 0x6d6   : > { %v5490_v54 = vmax.f32 %v5489_v53, %v4674_v35  ;;  %v5678_v44 = vmax.f32 %v5677_v0, %v5025_v42  ;;  %v4676_v3 = vpop.f32.mrb[23].mxu1  ;;  %v5027_v59 = vpop.f32.mrb[22].mxu0 }
 0x6d7   : > { %v5553_v11 = vmax.f32 %v5552_v34, %v4676_v3  ;;  %v5616_v26 = vmax.f32 %v5615_v4, %v5027_v59  ;;  %v5029_v56 = vpop.f32.mrb[23].mxu0  ;;  %v5854_v17 = vpop.trf.xlu1 }
 0x6d8   : > { %v5679_v45 = vmax.f32 %v5678_v44, %v5029_v56  ;;  %5879 = vst [vmem:[%s8872_s26 + $0x58] sm:$0xff] %v5854_v17  ;;  %v5823_v6 = vpop.trf.xlu0 }
 0x6d9   : > { %5882 = vst [vmem:[%s8872_s26 + $0x70] sm:$0xff] %v5823_v6 }
 0x6db   : > { %v4680_v13 = vpop.f32.mrb[24].mxu1  ;;  %v5855_v31 = vpop.trf.xlu1 }
 0x6dc   : > { %v5491_v22 = vmax.f32 %v5490_v54, %v4680_v13  ;;  %v4682_v61 = vpop.f32.mrb[25].mxu1  ;;  %v5033_v14 = vpop.f32.mrb[24].mxu0  ;;  %5883 = vst [vmem:[%s8872_s26 + $0x78] sm:$0xff] %v5855_v31 }
 0x6dd   : > { %v5554_v46 = vmax.f32 %v5553_v11, %v4682_v61  ;;  %v5617_v10 = vmax.f32 %v5616_v26, %v5033_v14  ;;  %v4684_v43 = vpop.f32.mrb[26].mxu1  ;;  %v5035_v28 = vpop.f32.mrb[25].mxu0 }
 0x6de   : > { %v5492_v19 = vmax.f32 %v5491_v22, %v4684_v43  ;;  %v5680_v48 = vmax.f32 %v5679_v45, %v5035_v28  ;;  %v4686_v57 = vpop.f32.mrb[27].mxu1  ;;  %v5037_v58 = vpop.f32.mrb[26].mxu0 }
 0x6df   : > { %v5555_v39 = vmax.f32 %v5554_v46, %v4686_v57  ;;  %v5618_v40 = vmax.f32 %v5617_v10, %v5037_v58  ;;  %v5039_v12 = vpop.f32.mrb[27].mxu0  ;;  %v5824_v54 = vpop.trf.xlu0 }
 0x6e0   : > { %v5681_v21 = vmax.f32 %v5680_v48, %v5039_v12  ;;  %5886 = vst [vmem:[%s8872_s26 + $0x90] sm:$0xff] %v5824_v54  ;;  %v5856_v3 = vpop.trf.xlu1 }
 0x6e1   : > { %5887 = vst [vmem:[%s8872_s26 + $0x98] sm:$0xff] %v5856_v3 }
 0x6e3   : > { %v4690_v47 = vpop.f32.mrb[28].mxu1  ;;  %v5825_v11 = vpop.trf.xlu0 }
 0x6e4   : > { %v5493_v30 = vmax.f32 %v5492_v19, %v4690_v47  ;;  %v4692_v23 = vpop.f32.mrb[29].mxu1  ;;  %v5043_v62 = vpop.f32.mrb[28].mxu0  ;;  %5890 = vst [vmem:[%s8872_s26 + $0xb0] sm:$0xff] %v5825_v11 }
 0x6e5   : > { %v5556_v15 = vmax.f32 %v5555_v39, %v4692_v23  ;;  %v5619_v49 = vmax.f32 %v5618_v40, %v5043_v62  ;;  %v4694_v55 = vpop.f32.mrb[30].mxu1  ;;  %v5045_v41 = vpop.f32.mrb[29].mxu0 }
 0x6e6   : > { %v5494_v18 = vmax.f32 %v5493_v30, %v4694_v55  ;;  %v5682_v63 = vmax.f32 %v5681_v21, %v5045_v41  ;;  %v4696_v52 = vpop.f32.mrb[31].mxu1  ;;  %v5047_v25 = vpop.f32.mrb[30].mxu0 }
 0x6e7   : > { %v5557_v29 = vmax.f32 %v5556_v15, %v4696_v52  ;;  %v5620_v2 = vmax.f32 %v5619_v49, %v5047_v25  ;;  %v5049_v20 = vpop.f32.mrb[31].mxu0  ;;  %v5857_v19 = vpop.trf.xlu1 }
 0x6e8   : > { %v5683_v8 = vmax.f32 %v5682_v63, %v5049_v20  ;;  %5891 = vst [vmem:[%s8872_s26 + $0xb8] sm:$0xff] %v5857_v19  ;;  %v5826_v57 = vpop.trf.xlu0 }
 0x6e9   : > { %5894 = vst [vmem:[%s8872_s26 + $0xd0] sm:$0xff] %v5826_v57 }
 0x6eb   : > { %v4700_v7 = vpop.f32.mrb[32].mxu1  ;;  %v5858_v39 = vpop.trf.xlu1 }
 0x6ec   : > { %v5495_v16 = vmax.f32 %v5494_v18, %v4700_v7  ;;  %v4702_v1 = vpop.f32.mrb[33].mxu1  ;;  %v5053_v60 = vpop.f32.mrb[32].mxu0  ;;  %5895 = vst [vmem:[%s8872_s26 + $0xd8] sm:$0xff] %v5858_v39 }
 0x6ed   : > { %v5558_v0 = vmax.f32 %v5557_v29, %v4702_v1  ;;  %v5621_v50 = vmax.f32 %v5620_v2, %v5053_v60  ;;  %v4704_v51 = vpop.f32.mrb[34].mxu1  ;;  %v5055_v36 = vpop.f32.mrb[33].mxu0 }
 0x6ee   : > { %v5496_v53 = vmax.f32 %v5495_v16, %v4704_v51  ;;  %v5684_v38 = vmax.f32 %v5683_v8, %v5055_v36  ;;  %v4706_v32 = vpop.f32.mrb[35].mxu1  ;;  %v5057_v34 = vpop.f32.mrb[34].mxu0 }
 0x6ef   : > { %v5559_v4 = vmax.f32 %v5558_v0, %v4706_v32  ;;  %v5622_v35 = vmax.f32 %v5621_v50, %v5057_v34  ;;  %v5059_v42 = vpop.f32.mrb[35].mxu0  ;;  %v5827_v18 = vpop.trf.xlu0 }
 0x6f0   : > { %v5685_v44 = vmax.f32 %v5684_v38, %v5059_v42  ;;  %5898 = vst [vmem:[%s8872_s26 + $0xf0] sm:$0xff] %v5827_v18  ;;  %v5859_v52 = vpop.trf.xlu1 }
 0x6f1   : > { %5899 = vst [vmem:[%s8872_s26 + $0xf8] sm:$0xff] %v5859_v52 }
 0x6f3   : > { %v4710_v59 = vpop.f32.mrb[36].mxu1 }
 0x6f4   : > { %v5497_v26 = vmax.f32 %v5496_v53, %v4710_v59  ;;  %v4712_v56 = vpop.f32.mrb[37].mxu1  ;;  %v5063_v9 = vpop.f32.mrb[36].mxu0 }
 0x6f5   : > { %v5560_v45 = vmax.f32 %v5559_v4, %v4712_v56  ;;  %v5623_v5 = vmax.f32 %v5622_v35, %v5063_v9  ;;  %v4714_v13 = vpop.f32.mrb[38].mxu1  ;;  %v5065_v24 = vpop.f32.mrb[37].mxu0 }
 0x6f6   : > { %v5498_v22 = vmax.f32 %v5497_v26, %v4714_v13  ;;  %v5686_v61 = vmax.f32 %v5685_v44, %v5065_v24  ;;  %v4716_v14 = vpop.f32.mrb[39].mxu1  ;;  %v5067_v46 = vpop.f32.mrb[38].mxu0 }
 0x6f7   : > { %v5561_v10 = vmax.f32 %v5560_v45, %v4716_v14  ;;  %v5624_v43 = vmax.f32 %v5623_v5, %v5067_v46  ;;  %v5069_v28 = vpop.f32.mrb[39].mxu0 }
 0x6f8   : > { %v5687_v48 = vmax.f32 %v5686_v61, %v5069_v28 }
 0x6fb   : > { %v4720_v58 = vpop.f32.mrb[40].mxu1 }
 0x6fc   : > { %v5499_v40 = vmax.f32 %v5498_v22, %v4720_v58  ;;  %v4722_v12 = vpop.f32.mrb[41].mxu1  ;;  %v5073_v27 = vpop.f32.mrb[40].mxu0 }
 0x6fd   : > { %v5562_v21 = vmax.f32 %v5561_v10, %v4722_v12  ;;  %v5625_v33 = vmax.f32 %v5624_v43, %v5073_v27  ;;  %v4724_v47 = vpop.f32.mrb[42].mxu1  ;;  %v5075_v37 = vpop.f32.mrb[41].mxu0 }
 0x6fe   : > { %v5500_v30 = vmax.f32 %v5499_v40, %v4724_v47  ;;  %v5688_v23 = vmax.f32 %v5687_v48, %v5075_v37  ;;  %v4726_v62 = vpop.f32.mrb[43].mxu1  ;;  %v5077_v15 = vpop.f32.mrb[42].mxu0 }
 0x6ff   : > { %v5563_v49 = vmax.f32 %v5562_v21, %v4726_v62  ;;  %v5626_v55 = vmax.f32 %v5625_v33, %v5077_v15  ;;  %v5079_v41 = vpop.f32.mrb[43].mxu0 }
 0x700   : > { %v5689_v63 = vmax.f32 %v5688_v23, %v5079_v41 }
 0x701   : > { %6766 = shalt.err (!%p6763_p5)
}
 0x702   : > { %s6767_s26 = scalar_lea.hbm %s8909_s15, 4096  ;;  %s6771_s28 = scalar_lea.hbm %s9007_s11, 8192 }
 0x703   : > { %p6768_p6 = scmp.ne.s32.totalorder %s8909_s15, %s6767_s26  ;;  %p6772_p10 = scmp.lt.u32.totalorder %s8909_s15, %s9007_s11 }
 0x704   : > { %p6773_p11 = scmp.lt.u32.totalorder %s6771_s28, %s6767_s26  ;;  %p6775_p13 = scmp.lt.u32.totalorder %s6767_s26, %s8909_s15 }
 0x705   : > { %p6769_p7 = pnand %p6768_p6, %p6972_p4 }
 0x706   : > { %p6774_p12 = por %p6773_p11, %p6772_p10 }
 0x707   : > { %p6770_p9 = pneg %p6769_p7 }
 0x708   : > { %p6776_p0 = por %p6775_p13, %p6774_p12 }
 0x70a   : > { %p6777_p1 = pnand %p6776_p0, %p6770_p9 }
 0x70c   : > { %6780 = shalt.err (!%p6777_p1)
}
 0x70d   : > { %s6869_s0 = smov 512   ;;  %s6870_s16 = smov 32   ;;  %v4730_v25 = vpop.f32.mrb[44].mxu1  ;;  %v5083_v20 = vpop.f32.mrb[44].mxu0 }
 0x70e   : > { %s9069_s3 = scalar_lea.sflag [#allocation5], %s8838_s14  ;;  %v5501_v29 = vmax.f32 %v5500_v30, %v4730_v25  ;;  %v4732_v2 = vpop.f32.mrb[45].mxu1  ;;  %v5627_v8 = vmax.f32 %v5626_v55, %v5083_v20  ;;  %v5085_v7 = vpop.f32.mrb[45].mxu0  ;;  %s6250_s1 = sshll.u32 %s6855_s20, 10 }
 0x70f   : > { %6585 = dma.vmem_to_hbm [thread:$0]  (%p6972_p4), %s8911_s12, 4096, %s8909_s15, %s9069_s3, %s6869_s0, %s6869_s0, %s6870_s16   ;;  %v5564_v17 = vmax.f32 %v5563_v49, %v4732_v2  ;;  %v4734_v6 = vpop.f32.mrb[46].mxu1  ;;  %v5690_v16 = vmax.f32 %v5689_v63, %v5085_v7  ;;  %v5087_v60 = vpop.f32.mrb[46].mxu0 }
 0x710   : > { %v5502_v31 = vmax.f32 %v5501_v29, %v4734_v6  ;;  %v4736_v1 = vpop.f32.mrb[47].mxu1  ;;  %v5628_v50 = vmax.f32 %v5627_v8, %v5087_v60  ;;  %v5089_v51 = vpop.f32.mrb[47].mxu0  ;;  %s5922_s2 = sshll.u32 %s8846_s23, 4  ;;  %s8945_s15 = scalar_lea.hbm %s9006_s10, %s6250_s1  ;;  %s8947_s2 = int_to_ptr.vmem [resolvable:$true] %s5922_s2 }
 0x711   : > { %v5565_v0 = vmax.f32 %v5564_v17, %v4736_v1  ;;  %v5691_v36 = vmax.f32 %v5690_v16, %v5089_v51  ;;  %v4740_v53 = vpop.f32.mrb[48].mxu1  ;;  %v5093_v34 = vpop.f32.mrb[48].mxu0  ;;  %s5901_s24 = scalar_lea.sflag [#allocation3], %s8838_s14  ;;  %s6781_s26 = scalar_lea.vmem %s8947_s2, 1024 }
 0x712   : > { %v5503_v38 = vmax.f32 %v5502_v31, %v4740_v53  ;;  %v4742_v32 = vpop.f32.mrb[49].mxu1  ;;  %v5629_v35 = vmax.f32 %v5628_v50, %v5093_v34  ;;  %v5095_v54 = vpop.f32.mrb[49].mxu0  ;;  %p6782_p2 = scmp.ne.s32.totalorder %s8947_s2, %s6781_s26  ;;  %s6871_s20 = smov [#allocation2]  }
 0x713   : > { %v5566_v4 = vmax.f32 %v5565_v0, %v4742_v32  ;;  %v4744_v42 = vpop.f32.mrb[50].mxu1  ;;  %v5692_v3 = vmax.f32 %v5691_v36, %v5095_v54  ;;  %v5097_v11 = vpop.f32.mrb[50].mxu0  ;;  %s6785_s28 = sshll.u32 %s6871_s20, 4  ;;  %s6786_s28 = int_to_ptr.vmem [resolvable:$false] %s6785_s28 }
 0x714   : > { %v5504_v44 = vmax.f32 %v5503_v38, %v4744_v42  ;;  %v4746_v59 = vpop.f32.mrb[51].mxu1  ;;  %v5630_v56 = vmax.f32 %v5629_v35, %v5097_v11  ;;  %v5099_v9 = vpop.f32.mrb[51].mxu0  ;;  %p6783_p3 = pnand %p6782_p2, %p6972_p4  ;;  %s6787_s13 = scalar_lea.vmem %s6786_s28, 2048 }
 0x715   : > { %v5567_v26 = vmax.f32 %v5566_v4, %v4746_v59  ;;  %v5693_v45 = vmax.f32 %v5692_v3, %v5099_v9  ;;  %v4750_v5 = vpop.f32.mrb[52].mxu1  ;;  %v5103_v22 = vpop.f32.mrb[52].mxu0  ;;  %p6788_p6 = scmp.lt.s32.totalorder %s8947_s2, %s6786_s28  ;;  %p6789_p7 = scmp.lt.s32.totalorder %s6787_s13, %s6781_s26 }
 0x716   : > { %v5505_v13 = vmax.f32 %v5504_v44, %v4750_v5  ;;  %v4752_v24 = vpop.f32.mrb[53].mxu1  ;;  %v5631_v14 = vmax.f32 %v5630_v56, %v5103_v22  ;;  %v5105_v10 = vpop.f32.mrb[53].mxu0  ;;  %p6784_p5 = pneg %p6783_p3 }
 0x717   : > { %v5568_v61 = vmax.f32 %v5567_v26, %v4752_v24  ;;  %v4754_v46 = vpop.f32.mrb[54].mxu1  ;;  %v5694_v28 = vmax.f32 %v5693_v45, %v5105_v10  ;;  %v5107_v48 = vpop.f32.mrb[54].mxu0  ;;  %p6790_p9 = por %p6789_p7, %p6788_p6 }
 0x718   : > { %v5506_v43 = vmax.f32 %v5505_v13, %v4754_v46  ;;  %v4756_v19 = vpop.f32.mrb[55].mxu1  ;;  %v5632_v58 = vmax.f32 %v5631_v14, %v5107_v48  ;;  %v5109_v39 = vpop.f32.mrb[55].mxu0 }
 0x719   : > { %v5569_v57 = vmax.f32 %v5568_v61, %v4756_v19  ;;  %v5695_v40 = vmax.f32 %v5694_v28, %v5109_v39  ;;  %p6791_p10 = pnand %p6790_p9, %p6784_p5 }
 0x71b   : > { %v4760_v12 = vpop.f32.mrb[56].mxu1 }
 0x71c   : > { %v5507_v27 = vmax.f32 %v5506_v43, %v4760_v12  ;;  %v4762_v21 = vpop.f32.mrb[57].mxu1  ;;  %v5113_v33 = vpop.f32.mrb[56].mxu0 }
 0x71d   : > { %v5570_v47 = vmax.f32 %v5569_v57, %v4762_v21  ;;  %v5633_v37 = vmax.f32 %v5632_v58, %v5113_v33  ;;  %v4764_v30 = vpop.f32.mrb[58].mxu1  ;;  %v5115_v23 = vpop.f32.mrb[57].mxu0 }
 0x71e   : > { %v5508_v62 = vmax.f32 %v5507_v27, %v4764_v30  ;;  %v5696_v15 = vmax.f32 %v5695_v40, %v5115_v23  ;;  %v4766_v49 = vpop.f32.mrb[59].mxu1  ;;  %v5117_v55 = vpop.f32.mrb[58].mxu0 }
 0x71f   : > { %v5571_v41 = vmax.f32 %v5570_v47, %v4766_v49  ;;  %v5634_v18 = vmax.f32 %v5633_v37, %v5117_v55  ;;  %v5119_v63 = vpop.f32.mrb[59].mxu0 }
 0x720   : > { %v5697_v52 = vmax.f32 %v5696_v15, %v5119_v63 }
 0x723   : > { %v4770_v25 = vpop.f32.mrb[60].mxu1 }
 0x724   : > { %v5509_v29 = vmax.f32 %v5508_v62, %v4770_v25  ;;  %v4772_v2 = vpop.f32.mrb[61].mxu1  ;;  %v5123_v20 = vpop.f32.mrb[60].mxu0 }
 0x725   : > { %v5572_v17 = vmax.f32 %v5571_v41, %v4772_v2  ;;  %v5635_v8 = vmax.f32 %v5634_v18, %v5123_v20  ;;  %v4774_v6 = vpop.f32.mrb[62].mxu1  ;;  %v5125_v7 = vpop.f32.mrb[61].mxu0 }
 0x726   : > { %v5510_v31 = vmax.f32 %v5509_v29, %v4774_v6  ;;  %v5698_v16 = vmax.f32 %v5697_v52, %v5125_v7  ;;  %v4776_v1 = vpop.f32.mrb[63].mxu1  ;;  %v5127_v60 = vpop.f32.mrb[62].mxu0 }
 0x727   : > { %v5573_v0 = vmax.f32 %v5572_v17, %v4776_v1  ;;  %v5636_v50 = vmax.f32 %v5635_v8, %v5127_v60  ;;  %v5129_v51 = vpop.f32.mrb[63].mxu0 }
 0x728   : > { %v5699_v36 = vmax.f32 %v5698_v16, %v5129_v51 }
 0x72b   : > { %v4780_v53 = vpop.f32.mrb[64].mxu1 }
 0x72c   : > { %v5511_v38 = vmax.f32 %v5510_v31, %v4780_v53  ;;  %v4782_v32 = vpop.f32.mrb[65].mxu1  ;;  %v5133_v34 = vpop.f32.mrb[64].mxu0 }
 0x72d   : > { %v5574_v4 = vmax.f32 %v5573_v0, %v4782_v32  ;;  %v5637_v35 = vmax.f32 %v5636_v50, %v5133_v34  ;;  %v4784_v42 = vpop.f32.mrb[66].mxu1  ;;  %v5135_v54 = vpop.f32.mrb[65].mxu0 }
 0x72e   : > { %v5512_v44 = vmax.f32 %v5511_v38, %v4784_v42  ;;  %v5700_v3 = vmax.f32 %v5699_v36, %v5135_v54  ;;  %v4786_v59 = vpop.f32.mrb[67].mxu1  ;;  %v5137_v11 = vpop.f32.mrb[66].mxu0 }
 0x72f   : > { %v5575_v26 = vmax.f32 %v5574_v4, %v4786_v59  ;;  %v5638_v56 = vmax.f32 %v5637_v35, %v5137_v11  ;;  %v5139_v9 = vpop.f32.mrb[67].mxu0 }
 0x730   : > { %v5701_v45 = vmax.f32 %v5700_v3, %v5139_v9 }
 0x733   : > { %v4790_v5 = vpop.f32.mrb[68].mxu1 }
 0x734   : > { %v5513_v13 = vmax.f32 %v5512_v44, %v4790_v5  ;;  %v4792_v24 = vpop.f32.mrb[69].mxu1  ;;  %v5143_v22 = vpop.f32.mrb[68].mxu0 }
 0x735   : > { %v5576_v61 = vmax.f32 %v5575_v26, %v4792_v24  ;;  %v5639_v14 = vmax.f32 %v5638_v56, %v5143_v22  ;;  %v4794_v46 = vpop.f32.mrb[70].mxu1  ;;  %v5145_v10 = vpop.f32.mrb[69].mxu0 }
 0x736   : > { %v5514_v43 = vmax.f32 %v5513_v13, %v4794_v46  ;;  %v5702_v28 = vmax.f32 %v5701_v45, %v5145_v10  ;;  %v4796_v19 = vpop.f32.mrb[71].mxu1  ;;  %v5147_v48 = vpop.f32.mrb[70].mxu0 }
 0x737   : > { %v5577_v57 = vmax.f32 %v5576_v61, %v4796_v19  ;;  %v5640_v58 = vmax.f32 %v5639_v14, %v5147_v48  ;;  %v5149_v39 = vpop.f32.mrb[71].mxu0 }
 0x738   : > { %v5703_v40 = vmax.f32 %v5702_v28, %v5149_v39 }
 0x73b   : > { %v4800_v12 = vpop.f32.mrb[72].mxu1 }
 0x73c   : > { %v5515_v27 = vmax.f32 %v5514_v43, %v4800_v12  ;;  %v4802_v21 = vpop.f32.mrb[73].mxu1  ;;  %v5153_v33 = vpop.f32.mrb[72].mxu0 }
 0x73d   : > { %v5578_v47 = vmax.f32 %v5577_v57, %v4802_v21  ;;  %v5641_v37 = vmax.f32 %v5640_v58, %v5153_v33  ;;  %v4804_v30 = vpop.f32.mrb[74].mxu1  ;;  %v5155_v23 = vpop.f32.mrb[73].mxu0 }
 0x73e   : > { %v5516_v62 = vmax.f32 %v5515_v27, %v4804_v30  ;;  %v5704_v15 = vmax.f32 %v5703_v40, %v5155_v23  ;;  %v4806_v49 = vpop.f32.mrb[75].mxu1  ;;  %v5157_v55 = vpop.f32.mrb[74].mxu0 }
 0x73f   : > { %v5579_v41 = vmax.f32 %v5578_v47, %v4806_v49  ;;  %v5642_v18 = vmax.f32 %v5641_v37, %v5157_v55  ;;  %v5159_v63 = vpop.f32.mrb[75].mxu0 }
 0x740   : > { %v5705_v52 = vmax.f32 %v5704_v15, %v5159_v63 }
 0x743   : > { %v4810_v25 = vpop.f32.mrb[76].mxu1 }
 0x744   : > { %v5517_v29 = vmax.f32 %v5516_v62, %v4810_v25  ;;  %v4812_v2 = vpop.f32.mrb[77].mxu1  ;;  %v5163_v20 = vpop.f32.mrb[76].mxu0 }
 0x745   : > { %v5580_v17 = vmax.f32 %v5579_v41, %v4812_v2  ;;  %v5643_v8 = vmax.f32 %v5642_v18, %v5163_v20  ;;  %v4814_v6 = vpop.f32.mrb[78].mxu1  ;;  %v5165_v7 = vpop.f32.mrb[77].mxu0 }
 0x746   : > { %v5518_v31 = vmax.f32 %v5517_v29, %v4814_v6  ;;  %v5706_v16 = vmax.f32 %v5705_v52, %v5165_v7  ;;  %v4816_v1 = vpop.f32.mrb[79].mxu1  ;;  %v5167_v60 = vpop.f32.mrb[78].mxu0 }
 0x747   : > { %v5581_v0 = vmax.f32 %v5580_v17, %v4816_v1  ;;  %v5644_v50 = vmax.f32 %v5643_v8, %v5167_v60  ;;  %v5169_v51 = vpop.f32.mrb[79].mxu0 }
 0x748   : > { %v5707_v36 = vmax.f32 %v5706_v16, %v5169_v51 }
 0x74b   : > { %v4820_v53 = vpop.f32.mrb[80].mxu1 }
 0x74c   : > { %v5519_v38 = vmax.f32 %v5518_v31, %v4820_v53  ;;  %v4822_v32 = vpop.f32.mrb[81].mxu1  ;;  %v5173_v34 = vpop.f32.mrb[80].mxu0 }
 0x74d   : > { %v5582_v4 = vmax.f32 %v5581_v0, %v4822_v32  ;;  %v5645_v35 = vmax.f32 %v5644_v50, %v5173_v34  ;;  %v4824_v42 = vpop.f32.mrb[82].mxu1  ;;  %v5175_v54 = vpop.f32.mrb[81].mxu0 }
 0x74e   : > { %v5520_v44 = vmax.f32 %v5519_v38, %v4824_v42  ;;  %v5708_v3 = vmax.f32 %v5707_v36, %v5175_v54  ;;  %v4826_v59 = vpop.f32.mrb[83].mxu1  ;;  %v5177_v11 = vpop.f32.mrb[82].mxu0 }
 0x74f   : > { %v5583_v26 = vmax.f32 %v5582_v4, %v4826_v59  ;;  %v5646_v56 = vmax.f32 %v5645_v35, %v5177_v11  ;;  %v5179_v9 = vpop.f32.mrb[83].mxu0 }
 0x750   : > { %v5709_v45 = vmax.f32 %v5708_v3, %v5179_v9 }
 0x753   : > { %v4830_v5 = vpop.f32.mrb[84].mxu1 }
 0x754   : > { %v5521_v13 = vmax.f32 %v5520_v44, %v4830_v5  ;;  %v4832_v24 = vpop.f32.mrb[85].mxu1  ;;  %v5183_v22 = vpop.f32.mrb[84].mxu0 }
 0x755   : > { %v5584_v61 = vmax.f32 %v5583_v26, %v4832_v24  ;;  %v5647_v14 = vmax.f32 %v5646_v56, %v5183_v22  ;;  %v4834_v46 = vpop.f32.mrb[86].mxu1  ;;  %v5185_v10 = vpop.f32.mrb[85].mxu0 }
 0x756   : > { %v5522_v43 = vmax.f32 %v5521_v13, %v4834_v46  ;;  %v5710_v28 = vmax.f32 %v5709_v45, %v5185_v10  ;;  %v4836_v19 = vpop.f32.mrb[87].mxu1  ;;  %v5187_v48 = vpop.f32.mrb[86].mxu0 }
 0x757   : > { %v5585_v57 = vmax.f32 %v5584_v61, %v4836_v19  ;;  %v5648_v58 = vmax.f32 %v5647_v14, %v5187_v48  ;;  %v5189_v39 = vpop.f32.mrb[87].mxu0 }
 0x758   : > { %v5711_v40 = vmax.f32 %v5710_v28, %v5189_v39 }
 0x75b   : > { %v4840_v12 = vpop.f32.mrb[88].mxu1 }
 0x75c   : > { %v5523_v27 = vmax.f32 %v5522_v43, %v4840_v12  ;;  %v4842_v21 = vpop.f32.mrb[89].mxu1  ;;  %v5193_v33 = vpop.f32.mrb[88].mxu0 }
 0x75d   : > { %v5586_v47 = vmax.f32 %v5585_v57, %v4842_v21  ;;  %v5649_v37 = vmax.f32 %v5648_v58, %v5193_v33  ;;  %v4844_v30 = vpop.f32.mrb[90].mxu1  ;;  %v5195_v23 = vpop.f32.mrb[89].mxu0 }
 0x75e   : > { %v5524_v62 = vmax.f32 %v5523_v27, %v4844_v30  ;;  %v5712_v15 = vmax.f32 %v5711_v40, %v5195_v23  ;;  %v4846_v49 = vpop.f32.mrb[91].mxu1  ;;  %v5197_v55 = vpop.f32.mrb[90].mxu0 }
 0x75f   : > { %v5587_v41 = vmax.f32 %v5586_v47, %v4846_v49  ;;  %v5650_v18 = vmax.f32 %v5649_v37, %v5197_v55  ;;  %v5199_v63 = vpop.f32.mrb[91].mxu0 }
 0x760   : > { %v5713_v52 = vmax.f32 %v5712_v15, %v5199_v63 }
 0x763   : > { %v4850_v25 = vpop.f32.mrb[92].mxu1 }
 0x764   : > { %v5525_v29 = vmax.f32 %v5524_v62, %v4850_v25  ;;  %v4852_v2 = vpop.f32.mrb[93].mxu1  ;;  %v5203_v20 = vpop.f32.mrb[92].mxu0 }
 0x765   : > { %v5588_v17 = vmax.f32 %v5587_v41, %v4852_v2  ;;  %v5651_v8 = vmax.f32 %v5650_v18, %v5203_v20  ;;  %v4854_v6 = vpop.f32.mrb[94].mxu1  ;;  %v5205_v7 = vpop.f32.mrb[93].mxu0 }
 0x766   : > { %v5526_v31 = vmax.f32 %v5525_v29, %v4854_v6  ;;  %v5714_v16 = vmax.f32 %v5713_v52, %v5205_v7  ;;  %v4856_v1 = vpop.f32.mrb[95].mxu1  ;;  %v5207_v60 = vpop.f32.mrb[94].mxu0 }
 0x767   : > { %v5589_v0 = vmax.f32 %v5588_v17, %v4856_v1  ;;  %v5652_v50 = vmax.f32 %v5651_v8, %v5207_v60  ;;  %v5209_v51 = vpop.f32.mrb[95].mxu0 }
 0x768   : > { %v5715_v36 = vmax.f32 %v5714_v16, %v5209_v51  ;;  %5736 = vst [vmem:[%s8846_s23 + $0x20] sm:$0xff] %v5526_v31 }
 0x769   : > { %5737 = vst [vmem:[%s8846_s23 + $0x28] sm:$0xff] %v5589_v0  ;;  %5738 = vst [vmem:[%s8846_s23 + $0x30] sm:$0xff] %v5652_v50 }
 0x76a   : > { %5739 = vst [vmem:[%s8846_s23 + $0x38] sm:$0xff] %v5715_v36 }
 0x76b   : > { %6794 = shalt.err (!%p6791_p10)
}
 0x76c   : > { %s6795_s14 = scalar_lea.hbm %s8945_s15, 1024  ;;  %s6799_s16 = scalar_lea.hbm %s9006_s10, 2048 }
 0x76d   : > { %p6796_p11 = scmp.ne.s32.totalorder %s8945_s15, %s6795_s14  ;;  %p6800_p0 = scmp.lt.u32.totalorder %s8945_s15, %s9006_s10 }
 0x76e   : > { %p6801_p1 = scmp.lt.u32.totalorder %s6799_s16, %s6795_s14  ;;  %p6803_p3 = scmp.lt.u32.totalorder %s6795_s14, %s8945_s15 }
 0x76f   : > { %p6797_p12 = pnand %p6796_p11, %p6972_p4 }
 0x770   : > { %p6802_p2 = por %p6801_p1, %p6800_p0 }
 0x771   : > { %p6798_p13 = pneg %p6797_p12 }
 0x772   : > { %p6804_p5 = por %p6803_p3, %p6802_p2 }
 0x774   : > { %p6805_p6 = pnand %p6804_p5, %p6798_p13 }
 0x776   : > { %6808 = shalt.err (!%p6805_p6)
}
 0x777   : > { %6584 = dma.vmem_to_hbm [thread:$0]  (%p6972_p4), %s8947_s2, 1024, %s8945_s15, %s5901_s24  }
 0x778 PF: > { %p6595_p7 = scmp.ge.s32.totalorder %s6863_s22, 2  ;;  %s5953_s12 = sand.u32 1, %s6843_s17  }
 0x779   : > { %s5954_s26 = scalar_lea.sflag [#allocation3], %s5953_s12 }
 0x77a   : > { %p6589_p9 = pnand %p6595_p7, %p6979_p8 }
 0x77c   : > { %6834 = dma.done.wait (!%p6589_p9), %s5954_s26, 1024  }
 0x77d   : > { %6836 = vsyncadd (!%p6589_p9), %s5954_s26, 4294966272  ;;  %s5963_s20 = scalar_lea.sflag [#allocation5], %s5953_s12 }
 0x77e   : > { %6838 = dma.done.wait (!%p6589_p9), %s5963_s20, 4096  }
 0x77f   : > { %6840 = vsyncadd (!%p6589_p9), %s5963_s20, 4294963200  ;;  %s28_s22 = sadd.s32 1, %s6863_s22   ;;  %s9070_s17 = smov %s6847_s18 }
 0x780   : > { %p25_p10 = scmp.ge.s32.totalorder %s28_s22, 4   ;;  %s9071_s18 = smov %s6851_s19 }
 0x781   : > { %s9072_s19 = smov %s6985_s30  ;;  %s9073_s20 = smov %s6859_s21 }
 0x782   : > { %s9074_s21 = smov %s9076_s25  ;;  %27 = sbr.rel (!%p25_p10) target bundleno = 11 (0xb), region = 116 }
 0x789   :  { %5968 = vsyncpa [#allocation3], 1 }
 0x78a   :  { %5970 = vsyncpa [#allocation3 + $0x1], 1 }
 0x78b   :  { %5971 = vsyncpa [#allocation5], 1 }
 0x78c   :  { %5973 = vsyncpa [#allocation5 + $0x1], 1 }

</bundles_post_ra>
